<compile_context>
chip_gen: v6e
topology: v6e:2x2x1
jax: 0.10.0
libtpu: 0.0.40
codegen_flags: <defaults>
</compile_context>

<pallas_src>
import functools

import numpy as np
import jax
import jax.numpy as jnp
from jax.experimental import pallas as pl
from jax.experimental.pallas import tpu as pltpu

# keep the plain-JAX reference / table precompute at full f32 matmul precision so the
# 5e-4 check against the (exact-gather) kernel is meaningful on TPU.
jax.config.update("jax_default_matmul_precision", "highest")
HIGHEST = jax.lax.Precision.HIGHEST

# ----------------------------- config ("args") -------------------------------
NUM_QUES = 50       # args.num_ques
EMB_DIM = 16        # args.emb_dim
HIDDEN_DIM = 32     # args.hidden_dim
EXERCISE_DIM = 32   # args.exercise_dim
T = 8               # max sequence length
B = 4               # batch size
SUBLANES = 8        # f32 sublane count; batch padded to this
VOCAB_PAD = 128     # 2*NUM_QUES = 100 table rows, padded to one full lane width


# ------------------------------ fused Pallas kernel ---------------------------
def kt_fused_kernel(gidx_ref, nidx_ref, gtab_ref, ntab_ref,
                    whh_ref, w1h_ref, b1_ref, w2_ref, b2_ref,
                    o_ref, ks_ref, *, n_steps):
    """Embedding-gather + Fusion + DKT-LSTM + Predict, everything resident in VMEM.

    gidx_ref : (N, 1)   int32, gate-table row index  = ques + NUM_QUES*answer   (N = T*Bp)
    nidx_ref : (N, 1)   int32, next-question index
    gtab_ref : (Vp, 4H) f32, gate_tab[q+50*a] = E[q]@W_{top|bot} + b  (i/f/o cols prescaled 0.5)
    ntab_ref : (Vp, E)  f32, next_tab[q] = E[q] @ W1[H:]
    whh_ref  : (H, 4H)  LSTM recurrent weights (transposed, i/f/o cols prescaled 0.5)
    w1h_ref  : (H, E)   Predict W1 rows acting on ks_emb
    b1_ref   : (1, E)
    w2_ref   : (1, E)   Predict W2 row vector
    b2_ref   : (1, 1)   in SMEM (scalar)
    o_ref    : (N, 1)   sigmoid predictions
    ks_ref   : (N, H)   VMEM scratch holding all hidden states
    """
    N = gidx_ref.shape[0]
    Vp = gtab_ref.shape[0]
    H = whh_ref.shape[0]
    Bp = N // n_steps

    # --- embedding + Fusion + input projection folded into one table gather ----
    # one-hot @ table == exact row select (padded / out-of-range rows give zeros).
    col = jax.lax.broadcasted_iota(jnp.int32, (N, Vp), 1)
    oh_g = (col == gidx_ref[...]).astype(jnp.float32)                     # (N, Vp)
    gates_x = jnp.dot(oh_g, gtab_ref[...],
                      preferred_element_type=jnp.float32,
                      precision=HIGHEST)                                  # (N, 4H)
    oh_n = (col == nidx_ref[...]).astype(jnp.float32)                     # (N, Vp)
    ne_w1 = jnp.dot(oh_n, ntab_ref[...],
                    preferred_element_type=jnp.float32,
                    precision=HIGHEST)                                    # (N, E)

    # --- serial LSTM recurrence (fully unrolled; tiny, VMEM-resident) ---------
    whh = whh_ref[...]                                                    # (H, 4H)
    h = jnp.zeros((Bp, H), jnp.float32)
    c = jnp.zeros((Bp, H), jnp.float32)
    for t in range(n_steps):              # static trip count -> unrolled at trace time
        g = gates_x[t * Bp:(t + 1) * Bp, :] + jnp.dot(
            h, whh, preferred_element_type=jnp.float32, precision=HIGHEST)  # (Bp, 4H)
        y = jnp.tanh(g)                   # ONE EUP pass over the full gate vreg
        sg = 0.5 * y + 0.5                # sigmoid via tanh: i/f/o cols were prescaled by 0.5
        i = sg[:, 0:H]
        f = sg[:, H:2 * H]
        gg = y[:, 2 * H:3 * H]            # g-gate columns: NOT prescaled, plain tanh
        o = sg[:, 3 * H:4 * H]
        c = f * c + i * gg
        h = o * jnp.tanh(c)
        ks_ref[t * Bp:(t + 1) * Bp, :] = h  # per-step store, sublane-aligned (Bp = 8)

    # --- Predict: sigmoid(relu([ks, next] @ W1 + b1) @ W2 + b2) ---------------
    h1 = jnp.maximum(
        jnp.dot(ks_ref[...], w1h_ref[...],
                preferred_element_type=jnp.float32, precision=HIGHEST)
        + ne_w1 + b1_ref[...], 0.0)                                       # (N, E)
    # degenerate (E,1) matmul -> VPU multiply + lane reduce
    logit = jnp.sum(h1 * w2_ref[...], axis=-1, keepdims=True) + b2_ref[0, 0]   # (N, 1)
    o_ref[...] = jax.nn.sigmoid(logit)


# ---------------------- one-time parameter preparation ------------------------
def prepare_kernel_params(params):
    """Hoists ALL weight massaging out of the per-call jitted forward (done once)."""
    D = params["emb_table"].shape[1]
    H = params["w_hh"].shape[0]
    E_tab = params["emb_table"]                                   # (NQ, D)

    w_top = params["w_ih"][:D]        # acts on q*a       (answer == 1)
    w_bot = params["w_ih"][D:]        # acts on q*(1-a)   (answer == 0)
    g0 = jnp.dot(E_tab, w_bot, precision=HIGHEST) + params["b"]   # rows for answer == 0
    g1 = jnp.dot(E_tab, w_top, precision=HIGHEST) + params["b"]   # rows for answer == 1
    gate_tab = jnp.concatenate([g0, g1], axis=0)                  # (2*NQ, 4H)

    # sigmoid(x) = 0.5*(1 + tanh(x/2)) -> prescale i/f/o columns by 0.5; g columns untouched.
    col_scale = jnp.concatenate(
        [jnp.full((H,), 0.5), jnp.full((H,), 0.5),
         jnp.ones((H,)), jnp.full((H,), 0.5)]).astype(jnp.float32)        # (4H,)
    gate_tab = gate_tab * col_scale
    whh = params["w_hh"] * col_scale

    next_tab = jnp.dot(E_tab, params["w1"][H:], precision=HIGHEST)        # (NQ, E)

    gate_tab = jnp.pad(gate_tab, ((0, VOCAB_PAD - gate_tab.shape[0]), (0, 0)))
    next_tab = jnp.pad(next_tab, ((0, VOCAB_PAD - next_tab.shape[0]), (0, 0)))

    return {
        "gate_tab": gate_tab,                  # (128, 4H)
        "next_tab": next_tab,                  # (128, E)
        "whh": whh,                            # (H, 4H)
        "w1h": params["w1"][:H],               # (H, E)
        "b1": params["b1"],                    # (1, E)
        "w2_row": params["w2"].reshape(1, -1), # (1, E)
        "b2": params["b2"],                    # (1, 1) -> SMEM scalar
    }


# ------------------------------ wrapper (glue) --------------------------------
def kt_model_forward(kparams, pad_ques, pad_answer, pad_next):
    Tn, Bn = pad_ques.shape
    H = kparams["whh"].shape[0]
    Bp = ((Bn + SUBLANES - 1) // SUBLANES) * SUBLANES     # pad batch to full sublanes

    # only integer index math remains outside the kernel (requires answer in {0,1};
    # anything else selects a zero table row, i.e. stays finite and is later discarded).
    gate_idx = pad_ques + NUM_QUES * pad_answer           # (T, B) int32
    next_idx = pad_next
    pad_b = Bp - Bn
    if pad_b:
        gate_idx = jnp.pad(gate_idx, ((0, 0), (0, pad_b)))
        next_idx = jnp.pad(next_idx, ((0, 0), (0, pad_b)))
    N = Tn * Bp
    gate_idx = gate_idx.reshape(N, 1)
    next_idx = next_idx.reshape(N, 1)

    vmem = pl.BlockSpec(memory_space=pltpu.MemorySpace.VMEM)
    smem = pl.BlockSpec(memory_space=pltpu.MemorySpace.SMEM)

    out = pl.pallas_call(
        functools.partial(kt_fused_kernel, n_steps=Tn),
        out_shape=jax.ShapeDtypeStruct((N, 1), jnp.float32),
        in_specs=[vmem] * 8 + [smem],          # b2 scalar lives in SMEM (no padded VMEM tile)
        out_specs=vmem,
        scratch_shapes=[pltpu.VMEM((N, H), jnp.float32)],
        # no grid: total working set ~150 KB, fully VMEM-resident on v5e/v6e/v7x.
    )(gate_idx, next_idx,
      kparams["gate_tab"], kparams["next_tab"],
      kparams["whh"], kparams["w1h"], kparams["b1"],
      kparams["w2_row"], kparams["b2"])

    return out.reshape(Tn, Bp)[:, :Bn]                    # (T, B)


# --------------------------- pure-JAX reference -------------------------------
def kt_model_reference(params, pad_ques, pad_answer, pad_next):
    ques_emb = jnp.take(params["emb_table"], pad_ques, axis=0)
    next_emb = jnp.take(params["emb_table"], pad_next, axis=0)
    a = pad_answer.astype(jnp.float32)[..., None]
    input_emb = jnp.concatenate([ques_emb * a, ques_emb * (1.0 - a)], axis=-1)
    H = params["w_hh"].shape[0]

    def step(carry, x):
        h, c = carry
        gates = x @ params["w_ih"] + h @ params["w_hh"] + params["b"]
        i = jax.nn.sigmoid(gates[:, :H])
        f = jax.nn.sigmoid(gates[:, H:2 * H])
        g = jnp.tanh(gates[:, 2 * H:3 * H])
        o = jax.nn.sigmoid(gates[:, 3 * H:])
        c = f * c + i * g
        h = o * jnp.tanh(c)
        return (h, c), h

    Bn = pad_ques.shape[1]
    init = (jnp.zeros((Bn, H), jnp.float32), jnp.zeros((Bn, H), jnp.float32))
    _, ks = jax.lax.scan(step, init, input_emb)                  # (T, B, H)
    z = jnp.concatenate([ks, next_emb], axis=-1)
    h1 = jnp.maximum(z @ params["w1"] + params["b1"], 0.0)
    logit = h1 @ params["w2"] + params["b2"]
    return jax.nn.sigmoid(logit)[..., 0]                         # (T, B)


def pack_padded(pad_predict, seq_lens):
    # TODO(synk): pack_padded_sequence has no Pallas equivalent (data-dependent output
    # shape); emulate PyTorch semantics (batch_first=False, enforce_sorted=True) on host.
    pad_np = np.asarray(pad_predict)
    lens = np.asarray(seq_lens)
    data, batch_sizes = [], []
    for t in range(pad_np.shape[0]):
        bs = int(np.sum(lens > t))
        if bs == 0:
            break
        data.append(pad_np[t, :bs])
        batch_sizes.append(bs)
    return np.concatenate(data), np.array(batch_sizes, dtype=np.int64)


# ------------------------------ parameter init --------------------------------
def init_params(key):
    ks = jax.random.split(key, 8)
    D, H, E = EMB_DIM, HIDDEN_DIM, EXERCISE_DIM
    return {
        "emb_table": 0.1 * jax.random.normal(ks[0], (NUM_QUES, D), jnp.float32),
        # LSTM (input size = 2D): weights stored transposed so kernel does x @ W
        "w_ih": 0.1 * jax.random.normal(ks[1], (2 * D, 4 * H), jnp.float32),
        "w_hh": 0.1 * jax.random.normal(ks[2], (H, 4 * H), jnp.float32),
        "b":    0.1 * jax.random.normal(ks[3], (1, 4 * H), jnp.float32),  # b_ih + b_hh folded
        # Predict MLP
        "w1": 0.1 * jax.random.normal(ks[4], (H + D, E), jnp.float32),
        "b1": 0.1 * jax.random.normal(ks[5], (1, E), jnp.float32),
        "w2": 0.1 * jax.random.normal(ks[6], (E, 1), jnp.float32),
        "b2": 0.1 * jax.random.normal(ks[7], (1, 1), jnp.float32),
    }


# ----------------------------------- main --------------------------------------
if __name__ == "__main__":
    key = jax.random.PRNGKey(0)
    k1, k2, k3, kp = jax.random.split(key, 4)

    params = init_params(kp)
    kparams = prepare_kernel_params(params)          # one-time, outside the jitted forward

    # time-major padded inputs (T, B); seq_lens descending (enforce_sorted=True).
    pad_ques = jax.random.randint(k1, (T, B), 0, NUM_QUES, dtype=jnp.int32)
    pad_next = jax.random.randint(k2, (T, B), 0, NUM_QUES, dtype=jnp.int32)
    pad_answer = jax.random.randint(k3, (T, B), 0, 2, dtype=jnp.int32)
    seq_lens = np.array([8, 7, 5, 3], dtype=np.int32)

    forward = jax.jit(kt_model_forward)
    pad_predict = jax.block_until_ready(forward(kparams, pad_ques, pad_answer, pad_next))

    # correctness check vs pure-JAX reference of the original module semantics
    ref = jax.block_until_ready(kt_model_reference(params, pad_ques, pad_answer, pad_next))
    np.testing.assert_allclose(np.asarray(pad_predict), np.asarray(ref),
                               rtol=5e-4, atol=5e-4)

    packed_data, batch_sizes = pack_padded(pad_predict, seq_lens)
    assert pad_predict.shape == (T, B)
    assert packed_data.shape[0] == int(seq_lens.sum())
    assert np.all(np.isfinite(packed_data))

    print("KERNEL_OK")
</pallas_src>

<mosaic_0001>
module attributes {stable_mosaic.version = 11 : i64} {
  func.func @kt_fused_kernel(%arg0: memref<64x1xi32, #tpu.memory_space<vmem>>, %arg1: memref<64x1xi32, #tpu.memory_space<vmem>>, %arg2: memref<128x128xf32, #tpu.memory_space<vmem>>, %arg3: memref<128x32xf32, #tpu.memory_space<vmem>>, %arg4: memref<32x128xf32, #tpu.memory_space<vmem>>, %arg5: memref<32x32xf32, #tpu.memory_space<vmem>>, %arg6: memref<1x32xf32, #tpu.memory_space<vmem>>, %arg7: memref<1x32xf32, #tpu.memory_space<vmem>>, %arg8: memref<1x1xf32, #tpu.memory_space<smem>>, %arg9: memref<64x1xf32, #tpu.memory_space<vmem>>, %arg10: memref<64x32xf32, #tpu.memory_space<vmem>>) attributes {dimension_semantics = [], scalar_prefetch = 0 : i64, scratch_operands = 1 : i64, tpu.core_type = #tpu.core_type<tc>} {
    %0 = tpu.iota {dimensions = array<i32: 1>} : vector<64x128xi32>
    %c0 = arith.constant 0 : index
    %c0_0 = arith.constant 0 : index
    %1 = vector.load %arg0[%c0, %c0_0] : memref<64x1xi32, #tpu.memory_space<vmem>>, vector<64x1xi32>
    %2 = vector.broadcast %1 : vector<64x1xi32> to vector<64x128xi32>
    %3 = arith.cmpi eq, %0, %2 : vector<64x128xi32>
    %4 = arith.extui %3 : vector<64x128xi1> to vector<64x128xi32>
    %5 = arith.sitofp %4 : vector<64x128xi32> to vector<64x128xf32>
    %c0_1 = arith.constant 0 : index
    %c0_2 = arith.constant 0 : index
    %6 = vector.load %arg2[%c0_1, %c0_2] : memref<128x128xf32, #tpu.memory_space<vmem>>, vector<128x128xf32>
    %cst = arith.constant dense<0.000000e+00> : vector<64x128xf32>
    %7 = tpu.matmul %5, %6, %cst {dimension_numbers = #tpu.dot_dimension_numbers<[1], [0], [0], [1], [0, 0, 1, 1], [], []>, precision = #tpu.contract_precision<fp32>} : vector<64x128xf32>, vector<128x128xf32>, vector<64x128xf32> -> vector<64x128xf32>
    %c0_3 = arith.constant 0 : index
    %c0_4 = arith.constant 0 : index
    %8 = vector.load %arg1[%c0_3, %c0_4] : memref<64x1xi32, #tpu.memory_space<vmem>>, vector<64x1xi32>
    %9 = vector.broadcast %8 : vector<64x1xi32> to vector<64x128xi32>
    %10 = arith.cmpi eq, %0, %9 : vector<64x128xi32>
    %11 = arith.extui %10 : vector<64x128xi1> to vector<64x128xi32>
    %12 = arith.sitofp %11 : vector<64x128xi32> to vector<64x128xf32>
    %c0_5 = arith.constant 0 : index
    %c0_6 = arith.constant 0 : index
    %13 = vector.load %arg3[%c0_5, %c0_6] : memref<128x32xf32, #tpu.memory_space<vmem>>, vector<128x32xf32>
    %cst_7 = arith.constant dense<0.000000e+00> : vector<64x32xf32>
    %14 = tpu.matmul %12, %13, %cst_7 {dimension_numbers = #tpu.dot_dimension_numbers<[1], [0], [0], [1], [0, 0, 1, 1], [], []>, precision = #tpu.contract_precision<fp32>} : vector<64x128xf32>, vector<128x32xf32>, vector<64x32xf32> -> vector<64x32xf32>
    %c0_8 = arith.constant 0 : index
    %c0_9 = arith.constant 0 : index
    %15 = vector.load %arg4[%c0_8, %c0_9] : memref<32x128xf32, #tpu.memory_space<vmem>>, vector<32x128xf32>
    %cst_10 = arith.constant 0.000000e+00 : f32
    %16 = vector.broadcast %cst_10 : f32 to vector<8x32xf32>
    %cst_11 = arith.constant 0.000000e+00 : f32
    %17 = vector.broadcast %cst_11 : f32 to vector<8x32xf32>
    %18 = vector.extract_strided_slice %7 {offsets = [0, 0], sizes = [8, 128], strides = [1, 1]} : vector<64x128xf32> to vector<8x128xf32>
    %cst_12 = arith.constant dense<0.000000e+00> : vector<8x128xf32>
    %19 = tpu.matmul %16, %15, %cst_12 {dimension_numbers = #tpu.dot_dimension_numbers<[1], [0], [0], [1], [0, 0, 1, 1], [], []>, precision = #tpu.contract_precision<fp32>} : vector<8x32xf32>, vector<32x128xf32>, vector<8x128xf32> -> vector<8x128xf32>
    %20 = arith.addf %18, %19 : vector<8x128xf32>
    %21 = math.tanh %20 : vector<8x128xf32>
    %cst_13 = arith.constant 5.000000e-01 : f32
    %22 = vector.broadcast %cst_13 : f32 to vector<8x128xf32>
    %23 = arith.mulf %22, %21 : vector<8x128xf32>
    %cst_14 = arith.constant 5.000000e-01 : f32
    %24 = vector.broadcast %cst_14 : f32 to vector<8x128xf32>
    %25 = arith.addf %23, %24 : vector<8x128xf32>
    %26 = vector.extract_strided_slice %25 {offsets = [0, 0], sizes = [8, 32], strides = [1, 1]} : vector<8x128xf32> to vector<8x32xf32>
    %27 = vector.extract_strided_slice %25 {offsets = [0, 32], sizes = [8, 32], strides = [1, 1]} : vector<8x128xf32> to vector<8x32xf32>
    %28 = vector.extract_strided_slice %21 {offsets = [0, 64], sizes = [8, 32], strides = [1, 1]} : vector<8x128xf32> to vector<8x32xf32>
    %29 = vector.extract_strided_slice %25 {offsets = [0, 96], sizes = [8, 32], strides = [1, 1]} : vector<8x128xf32> to vector<8x32xf32>
    %30 = arith.mulf %27, %17 : vector<8x32xf32>
    %31 = arith.mulf %26, %28 : vector<8x32xf32>
    %32 = arith.addf %30, %31 : vector<8x32xf32>
    %33 = math.tanh %32 : vector<8x32xf32>
    %34 = arith.mulf %29, %33 : vector<8x32xf32>
    %c0_15 = arith.constant 0 : index
    %c0_16 = arith.constant 0 : index
    %35 = vector.load %arg10[%c0_15, %c0_16] : memref<64x32xf32, #tpu.memory_space<vmem>>, vector<8x32xf32>
    tpu.vector_store %arg10[%c0_15, %c0_16], %34 {strides = array<i32>} : memref<64x32xf32, #tpu.memory_space<vmem>>, vector<8x32xf32>,
    %36 = vector.extract_strided_slice %7 {offsets = [8, 0], sizes = [8, 128], strides = [1, 1]} : vector<64x128xf32> to vector<8x128xf32>
    %cst_17 = arith.constant dense<0.000000e+00> : vector<8x128xf32>
    %37 = tpu.matmul %34, %15, %cst_17 {dimension_numbers = #tpu.dot_dimension_numbers<[1], [0], [0], [1], [0, 0, 1, 1], [], []>, precision = #tpu.contract_precision<fp32>} : vector<8x32xf32>, vector<32x128xf32>, vector<8x128xf32> -> vector<8x128xf32>
    %38 = arith.addf %36, %37 : vector<8x128xf32>
    %39 = math.tanh %38 : vector<8x128xf32>
    %cst_18 = arith.constant 5.000000e-01 : f32
    %40 = vector.broadcast %cst_18 : f32 to vector<8x128xf32>
    %41 = arith.mulf %40, %39 : vector<8x128xf32>
    %cst_19 = arith.constant 5.000000e-01 : f32
    %42 = vector.broadcast %cst_19 : f32 to vector<8x128xf32>
    %43 = arith.addf %41, %42 : vector<8x128xf32>
    %44 = vector.extract_strided_slice %43 {offsets = [0, 0], sizes = [8, 32], strides = [1, 1]} : vector<8x128xf32> to vector<8x32xf32>
    %45 = vector.extract_strided_slice %43 {offsets = [0, 32], sizes = [8, 32], strides = [1, 1]} : vector<8x128xf32> to vector<8x32xf32>
    %46 = vector.extract_strided_slice %39 {offsets = [0, 64], sizes = [8, 32], strides = [1, 1]} : vector<8x128xf32> to vector<8x32xf32>
    %47 = vector.extract_strided_slice %43 {offsets = [0, 96], sizes = [8, 32], strides = [1, 1]} : vector<8x128xf32> to vector<8x32xf32>
    %48 = arith.mulf %45, %32 : vector<8x32xf32>
    %49 = arith.mulf %44, %46 : vector<8x32xf32>
    %50 = arith.addf %48, %49 : vector<8x32xf32>
    %51 = math.tanh %50 : vector<8x32xf32>
    %52 = arith.mulf %47, %51 : vector<8x32xf32>
    %c8 = arith.constant 8 : index
    %c0_20 = arith.constant 0 : index
    %53 = vector.load %arg10[%c8, %c0_20] : memref<64x32xf32, #tpu.memory_space<vmem>>, vector<8x32xf32>
    tpu.vector_store %arg10[%c8, %c0_20], %52 {strides = array<i32>} : memref<64x32xf32, #tpu.memory_space<vmem>>, vector<8x32xf32>,
    %54 = vector.extract_strided_slice %7 {offsets = [16, 0], sizes = [8, 128], strides = [1, 1]} : vector<64x128xf32> to vector<8x128xf32>
    %cst_21 = arith.constant dense<0.000000e+00> : vector<8x128xf32>
    %55 = tpu.matmul %52, %15, %cst_21 {dimension_numbers = #tpu.dot_dimension_numbers<[1], [0], [0], [1], [0, 0, 1, 1], [], []>, precision = #tpu.contract_precision<fp32>} : vector<8x32xf32>, vector<32x128xf32>, vector<8x128xf32> -> vector<8x128xf32>
    %56 = arith.addf %54, %55 : vector<8x128xf32>
    %57 = math.tanh %56 : vector<8x128xf32>
    %cst_22 = arith.constant 5.000000e-01 : f32
    %58 = vector.broadcast %cst_22 : f32 to vector<8x128xf32>
    %59 = arith.mulf %58, %57 : vector<8x128xf32>
    %cst_23 = arith.constant 5.000000e-01 : f32
    %60 = vector.broadcast %cst_23 : f32 to vector<8x128xf32>
    %61 = arith.addf %59, %60 : vector<8x128xf32>
    %62 = vector.extract_strided_slice %61 {offsets = [0, 0], sizes = [8, 32], strides = [1, 1]} : vector<8x128xf32> to vector<8x32xf32>
    %63 = vector.extract_strided_slice %61 {offsets = [0, 32], sizes = [8, 32], strides = [1, 1]} : vector<8x128xf32> to vector<8x32xf32>
    %64 = vector.extract_strided_slice %57 {offsets = [0, 64], sizes = [8, 32], strides = [1, 1]} : vector<8x128xf32> to vector<8x32xf32>
    %65 = vector.extract_strided_slice %61 {offsets = [0, 96], sizes = [8, 32], strides = [1, 1]} : vector<8x128xf32> to vector<8x32xf32>
    %66 = arith.mulf %63, %50 : vector<8x32xf32>
    %67 = arith.mulf %62, %64 : vector<8x32xf32>
    %68 = arith.addf %66, %67 : vector<8x32xf32>
    %69 = math.tanh %68 : vector<8x32xf32>
    %70 = arith.mulf %65, %69 : vector<8x32xf32>
    %c16 = arith.constant 16 : index
    %c0_24 = arith.constant 0 : index
    %71 = vector.load %arg10[%c16, %c0_24] : memref<64x32xf32, #tpu.memory_space<vmem>>, vector<8x32xf32>
    tpu.vector_store %arg10[%c16, %c0_24], %70 {strides = array<i32>} : memref<64x32xf32, #tpu.memory_space<vmem>>, vector<8x32xf32>,
    %72 = vector.extract_strided_slice %7 {offsets = [24, 0], sizes = [8, 128], strides = [1, 1]} : vector<64x128xf32> to vector<8x128xf32>
    %cst_25 = arith.constant dense<0.000000e+00> : vector<8x128xf32>
    %73 = tpu.matmul %70, %15, %cst_25 {dimension_numbers = #tpu.dot_dimension_numbers<[1], [0], [0], [1], [0, 0, 1, 1], [], []>, precision = #tpu.contract_precision<fp32>} : vector<8x32xf32>, vector<32x128xf32>, vector<8x128xf32> -> vector<8x128xf32>
    %74 = arith.addf %72, %73 : vector<8x128xf32>
    %75 = math.tanh %74 : vector<8x128xf32>
    %cst_26 = arith.constant 5.000000e-01 : f32
    %76 = vector.broadcast %cst_26 : f32 to vector<8x128xf32>
    %77 = arith.mulf %76, %75 : vector<8x128xf32>
    %cst_27 = arith.constant 5.000000e-01 : f32
    %78 = vector.broadcast %cst_27 : f32 to vector<8x128xf32>
    %79 = arith.addf %77, %78 : vector<8x128xf32>
    %80 = vector.extract_strided_slice %79 {offsets = [0, 0], sizes = [8, 32], strides = [1, 1]} : vector<8x128xf32> to vector<8x32xf32>
    %81 = vector.extract_strided_slice %79 {offsets = [0, 32], sizes = [8, 32], strides = [1, 1]} : vector<8x128xf32> to vector<8x32xf32>
    %82 = vector.extract_strided_slice %75 {offsets = [0, 64], sizes = [8, 32], strides = [1, 1]} : vector<8x128xf32> to vector<8x32xf32>
    %83 = vector.extract_strided_slice %79 {offsets = [0, 96], sizes = [8, 32], strides = [1, 1]} : vector<8x128xf32> to vector<8x32xf32>
    %84 = arith.mulf %81, %68 : vector<8x32xf32>
    %85 = arith.mulf %80, %82 : vector<8x32xf32>
    %86 = arith.addf %84, %85 : vector<8x32xf32>
    %87 = math.tanh %86 : vector<8x32xf32>
    %88 = arith.mulf %83, %87 : vector<8x32xf32>
    %c24 = arith.constant 24 : index
    %c0_28 = arith.constant 0 : index
    %89 = vector.load %arg10[%c24, %c0_28] : memref<64x32xf32, #tpu.memory_space<vmem>>, vector<8x32xf32>
    tpu.vector_store %arg10[%c24, %c0_28], %88 {strides = array<i32>} : memref<64x32xf32, #tpu.memory_space<vmem>>, vector<8x32xf32>,
    %90 = vector.extract_strided_slice %7 {offsets = [32, 0], sizes = [8, 128], strides = [1, 1]} : vector<64x128xf32> to vector<8x128xf32>
    %cst_29 = arith.constant dense<0.000000e+00> : vector<8x128xf32>
    %91 = tpu.matmul %88, %15, %cst_29 {dimension_numbers = #tpu.dot_dimension_numbers<[1], [0], [0], [1], [0, 0, 1, 1], [], []>, precision = #tpu.contract_precision<fp32>} : vector<8x32xf32>, vector<32x128xf32>, vector<8x128xf32> -> vector<8x128xf32>
    %92 = arith.addf %90, %91 : vector<8x128xf32>
    %93 = math.tanh %92 : vector<8x128xf32>
    %cst_30 = arith.constant 5.000000e-01 : f32
    %94 = vector.broadcast %cst_30 : f32 to vector<8x128xf32>
    %95 = arith.mulf %94, %93 : vector<8x128xf32>
    %cst_31 = arith.constant 5.000000e-01 : f32
    %96 = vector.broadcast %cst_31 : f32 to vector<8x128xf32>
    %97 = arith.addf %95, %96 : vector<8x128xf32>
    %98 = vector.extract_strided_slice %97 {offsets = [0, 0], sizes = [8, 32], strides = [1, 1]} : vector<8x128xf32> to vector<8x32xf32>
    %99 = vector.extract_strided_slice %97 {offsets = [0, 32], sizes = [8, 32], strides = [1, 1]} : vector<8x128xf32> to vector<8x32xf32>
    %100 = vector.extract_strided_slice %93 {offsets = [0, 64], sizes = [8, 32], strides = [1, 1]} : vector<8x128xf32> to vector<8x32xf32>
    %101 = vector.extract_strided_slice %97 {offsets = [0, 96], sizes = [8, 32], strides = [1, 1]} : vector<8x128xf32> to vector<8x32xf32>
    %102 = arith.mulf %99, %86 : vector<8x32xf32>
    %103 = arith.mulf %98, %100 : vector<8x32xf32>
    %104 = arith.addf %102, %103 : vector<8x32xf32>
    %105 = math.tanh %104 : vector<8x32xf32>
    %106 = arith.mulf %101, %105 : vector<8x32xf32>
    %c32 = arith.constant 32 : index
    %c0_32 = arith.constant 0 : index
    %107 = vector.load %arg10[%c32, %c0_32] : memref<64x32xf32, #tpu.memory_space<vmem>>, vector<8x32xf32>
    tpu.vector_store %arg10[%c32, %c0_32], %106 {strides = array<i32>} : memref<64x32xf32, #tpu.memory_space<vmem>>, vector<8x32xf32>,
    %108 = vector.extract_strided_slice %7 {offsets = [40, 0], sizes = [8, 128], strides = [1, 1]} : vector<64x128xf32> to vector<8x128xf32>
    %cst_33 = arith.constant dense<0.000000e+00> : vector<8x128xf32>
    %109 = tpu.matmul %106, %15, %cst_33 {dimension_numbers = #tpu.dot_dimension_numbers<[1], [0], [0], [1], [0, 0, 1, 1], [], []>, precision = #tpu.contract_precision<fp32>} : vector<8x32xf32>, vector<32x128xf32>, vector<8x128xf32> -> vector<8x128xf32>
    %110 = arith.addf %108, %109 : vector<8x128xf32>
    %111 = math.tanh %110 : vector<8x128xf32>
    %cst_34 = arith.constant 5.000000e-01 : f32
    %112 = vector.broadcast %cst_34 : f32 to vector<8x128xf32>
    %113 = arith.mulf %112, %111 : vector<8x128xf32>
    %cst_35 = arith.constant 5.000000e-01 : f32
    %114 = vector.broadcast %cst_35 : f32 to vector<8x128xf32>
    %115 = arith.addf %113, %114 : vector<8x128xf32>
    %116 = vector.extract_strided_slice %115 {offsets = [0, 0], sizes = [8, 32], strides = [1, 1]} : vector<8x128xf32> to vector<8x32xf32>
    %117 = vector.extract_strided_slice %115 {offsets = [0, 32], sizes = [8, 32], strides = [1, 1]} : vector<8x128xf32> to vector<8x32xf32>
    %118 = vector.extract_strided_slice %111 {offsets = [0, 64], sizes = [8, 32], strides = [1, 1]} : vector<8x128xf32> to vector<8x32xf32>
    %119 = vector.extract_strided_slice %115 {offsets = [0, 96], sizes = [8, 32], strides = [1, 1]} : vector<8x128xf32> to vector<8x32xf32>
    %120 = arith.mulf %117, %104 : vector<8x32xf32>
    %121 = arith.mulf %116, %118 : vector<8x32xf32>
    %122 = arith.addf %120, %121 : vector<8x32xf32>
    %123 = math.tanh %122 : vector<8x32xf32>
    %124 = arith.mulf %119, %123 : vector<8x32xf32>
    %c40 = arith.constant 40 : index
    %c0_36 = arith.constant 0 : index
    %125 = vector.load %arg10[%c40, %c0_36] : memref<64x32xf32, #tpu.memory_space<vmem>>, vector<8x32xf32>
    tpu.vector_store %arg10[%c40, %c0_36], %124 {strides = array<i32>} : memref<64x32xf32, #tpu.memory_space<vmem>>, vector<8x32xf32>,
    %126 = vector.extract_strided_slice %7 {offsets = [48, 0], sizes = [8, 128], strides = [1, 1]} : vector<64x128xf32> to vector<8x128xf32>
    %cst_37 = arith.constant dense<0.000000e+00> : vector<8x128xf32>
    %127 = tpu.matmul %124, %15, %cst_37 {dimension_numbers = #tpu.dot_dimension_numbers<[1], [0], [0], [1], [0, 0, 1, 1], [], []>, precision = #tpu.contract_precision<fp32>} : vector<8x32xf32>, vector<32x128xf32>, vector<8x128xf32> -> vector<8x128xf32>
    %128 = arith.addf %126, %127 : vector<8x128xf32>
    %129 = math.tanh %128 : vector<8x128xf32>
    %cst_38 = arith.constant 5.000000e-01 : f32
    %130 = vector.broadcast %cst_38 : f32 to vector<8x128xf32>
    %131 = arith.mulf %130, %129 : vector<8x128xf32>
    %cst_39 = arith.constant 5.000000e-01 : f32
    %132 = vector.broadcast %cst_39 : f32 to vector<8x128xf32>
    %133 = arith.addf %131, %132 : vector<8x128xf32>
    %134 = vector.extract_strided_slice %133 {offsets = [0, 0], sizes = [8, 32], strides = [1, 1]} : vector<8x128xf32> to vector<8x32xf32>
    %135 = vector.extract_strided_slice %133 {offsets = [0, 32], sizes = [8, 32], strides = [1, 1]} : vector<8x128xf32> to vector<8x32xf32>
    %136 = vector.extract_strided_slice %129 {offsets = [0, 64], sizes = [8, 32], strides = [1, 1]} : vector<8x128xf32> to vector<8x32xf32>
    %137 = vector.extract_strided_slice %133 {offsets = [0, 96], sizes = [8, 32], strides = [1, 1]} : vector<8x128xf32> to vector<8x32xf32>
    %138 = arith.mulf %135, %122 : vector<8x32xf32>
    %139 = arith.mulf %134, %136 : vector<8x32xf32>
    %140 = arith.addf %138, %139 : vector<8x32xf32>
    %141 = math.tanh %140 : vector<8x32xf32>
    %142 = arith.mulf %137, %141 : vector<8x32xf32>
    %c48 = arith.constant 48 : index
    %c0_40 = arith.constant 0 : index
    %143 = vector.load %arg10[%c48, %c0_40] : memref<64x32xf32, #tpu.memory_space<vmem>>, vector<8x32xf32>
    tpu.vector_store %arg10[%c48, %c0_40], %142 {strides = array<i32>} : memref<64x32xf32, #tpu.memory_space<vmem>>, vector<8x32xf32>,
    %144 = vector.extract_strided_slice %7 {offsets = [56, 0], sizes = [8, 128], strides = [1, 1]} : vector<64x128xf32> to vector<8x128xf32>
    %cst_41 = arith.constant dense<0.000000e+00> : vector<8x128xf32>
    %145 = tpu.matmul %142, %15, %cst_41 {dimension_numbers = #tpu.dot_dimension_numbers<[1], [0], [0], [1], [0, 0, 1, 1], [], []>, precision = #tpu.contract_precision<fp32>} : vector<8x32xf32>, vector<32x128xf32>, vector<8x128xf32> -> vector<8x128xf32>
    %146 = arith.addf %144, %145 : vector<8x128xf32>
    %147 = math.tanh %146 : vector<8x128xf32>
    %cst_42 = arith.constant 5.000000e-01 : f32
    %148 = vector.broadcast %cst_42 : f32 to vector<8x128xf32>
    %149 = arith.mulf %148, %147 : vector<8x128xf32>
    %cst_43 = arith.constant 5.000000e-01 : f32
    %150 = vector.broadcast %cst_43 : f32 to vector<8x128xf32>
    %151 = arith.addf %149, %150 : vector<8x128xf32>
    %152 = vector.extract_strided_slice %151 {offsets = [0, 0], sizes = [8, 32], strides = [1, 1]} : vector<8x128xf32> to vector<8x32xf32>
    %153 = vector.extract_strided_slice %151 {offsets = [0, 32], sizes = [8, 32], strides = [1, 1]} : vector<8x128xf32> to vector<8x32xf32>
    %154 = vector.extract_strided_slice %147 {offsets = [0, 64], sizes = [8, 32], strides = [1, 1]} : vector<8x128xf32> to vector<8x32xf32>
    %155 = vector.extract_strided_slice %151 {offsets = [0, 96], sizes = [8, 32], strides = [1, 1]} : vector<8x128xf32> to vector<8x32xf32>
    %156 = arith.mulf %153, %140 : vector<8x32xf32>
    %157 = arith.mulf %152, %154 : vector<8x32xf32>
    %158 = arith.addf %156, %157 : vector<8x32xf32>
    %159 = math.tanh %158 : vector<8x32xf32>
    %160 = arith.mulf %155, %159 : vector<8x32xf32>
    %c56 = arith.constant 56 : index
    %c0_44 = arith.constant 0 : index
    %161 = vector.load %arg10[%c56, %c0_44] : memref<64x32xf32, #tpu.memory_space<vmem>>, vector<8x32xf32>
    tpu.vector_store %arg10[%c56, %c0_44], %160 {strides = array<i32>} : memref<64x32xf32, #tpu.memory_space<vmem>>, vector<8x32xf32>,
    %c0_45 = arith.constant 0 : index
    %c0_46 = arith.constant 0 : index
    %162 = vector.load %arg10[%c0_45, %c0_46] : memref<64x32xf32, #tpu.memory_space<vmem>>, vector<64x32xf32>
    %c0_47 = arith.constant 0 : index
    %c0_48 = arith.constant 0 : index
    %163 = vector.load %arg5[%c0_47, %c0_48] : memref<32x32xf32, #tpu.memory_space<vmem>>, vector<32x32xf32>
    %cst_49 = arith.constant dense<0.000000e+00> : vector<64x32xf32>
    %164 = tpu.matmul %162, %163, %cst_49 {dimension_numbers = #tpu.dot_dimension_numbers<[1], [0], [0], [1], [0, 0, 1, 1], [], []>, precision = #tpu.contract_precision<fp32>} : vector<64x32xf32>, vector<32x32xf32>, vector<64x32xf32> -> vector<64x32xf32>
    %165 = arith.addf %164, %14 : vector<64x32xf32>
    %c0_50 = arith.constant 0 : index
    %c0_51 = arith.constant 0 : index
    %166 = vector.load %arg6[%c0_50, %c0_51] : memref<1x32xf32, #tpu.memory_space<vmem>>, vector<1x32xf32>
    %167 = vector.broadcast %166 : vector<1x32xf32> to vector<64x32xf32>
    %168 = arith.addf %165, %167 : vector<64x32xf32>
    %cst_52 = arith.constant 0.000000e+00 : f32
    %169 = vector.broadcast %cst_52 : f32 to vector<64x32xf32>
    %170 = arith.maximumf %168, %169 : vector<64x32xf32>
    %c0_53 = arith.constant 0 : index
    %c0_54 = arith.constant 0 : index
    %171 = vector.load %arg7[%c0_53, %c0_54] : memref<1x32xf32, #tpu.memory_space<vmem>>, vector<1x32xf32>
    %172 = vector.broadcast %171 : vector<1x32xf32> to vector<64x32xf32>
    %173 = arith.mulf %170, %172 : vector<64x32xf32>
    %cst_55 = arith.constant dense<0.000000e+00> : vector<64xf32>
    %174 = vector.multi_reduction <add>, %173, %cst_55 [1] : vector<64x32xf32> to vector<64xf32>
    %175 = vector.shape_cast %174 : vector<64xf32> to vector<64x1xf32>
    %c0_56 = arith.constant 0 : index
    %c0_57 = arith.constant 0 : index
    %176 = memref.load %arg8[%c0_56, %c0_57] : memref<1x1xf32, #tpu.memory_space<smem>>
    %177 = vector.broadcast %176 : f32 to vector<64x1xf32>
    %178 = arith.addf %175, %177 : vector<64x1xf32>
    %179 = arith.negf %178 : vector<64x1xf32>
    %180 = math.exp %179 : vector<64x1xf32>
    %cst_58 = arith.constant 1.000000e+00 : f32
    %181 = vector.broadcast %cst_58 : f32 to vector<64x1xf32>
    %182 = arith.addf %181, %180 : vector<64x1xf32>
    %183 = arith.divf %181, %182 : vector<64x1xf32>
    %c0_59 = arith.constant 0 : index
    %c0_60 = arith.constant 0 : index
    %184 = vector.load %arg9[%c0_59, %c0_60] : memref<64x1xf32, #tpu.memory_space<vmem>>, vector<64x1xf32>
    tpu.vector_store %arg9[%c0_59, %c0_60], %183 {strides = array<i32>} : memref<64x1xf32, #tpu.memory_space<vmem>>, vector<64x1xf32>,
    return
  }
}

</mosaic_0001>

<bundles_post_ra>
// kernel: kt_model_forward.1
= control target key start
LH: loop header
LB: loop body
LE: loop exit
PB: predicated region body
PF: predicated region fallthrough
CT: control target
= control target key end

     0   :  { %v9050_v0 = vmov 0   ;;  %s9055_s20 = smov 32   ;;  %s11330_s0 = inlined_call_operand.vmem [shape: s32[64,1], index: 0, kind: input, shape index: {}]   ;;  %s11331_s2 = inlined_call_operand.vmem [shape: f32[128,128], index: 2, kind: input, shape index: {}]   ;;  %s11332_s1 = inlined_call_operand.vmem [shape: s32[64,1], index: 1, kind: input, shape index: {}]   ;;  %s11333_s3 = inlined_call_operand.vmem [shape: f32[128,32], index: 3, kind: input, shape index: {}]   ;;  %s11334_s4 = inlined_call_operand.vmem [shape: f32[32,128], index: 4, kind: input, shape index: {}]   ;;  %s11335_s5 = inlined_call_operand.vmem [shape: f32[32,32], index: 5, kind: input, shape index: {}]   ;;  %s11336_s6 = inlined_call_operand.vmem [shape: f32[1,32], index: 6, kind: input, shape index: {}]   ;;  %s11337_s7 = inlined_call_operand.vmem [shape: f32[1,32], index: 7, kind: input, shape index: {}]   ;;  %s11338_s8 = inlined_call_operand.<no memory space> [shape: f32[1,1], index: 8, kind: input, shape index: {}]   ;;  %s11339_s9 = inlined_call_operand.vmem [shape: f32[64,1], index: 9, kind: output, shape index: {}]  }
   0x1   :  { %8985 = vset.pattern.permute.xlu1 %v9050_v0  ;;  %8984 = vset.pattern.permute.xlu0 %v9050_v0  ;;  %v37_v1 = vld [vmem:[%s11330_s0 + $0x10] sm:$0xff]  ;;  %v35_v2 = vld [vmem:[%s11330_s0] sm:$0xff]  ;;  %v38_v3 = vld [vmem:[%s11330_s0 + $0x18] sm:$0xff] }
   0x2   :  { %50 = vperm.xlu1 %8985, %v37_v1   ;;  %44 = vperm.xlu0 %8984, %v35_v2   ;;  %v36_v4 = vld [vmem:[%s11330_s0 + $0x8] sm:$0xff]  ;;  %v39_v6 = vld [vmem:[%s11330_s0 + $0x20] sm:$0xff]  ;;  %v106_v7 = vld [vmem:[%s11331_s2 + $0x78] sm:$0xff] }
   0x3   :  { %v40_v5 = vld [vmem:[%s11330_s0 + $0x28] sm:$0xff]  ;;  %v105_v8 = vld [vmem:[%s11331_s2 + $0x70] sm:$0xff]  ;;  %v9130_v9 = vand.u32 4294901760, %v106_v7  ;;  %v103_v12 = vld [vmem:[%s11331_s2 + $0x60] sm:$0xff] }
   0x4   :  { %v9132_v10 = vand.u32 4294901760, %v105_v8  ;;  %v104_v11 = vld [vmem:[%s11331_s2 + $0x68] sm:$0xff]  ;;  %v102_v13 = vld [vmem:[%s11331_s2 + $0x58] sm:$0xff]  ;;  %v9145_v15 = vand.u32 4294901760, %v103_v12  ;;  %v101_v17 = vld [vmem:[%s11331_s2 + $0x50] sm:$0xff] }
   0x5   :  { %v9143_v14 = vand.u32 4294901760, %v104_v11  ;;  %v9147_v16 = vand.u32 4294901760, %v102_v13  ;;  %v9153_v18 = vsub.f32 %v106_v7, %v9130_v9  ;;  %7802 = vmatprep.subr.mxu0 %v9130_v9  ;;  %v100_v20 = vld [vmem:[%s11331_s2 + $0x48] sm:$0xff]  ;;  %v42_v23 = vld [vmem:[%s11330_s0 + $0x38] sm:$0xff]  ;;  %v41_v24 = vld [vmem:[%s11330_s0 + $0x30] sm:$0xff]  ;;  %v9181_v27 = vand.u32 4294901760, %v101_v17 }
   0x6   :  { %53 = vperm.xlu1 %8985, %v38_v3   ;;  %47 = vperm.xlu0 %8984, %v36_v4   ;;  %v9156_v19 = vsub.f32 %v105_v8, %v9132_v10  ;;  %v9166_v22 = vsub.f32 %v103_v12, %v9145_v15  ;;  %v99_v28 = vld [vmem:[%s11331_s2 + $0x40] sm:$0xff]  ;;  %v9193_v31 = vand.u32 4294901760, %v100_v20  ;;  %v98_v36 = vld [vmem:[%s11331_s2 + $0x38] sm:$0xff]  ;;  %v1050_v37 = vld [vmem:[%s11332_s1 + $0x8] sm:$0xff] }
   0x7   :  { %v9163_v21 = vsub.f32 %v104_v11, %v9143_v14  ;;  %v9175_v25 = vand.u32 4294901760, %v9153_v18  ;;  %7803 = vmatpush3.msra.mxu0 %v9130_v9  ;;  %v9190_v30 = vsub.f32 %v102_v13, %v9147_v16  ;;  %v9203_v35 = vand.u32 4294901760, %v99_v28  ;;  %v1049_v38 = vld [vmem:[%s11332_s1] sm:$0xff]  ;;  %v97_v45 = vld [vmem:[%s11331_s2 + $0x30] sm:$0xff]  ;;  %v96_v49 = vld [vmem:[%s11331_s2 + $0x28] sm:$0xff] }
   0x8   :  { %v9178_v26 = vand.u32 4294901760, %v9156_v19  ;;  %7804 = vmatprep.subr.mxu0 %v9132_v10  ;;  %v9200_v34 = vand.u32 4294901760, %v9166_v22  ;;  %v9217_v41 = vsub.f32 %v101_v17, %v9181_v27  ;;  %v9224_v44 = vsub.f32 %v100_v20, %v9193_v31  ;;  %v1052_v50 = vld [vmem:[%s11332_s1 + $0x18] sm:$0xff]  ;;  %v1051_v51 = vld [vmem:[%s11332_s1 + $0x10] sm:$0xff]  ;;  %v95_v57 = vld [vmem:[%s11331_s2 + $0x20] sm:$0xff] }
   0x9   :  { %v9187_v29 = vand.u32 4294901760, %v9163_v21  ;;  %v272_v32 = vsub.f32 %v9153_v18, %v9175_v25  ;;  %7805 = vmatpush3.msra.mxu0 %v9132_v10  ;;  %v9221_v43 = vand.u32 4294901760, %v9190_v30  ;;  %v9233_v47 = vand.u32 4294901760, %v98_v36  ;;  %v94_v62 = vld [vmem:[%s11331_s2 + $0x18] sm:$0xff]  ;;  %v1054_v63 = vld [vmem:[%s11332_s1 + $0x28] sm:$0xff]  ;;  %v1053_v0 = vld [vmem:[%s11332_s1 + $0x20] sm:$0xff] }
   0xa   :  { %59 = vperm.xlu1 %8985, %v40_v5   ;;  %56 = vperm.xlu0 %8984, %v39_v6   ;;  %v279_v33 = vsub.f32 %v9156_v19, %v9178_v26  ;;  %v293_v46 = vsub.f32 %v9166_v22, %v9200_v34  ;;  %v9236_v48 = vsub.f32 %v99_v28, %v9203_v35  ;;  %v9248_v53 = vand.u32 4294901760, %v9217_v41  ;;  %v93_v6 = vld [vmem:[%s11331_s2 + $0x10] sm:$0xff]  ;;  %v92_v13 = vld [vmem:[%s11331_s2 + $0x8] sm:$0xff]  ;;  %v1056_v17 = vld [vmem:[%s11332_s1 + $0x38] sm:$0xff] }
   0xb   :  { %v273_v39 = vand.u32 4294901760, %v272_v32  ;;  %v286_v40 = vsub.f32 %v9163_v21, %v9187_v29  ;;  %7806 = vmatprep.subr.mxu0 %v9143_v14  ;;  %v9251_v54 = vand.u32 4294901760, %v97_v45  ;;  %v300_v55 = vsub.f32 %v9190_v30, %v9221_v43  ;;  %v1055_v20 = vld [vmem:[%s11332_s1 + $0x30] sm:$0xff] }
   0xc   :  { %v280_v42 = vand.u32 4294901760, %v279_v33  ;;  %7807 = vmatpush3.msra.mxu0 %v9143_v14  ;;  %v9256_v56 = vand.u32 4294901760, %v9224_v44  ;;  %v294_v58 = vand.u32 4294901760, %v293_v46  ;;  %v9263_v59 = vsub.f32 %v98_v36, %v9233_v47  ;;  %v91_v36 = vld [vmem:[%s11331_s2] sm:$0xff] }
   0xd   :  { %7846 = vmatprep.subr.mxu1 %v273_v39  ;;  %7808 = vmatprep.subr.mxu0 %v9145_v15  ;;  %v287_v52 = vand.u32 4294901760, %v286_v40  ;;  %v9266_v60 = vand.u32 4294901760, %v96_v49  ;;  %v9269_v61 = vand.u32 4294901760, %v9236_v48  ;;  %v307_v1 = vsub.f32 %v9217_v41, %v9248_v53 }
   0xe   :  { %65 = vperm.xlu1 %8985, %v42_v23   ;;  %62 = vperm.xlu0 %8984, %v41_v24   ;;  %v9283_v2 = vsub.f32 %v97_v45, %v9251_v54  ;;  %v9286_v3 = vand.u32 4294901760, %v95_v57  ;;  %v301_v4 = vand.u32 4294901760, %v300_v55  ;;  %v314_v5 = vsub.f32 %v9224_v44, %v9256_v56 }
   0xf   :  { %7847 = vmatpush3.msra.mxu1 %v273_v39  ;;  %7809 = vmatpush3.msra.mxu0 %v9145_v15  ;;  %v9295_v7 = vand.u32 4294901760, %v9263_v59  ;;  %v9298_v8 = vsub.f32 %v96_v49, %v9266_v60  ;;  %v9301_v11 = vand.u32 4294901760, %v94_v62  ;;  %v321_v12 = vsub.f32 %v9236_v48, %v9269_v61 }
  0x10   :  { %7848 = vmatprep.subr.mxu1 %v280_v42  ;;  %7810 = vmatprep.subr.mxu0 %v9147_v16  ;;  %v308_v23 = vand.u32 4294901760, %v307_v1  ;;  %v9315_v24 = vand.u32 4294901760, %v9283_v2  ;;  %v9319_v28 = vsub.f32 %v95_v57, %v9286_v3  ;;  %v9321_v32 = vand.u32 4294901760, %v93_v6 }
  0x11   :  { %7849 = vmatpush3.msra.mxu1 %v280_v42  ;;  %7811 = vmatpush3.msra.mxu0 %v9147_v16  ;;  %v315_v33 = vand.u32 4294901760, %v314_v5  ;;  %v9334_v39 = vsub.f32 %v94_v62, %v9301_v11  ;;  %v9336_v40 = vand.u32 4294901760, %v92_v13  ;;  %v322_v42 = vand.u32 4294901760, %v321_v12 }
  0x12   :  { %1061 = vperm.xlu1 %8985, %v1050_v37   ;;  %1058 = vperm.xlu0 %8984, %v1049_v38   ;;  %11395 = vst [vmem:[#allocation4_spill] sm:$0xff] %v9315_v24  ;;  %v328_v37 = vsub.f32 %v9263_v59, %v9295_v7  ;;  %v9330_v38 = vand.u32 4294901760, %v9298_v8  ;;  %v335_v45 = vsub.f32 %v9283_v2, %v9315_v24  ;;  %v9341_v46 = vand.u32 4294901760, %v9319_v28 }
  0x13   :  { %7850 = vmatprep.subr.mxu1 %v287_v52  ;;  %7812 = vmatprep.subr.mxu0 %v9181_v27  ;;  %v9345_v49 = vsub.f32 %v93_v6, %v9321_v32  ;;  %v9353_v55 = vand.u32 4294901760, %v9334_v39  ;;  %v9357_v57 = vsub.f32 %v92_v13, %v9336_v40 }
  0x14   :  { %7851 = vmatpush3.msra.mxu1 %v287_v52  ;;  %7813 = vmatpush3.msra.mxu0 %v9181_v27  ;;  %11396 = vst [vmem:[#allocation5_spill] sm:$0xff] %v9330_v38  ;;  %11397 = vst [vmem:[#allocation6_spill] sm:$0xff] %v9341_v46  ;;  %v342_v52 = vsub.f32 %v9298_v8, %v9330_v38  ;;  %v349_v62 = vsub.f32 %v9319_v28, %v9341_v46 }
  0x15   :  { %7852 = vmatprep.subr.mxu1 %v294_v58  ;;  %7814 = vmatprep.subr.mxu0 %v9193_v31  ;;  %11398 = vst [vmem:[#allocation7_spill] sm:$0xff] %v9353_v55  ;;  %v9373_v5 = vand.u32 4294901760, %v9357_v57 }
  0x16   :  { %1067 = vperm.xlu1 %8985, %v1052_v50   ;;  %1064 = vperm.xlu0 %8984, %v1051_v51   ;;  %v9347_v50 = vand.u32 4294901760, %v91_v36  ;;  %v329_v51 = vand.u32 4294901760, %v328_v37  ;;  %v343_v1 = vand.u32 4294901760, %v342_v52  ;;  %v350_v6 = vand.u32 4294901760, %v349_v62 }
  0x17   :  { %7853 = vmatpush3.msra.mxu1 %v294_v58  ;;  %7815 = vmatpush3.msra.mxu0 %v9193_v31  ;;  %v336_v58 = vand.u32 4294901760, %v335_v45  ;;  %11400 = vst [vmem:[#allocation9_spill] sm:$0xff] %v9373_v5 }
  0x18   :  { %7854 = vmatprep.subr.mxu1 %v301_v4  ;;  %7816 = vmatprep.subr.mxu0 %v9203_v35 }
  0x19   :  { %7855 = vmatpush3.msra.mxu1 %v301_v4  ;;  %7817 = vmatpush3.msra.mxu0 %v9203_v35  ;;  %v356_v4 = vsub.f32 %v9334_v39, %v9353_v55 }
  0x1a   :  { %1073 = vperm.xlu1 %8985, %v1054_v63   ;;  %1070 = vperm.xlu0 %8984, %v1053_v0   ;;  %v9363_v63 = vand.u32 4294901760, %v9345_v49  ;;  %v9367_v0 = vsub.f32 %v91_v36, %v9347_v50 }
  0x1b   :  { %7856 = vmatprep.subr.mxu1 %v308_v23  ;;  %7818 = vmatprep.subr.mxu0 %v9233_v47 }
  0x1c   :  { %7857 = vmatpush3.msra.mxu1 %v308_v23  ;;  %7819 = vmatpush3.msra.mxu0 %v9233_v47  ;;  %11399 = vst [vmem:[#allocation8_spill] sm:$0xff] %v9363_v63  ;;  %v363_v12 = vsub.f32 %v9345_v49, %v9363_v63  ;;  %v9380_v13 = vand.u32 4294901760, %v9367_v0 }
  0x1d   :  { %7858 = vmatprep.subr.mxu1 %v315_v33  ;;  %7820 = vmatprep.subr.mxu0 %v9251_v54 }
  0x1e   :  { %1079 = vperm.xlu1 %8985, %v1056_v17   ;;  %1076 = vperm.xlu0 %8984, %v1055_v20   ;;  %11401 = vst [vmem:[#allocation10_spill] sm:$0xff] %v9380_v13  ;;  %v357_v17 = vand.u32 4294901760, %v356_v4  ;;  %v370_v20 = vsub.f32 %v9357_v57, %v9373_v5  ;;  %v364_v23 = vand.u32 4294901760, %v363_v12  ;;  %v11342_v4 = vmov 1.0  }
  0x1f   :  { %7859 = vmatpush3.msra.mxu1 %v315_v33  ;;  %7821 = vmatpush3.msra.mxu0 %v9251_v54  ;;  %v377_v33 = vsub.f32 %v9367_v0, %v9380_v13  ;;  %v11407_v5 = vmov 1.0  }
  0x20   :  { %7860 = vmatprep.subr.mxu1 %v322_v42  ;;  %7822 = vmatprep.subr.mxu0 %v9266_v60  ;;  %v371_v36 = vand.u32 4294901760, %v370_v20 }
  0x21   :  { %7861 = vmatpush3.msra.mxu1 %v322_v42  ;;  %7823 = vmatpush3.msra.mxu0 %v9266_v60  ;;  %v378_v37 = vand.u32 4294901760, %v377_v33  ;;  %v33_v42 = vlaneseq }
  0x22   :  { %7862 = vmatprep.subr.mxu1 %v329_v51  ;;  %7824 = vmatprep.subr.mxu0 %v9286_v3 }
  0x23   :  { %7863 = vmatpush3.msra.mxu1 %v329_v51  ;;  %7825 = vmatpush3.msra.mxu0 %v9286_v3  ;;  %v9396_v45 = vand.u32 127, %v33_v42 }
  0x24   :  { %7864 = vmatprep.subr.mxu1 %v336_v58  ;;  %7826 = vmatprep.subr.mxu0 %v9301_v11 }
  0x25   :  { %7865 = vmatpush3.msra.mxu1 %v336_v58  ;;  %7827 = vmatpush3.msra.mxu0 %v9301_v11  ;;  %v11340_v58 = vmov 0.0  }
  0x26   :  { %7866 = vmatprep.subr.mxu1 %v343_v1  ;;  %7828 = vmatprep.subr.mxu0 %v9321_v32 }
  0x27   :  { %7867 = vmatpush3.msra.mxu1 %v343_v1  ;;  %7829 = vmatpush3.msra.mxu0 %v9321_v32 }
  0x28   :  { %7868 = vmatprep.subr.mxu1 %v350_v6  ;;  %7830 = vmatprep.subr.mxu0 %v9336_v40 }
  0x29   :  { %7869 = vmatpush3.msra.mxu1 %v350_v6  ;;  %7831 = vmatpush3.msra.mxu0 %v9336_v40 }
  0x2a   :  { %7870 = vmatprep.subr.mxu1 %v357_v17  ;;  %7832 = vmatprep.subr.mxu0 %v9347_v50 }
  0x2b   :  { %7871 = vmatpush3.msra.mxu1 %v357_v17  ;;  %7833 = vmatpush3.msra.mxu0 %v9347_v50 }
  0x2c   :  { %7872 = vmatprep.subr.mxu1 %v364_v23  ;;  %7890 = vmatprep.subr.mxu0 %v9153_v18 }
  0x2d   :  { %7873 = vmatpush3.msra.mxu1 %v364_v23 }
  0x2e   :  { %7874 = vmatprep.subr.mxu1 %v371_v36 }
  0x2f   :  { %7875 = vmatpush3.msra.mxu1 %v371_v36 }
  0x30   :  { %7876 = vmatprep.subr.mxu1 %v378_v37 }
  0x31   :  { %7877 = vmatpush3.msra.mxu1 %v378_v37 }
  0x32   :  { %7934 = vmatprep.subr.mxu1 %v9130_v9 }
  0x7d   :  { %v9398_v51 = vpop.permute.xlu1 %50  ;;  %v9400_v52 = vpop.permute.xlu0 %44 }
  0x7e   :  { %11402 = vst [vmem:[#allocation11_spill] sm:$0xff] %v9398_v51  ;;  %vm69_vm0 = vcmp.eq.s32.totalorder %v9396_v45, %v9398_v51  ;;  %vm67_vm1 = vcmp.eq.s32.totalorder %v9396_v45, %v9400_v52 }
  0x7f   :  { %v7130_v62 = vsel %vm69_vm0, 1.0, %v11340_v58  ;;  %v7128_v1 = vsel %vm67_vm1, 1.0, %v11340_v58  ;;  %7878 = vmatprep.mubr.msk.f32.mxu1 %vm67_vm1, %v11342_v4 }
  0x80   :  { %v9418_v6 = vsub.f32 %v7130_v62, %v7130_v62  ;;  %v9420_v12 = vsub.f32 %v7128_v1, %v7128_v1 }
  0x81   :  { %v9422_v17 = vpop.permute.xlu1 %53  ;;  %v9424_v20 = vpop.permute.xlu0 %47 }
  0x82   :  { %11403 = vst [vmem:[#allocation12_spill] sm:$0xff] %v9422_v17  ;;  %11404 = vst [vmem:[#allocation13_spill] sm:$0xff] %v9424_v20  ;;  %vm70_vm2 = vcmp.eq.s32.totalorder %v9396_v45, %v9422_v17  ;;  %vm68_vm3 = vcmp.eq.s32.totalorder %v9396_v45, %v9424_v20  ;;  %v11344_v23 = vand.u32 4294901760, %v9420_v12 }
  0x83   :  { %v7131_v33 = vsel %vm70_vm2, 1.0, %v11340_v58  ;;  %v7129_v36 = vsel %vm68_vm3, 1.0, %v11340_v58  ;;  %7879 = vmatmul.mubr.msk.f32.vlgmr.msra.gmra.mxu1 %vm68_vm3, %v11342_v4 }
  0x84   :  { %v9444_v42 = vsub.f32 %v7131_v33, %v7131_v33  ;;  %v9446_v62 = vsub.f32 %v7129_v36, %v7129_v36  ;;  %7935 = vmatpush3.msra.mxu1 %v9130_v9  ;;  %7881 = vmatprep.mubr.msk.f32.mxu1 %vm69_vm0, %v11342_v4  ;;  %v191_v1 = vsub.f32 %v9420_v12, %v11344_v23  ;;  %v11406_v4 = vmov 0.0  }
  0x85   :  { %7936 = vmatprep.subr.mxu1 %v9132_v10  ;;  %v9457_v58 = vpop.permute.xlu1 %59  ;;  %v9459_v37 = vpop.permute.xlu0 %56 }
  0x86   :  { %11405 = vst [vmem:[#allocation14_spill] sm:$0xff] %v9459_v37  ;;  %vm72_vm4 = vcmp.eq.s32.totalorder %v9396_v45, %v9457_v58  ;;  %7937 = vmatpush3.msra.mxu1 %v9132_v10  ;;  %vm71_vm5 = vcmp.eq.s32.totalorder %v9396_v45, %v9459_v37  ;;  %v192_v33 = vand.u32 4294901760, %v191_v1  ;;  %v11408_v1 = vand.u32 4294901760, %v9418_v6 }
  0x87   :  { %v7133_v23 = vsel %vm72_vm4, 1.0, %v11406_v4  ;;  %v7132_v13 = vsel %vm71_vm5, 1.0, %v11406_v4  ;;  %7938 = vmatprep.subr.mxu1 %v9143_v14  ;;  %7882 = vmatmul.mubr.msk.f32.gmra.mxu1 %vm70_vm2, %v11407_v5  ;;  %v11361_v63 = vand.u32 4294901760, %v9444_v42  ;;  %v11409_v20 = vand.u32 4294901760, %v9446_v62 }
  0x88   :  { %v211_v36 = vsub.f32 %v9418_v6, %v11408_v1  ;;  %v9484_v51 = vsub.f32 %v7133_v23, %v7133_v23  ;;  %v9486_v55 = vsub.f32 %v7132_v13, %v7132_v13  ;;  %7939 = vmatpush3.msra.mxu1 %v9143_v14  ;;  %7834 = vmatprep.mubr.f32.mxu0 %v192_v33 }
  0x89   :  { %v201_v46 = vsub.f32 %v9446_v62, %v11409_v20  ;;  %7884 = vmatprep.mubr.msk.f32.mxu1 %vm71_vm5, %v11407_v5  ;;  %7940 = vmatprep.subr.mxu1 %v9145_v15  ;;  %v9497_v1 = vpop.permute.xlu1 %65  ;;  %v9499_v23 = vpop.permute.xlu0 %62  ;;  %v221_v13 = vsub.f32 %v9444_v42, %v11361_v63 }
  0x8a   :  { %vm74_vm6 = vcmp.eq.s32.totalorder %v9396_v45, %v9497_v1  ;;  %7941 = vmatpush3.msra.mxu1 %v9145_v15  ;;  %vm73_vm7 = vcmp.eq.s32.totalorder %v9396_v45, %v9499_v23  ;;  %v212_v33 = vand.u32 4294901760, %v211_v36  ;;  %v11410_v17 = vand.u32 4294901760, %v9486_v55 }
  0x8b   :  { %v202_v20 = vand.u32 4294901760, %v201_v46  ;;  %v7135_v37 = vsel %vm74_vm6, 1.0, %v11406_v4  ;;  %v7134_v63 = vsel %vm73_vm7, 1.0, %v11406_v4  ;;  %7942 = vmatprep.subr.mxu1 %v9147_v16  ;;  %7885 = vmatmul.mubr.msk.f32.gmra.mxu1 %vm72_vm4, %v11407_v5  ;;  %v240_v24 = vand.u32 4294901760, %v9484_v51 }
  0x8c   :  { %v9523_v46 = vsub.f32 %v7134_v63, %v7134_v63  ;;  %7943 = vmatpush3.msra.mxu1 %v9147_v16  ;;  %v231_v38 = vsub.f32 %v9486_v55, %v11410_v17  ;;  %v9530_v4 = vsub.f32 %v7135_v37, %v7135_v37  ;;  %7887 = vmatprep.mubr.msk.f32.mxu1 %vm73_vm7, %v11407_v5  ;;  %v222_v63 = vand.u32 4294901760, %v221_v13 }
  0x8d   :  { %7835 = vmatmul.mubr.f32.vlgmr.msra.gmra.mxu0 %v202_v20  ;;  %7944 = vmatprep.subr.mxu1 %v9181_v27  ;;  %v241_v37 = vsub.f32 %v9484_v51, %v240_v24 }
  0x8e   :  { %7891 = vmatpush3.msra.mxu0 %v9153_v18  ;;  %v250_v36 = vand.u32 4294901760, %v9523_v46  ;;  %7945 = vmatpush3.msra.mxu1 %v9181_v27  ;;  %v232_v17 = vand.u32 4294901760, %v231_v38  ;;  %v11411_v38 = vand.u32 4294901760, %v9420_v12 }
  0x8f   :  { %7892 = vmatprep.subr.mxu0 %v9156_v19  ;;  %7946 = vmatprep.subr.mxu1 %v9193_v31  ;;  %v242_v13 = vand.u32 4294901760, %v241_v37 }
  0x90   :  { %7893 = vmatpush3.msra.mxu0 %v9156_v19  ;;  %7837 = vmatprep.mubr.f32.mxu0 %v212_v33  ;;  %v251_v18 = vsub.f32 %v9523_v46, %v250_v36  ;;  %v260_v19 = vand.u32 4294901760, %v9530_v4 }
  0x91   :  { %7888 = vmatmul.mubr.msk.f32.gmra.mxu1 %vm74_vm6, %v11407_v5  ;;  %7894 = vmatprep.subr.mxu0 %v9163_v21 }
  0x92   :  { %7947 = vmatpush3.msra.mxu1 %v9193_v31  ;;  %7838 = vmatmul.mubr.f32.gmra.mxu0 %v222_v63  ;;  %v252_v20 = vand.u32 4294901760, %v251_v18  ;;  %v261_v33 = vsub.f32 %v9530_v4, %v260_v19  ;;  %v1111_v63 = vld [vmem:[%s11333_s3 + $0x30] sm:$0xff] }
  0x93   :  { %7895 = vmatpush3.msra.mxu0 %v9163_v21  ;;  %7948 = vmatprep.subr.mxu1 %v9203_v35 }
  0x94   :  { %7966 = vmatprep.mubr.f32.mxu1 %v11411_v38  ;;  %7840 = vmatprep.mubr.f32.mxu0 %v232_v17  ;;  %v262_v21 = vand.u32 4294901760, %v261_v33  ;;  %v11422_v17 = vld [vmem:[#allocation8_spill] sm:$0xff]  ;;  %v11424_v33 = vld [vmem:[#allocation9_spill] sm:$0xff] }
  0x95   :  { %7896 = vmatprep.subr.mxu0 %v9166_v22  ;;  %7949 = vmatpush3.msra.mxu1 %v9203_v35 }
  0x96   :  { %7897 = vmatpush3.msra.mxu0 %v9166_v22  ;;  %7950 = vmatprep.subr.mxu1 %v9233_v47  ;;  %v11412_v22 = vand.u32 4294901760, %v9446_v62 }
  0x97   :  { %7898 = vmatprep.subr.mxu0 %v9190_v30  ;;  %7951 = vmatpush3.msra.mxu1 %v9233_v47 }
  0x98   :  { %7841 = vmatmul.mubr.f32.gmra.mxu0 %v242_v13  ;;  %7952 = vmatprep.subr.mxu1 %v9251_v54 }
  0x99   :  { %7899 = vmatpush3.msra.mxu0 %v9190_v30  ;;  %7843 = vmatprep.mubr.f32.mxu0 %v252_v20  ;;  %v11413_v30 = vand.u32 4294901760, %v9418_v6  ;;  %v9814_v20 = vand.u32 4294901760, %v1111_v63 }
  0x9a   :  { %7900 = vmatprep.subr.mxu0 %v9217_v41  ;;  %7953 = vmatpush3.msra.mxu1 %v9251_v54 }
  0x9b   :  { %7901 = vmatpush3.msra.mxu0 %v9217_v41  ;;  %7954 = vmatprep.subr.mxu1 %v9266_v60  ;;  %v11414_v41 = vand.u32 4294901760, %v9444_v42 }
  0x9c   :  { %7902 = vmatprep.subr.mxu0 %v9224_v44  ;;  %7955 = vmatpush3.msra.mxu1 %v9266_v60 }
  0x9d   :  { %7844 = vmatmul.mubr.f32.gmra.mxu0 %v262_v21  ;;  %7956 = vmatprep.subr.mxu1 %v9286_v3 }
  0x9e   :  { %7903 = vmatpush3.msra.mxu0 %v9224_v44  ;;  %7922 = vmatprep.mubr.f32.mxu0 %v9420_v12  ;;  %v11415_v44 = vand.u32 4294901760, %v9486_v55 }
  0x9f   :  { %7904 = vmatprep.subr.mxu0 %v9236_v48  ;;  %7957 = vmatpush3.msra.mxu1 %v9286_v3 }
  0xa0   :  { %7905 = vmatpush3.msra.mxu0 %v9236_v48  ;;  %7958 = vmatprep.subr.mxu1 %v9301_v11 }
  0xa1   :  { %7906 = vmatprep.subr.mxu0 %v9263_v59  ;;  %7959 = vmatpush3.msra.mxu1 %v9301_v11 }
  0xa2   :  { %7907 = vmatpush3.msra.mxu0 %v9263_v59  ;;  %7960 = vmatprep.subr.mxu1 %v9321_v32 }
  0xa3   :  { %7908 = vmatprep.subr.mxu0 %v9283_v2  ;;  %7961 = vmatpush3.msra.mxu1 %v9321_v32 }
  0xa4   :  { %7909 = vmatpush3.msra.mxu0 %v9283_v2  ;;  %7962 = vmatprep.subr.mxu1 %v9336_v40  ;;  %v11416_v2 = vld [vmem:[#allocation4_spill] sm:$0xff] }
  0xa5   :  { %7910 = vmatprep.subr.mxu0 %v9298_v8  ;;  %7963 = vmatpush3.msra.mxu1 %v9336_v40 }
  0xa6   :  { %7911 = vmatpush3.msra.mxu0 %v9298_v8  ;;  %7964 = vmatprep.subr.mxu1 %v9347_v50 }
  0xa7   :  { %7912 = vmatprep.subr.mxu0 %v9319_v28  ;;  %7965 = vmatpush3.msra.mxu1 %v9347_v50 }
  0xa8   :  { %7913 = vmatpush3.msra.mxu0 %v9319_v28  ;;  %7967 = vmatmul.mubr.f32.vlgmr.msra.gmra.mxu1 %v11412_v22 }
  0xa9   :  { %8022 = vmatprep.subr.mxu1 %v9130_v9  ;;  %7914 = vmatprep.subr.mxu0 %v9334_v39 }
  0xaa   :  { %7969 = vmatprep.mubr.f32.mxu1 %v11413_v30  ;;  %8023 = vmatpush3.msra.mxu1 %v9130_v9  ;;  %v1120_v9 = vld [vmem:[%s11333_s3 + $0x78] sm:$0xff]  ;;  %v9822_v30 = vpop.permute.xlu0 %1058 }
  0xab   :  { %7915 = vmatpush3.msra.mxu0 %v9334_v39  ;;  %8024 = vmatprep.subr.mxu1 %v9132_v10  ;;  %vm1081_vm8 = vcmp.eq.s32.totalorder %v9396_v45, %v9822_v30 }
  0xac   :  { %7916 = vmatprep.subr.mxu0 %v9345_v49  ;;  %8025 = vmatpush3.msra.mxu1 %v9132_v10  ;;  %v1119_v10 = vld [vmem:[%s11333_s3 + $0x70] sm:$0xff] }
  0xad   :  { %7917 = vmatpush3.msra.mxu0 %v9345_v49  ;;  %7970 = vmatmul.mubr.f32.gmra.mxu1 %v11414_v41 }
  0xae   :  { %8026 = vmatprep.subr.mxu1 %v9143_v14  ;;  %7918 = vmatprep.subr.mxu0 %v9357_v57 }
  0xaf   :  { %7972 = vmatprep.mubr.f32.mxu1 %v11415_v44  ;;  %8027 = vmatpush3.msra.mxu1 %v9143_v14  ;;  %v9658_v14 = vand.u32 4294901760, %v1120_v9 }
  0xb0   :  { %7919 = vmatpush3.msra.mxu0 %v9357_v57  ;;  %8028 = vmatprep.subr.mxu1 %v9145_v15 }
  0xb1   :  { %7920 = vmatprep.subr.mxu0 %v9367_v0  ;;  %8029 = vmatpush3.msra.mxu1 %v9145_v15  ;;  %v9664_v15 = vand.u32 4294901760, %v1119_v10 }
  0xb2   :  { %7921 = vmatpush3.msra.mxu0 %v9367_v0  ;;  %7973 = vmatmul.mubr.f32.gmra.mxu1 %v240_v24  ;;  %v1112_v0 = vld [vmem:[%s11333_s3 + $0x38] sm:$0xff] }
  0xb3   :  { %8030 = vmatprep.subr.mxu1 %v9147_v16  ;;  %7923 = vmatmul.mubr.f32.vlgmr.msra.gmra.mxu0 %v9446_v62 }
  0xb4   :  { %7975 = vmatprep.mubr.f32.mxu1 %v250_v36  ;;  %7978 = vmatprep.subr.mxu0 %v9175_v25 }
  0xb5   :  { %8031 = vmatpush3.msra.mxu1 %v9147_v16  ;;  %7925 = vmatprep.mubr.f32.mxu0 %v9418_v6  ;;  %v1118_v16 = vld [vmem:[%s11333_s3 + $0x68] sm:$0xff] }
  0xb6   :  { %7979 = vmatpush3.msra.mxu0 %v9175_v25  ;;  %8032 = vmatprep.subr.mxu1 %v9181_v27  ;;  %v9674_v25 = vsub.f32 %v1120_v9, %v9658_v14 }
  0xb7   :  { %7980 = vmatprep.subr.mxu0 %v9178_v26  ;;  %8033 = vmatpush3.msra.mxu1 %v9181_v27  ;;  %v9681_v27 = vand.u32 4294901760, %v1118_v16 }
  0xb8   :  { %7976 = vmatmul.mubr.f32.gmra.mxu1 %v260_v19  ;;  %7981 = vmatpush3.msra.mxu0 %v9178_v26  ;;  %v1117_v26 = vld [vmem:[%s11333_s3 + $0x60] sm:$0xff]  ;;  %v1110_v19 = vld [vmem:[%s11333_s3 + $0x28] sm:$0xff] }
  0xb9   :  { %8034 = vmatprep.subr.mxu1 %v9193_v31  ;;  %7926 = vmatmul.mubr.f32.gmra.mxu0 %v9444_v42  ;;  %v9828_v9 = vand.u32 4294901760, %v1110_v19 }
  0xba   :  { %7982 = vmatprep.subr.mxu0 %v9187_v29  ;;  %8035 = vmatpush3.msra.mxu1 %v9193_v31  ;;  %v9690_v31 = vand.u32 4294901760, %v1117_v26 }
  0xbb   :  { %8054 = vmatprep.mubr.msk.f32.mxu1 %vm67_vm1, %v11407_v5  ;;  %7928 = vmatprep.mubr.f32.mxu0 %v9486_v55  ;;  %v11418_v55 = vld [vmem:[#allocation6_spill] sm:$0xff] }
  0xbc   :  { %7983 = vmatpush3.msra.mxu0 %v9187_v29  ;;  %8036 = vmatprep.subr.mxu1 %v9203_v35  ;;  %v9686_v29 = vsub.f32 %v1119_v10, %v9664_v15  ;;  %v1109_v10 = vld [vmem:[%s11333_s3 + $0x20] sm:$0xff] }
  0xbd   :  { %7984 = vmatprep.subr.mxu0 %v9200_v34  ;;  %8037 = vmatpush3.msra.mxu1 %v9203_v35  ;;  %v9698_v35 = vand.u32 4294901760, %v9674_v25 }
  0xbe   :  { %7985 = vmatpush3.msra.mxu0 %v9200_v34  ;;  %8038 = vmatprep.subr.mxu1 %v9233_v47  ;;  %v1116_v34 = vld [vmem:[%s11333_s3 + $0x58] sm:$0xff] }
  0xbf   :  { %7929 = vmatmul.mubr.f32.gmra.mxu0 %v9484_v51  ;;  %7986 = vmatprep.subr.mxu0 %v9221_v43  ;;  %v9713_v48 = vand.u32 4294901760, %v1116_v34 }
  0xc0   :  { %8039 = vmatpush3.msra.mxu1 %v9233_v47  ;;  %7931 = vmatprep.mubr.f32.mxu0 %v9523_v46  ;;  %v9711_v47 = vand.u32 4294901760, %v9686_v29  ;;  %v9791_v46 = vand.u32 4294901760, %v1112_v0 }
  0xc1   :  { %7987 = vmatpush3.msra.mxu0 %v9221_v43  ;;  %8040 = vmatprep.subr.mxu1 %v9251_v54  ;;  %v9706_v43 = vsub.f32 %v1118_v16, %v9681_v27 }
  0xc2   :  { %7988 = vmatprep.subr.mxu0 %v9248_v53  ;;  %8041 = vmatpush3.msra.mxu1 %v9251_v54  ;;  %v9721_v54 = vsub.f32 %v1117_v26, %v9690_v31  ;;  %v9820_v22 = vsub.f32 %v1112_v0, %v9791_v46  ;;  %v11426_v26 = vld [vmem:[#allocation10_spill] sm:$0xff] }
  0xc3   :  { %7989 = vmatpush3.msra.mxu0 %v9248_v53  ;;  %8042 = vmatprep.subr.mxu1 %v9266_v60  ;;  %v1115_v53 = vld [vmem:[%s11333_s3 + $0x50] sm:$0xff]  ;;  %v9730_v59 = vand.u32 4294901760, %v9706_v43 }
  0xc4   :  { %7932 = vmatmul.mubr.f32.gmra.mxu0 %v9530_v4  ;;  %7990 = vmatprep.subr.mxu0 %v9256_v56  ;;  %v9747_v8 = vand.u32 4294901760, %v9721_v54 }
  0xc5   :  { %8043 = vmatpush3.msra.mxu1 %v9266_v60  ;;  %7991 = vmatpush3.msra.mxu0 %v9256_v56  ;;  %v1286_v56 = vsub.f32 %v9674_v25, %v9698_v35  ;;  %v9732_v60 = vand.u32 4294901760, %v1115_v53  ;;  %v1300_v39 = vsub.f32 %v9706_v43, %v9730_v59 }
  0xc6   :  { %8010 = vmatprep.mubr.msk.f32.mxu0 %vm67_vm1, %v11407_v5  ;;  %8044 = vmatprep.subr.mxu1 %v9286_v3  ;;  %v1307_v52 = vsub.f32 %v9721_v54, %v9747_v8  ;;  %vm2067_vm1 = vcmask 261120  }
  0xc7   :  { %7992 = vmatprep.subr.mxu0 %v9269_v61  ;;  %8045 = vmatpush3.msra.mxu1 %v9286_v3  ;;  %v1293_v3 = vsub.f32 %v9686_v29, %v9711_v47  ;;  %v1287_v24 = vand.u32 4294901760, %v1286_v56  ;;  %v9761_v49 = vsub.f32 %v1115_v53, %v9732_v60  ;;  %v1301_v42 = vand.u32 4294901760, %v1300_v39  ;;  %v1108_v56 = vld [vmem:[%s11333_s3 + $0x18] sm:$0xff] }
  0xc8   :  { %7993 = vmatpush3.msra.mxu0 %v9269_v61  ;;  %8046 = vmatprep.subr.mxu1 %v9301_v11  ;;  %v1114_v61 = vld [vmem:[%s11333_s3 + $0x48] sm:$0xff]  ;;  %v1308_v37 = vand.u32 4294901760, %v1307_v52  ;;  %v9841_v53 = vsub.f32 %v1111_v63, %v9814_v20  ;;  %v9875_v39 = vand.u32 4294901760, %v1108_v56 }
  0xc9   :  { %7994 = vmatprep.subr.mxu0 %v9295_v7  ;;  %8047 = vmatpush3.msra.mxu1 %v9301_v11  ;;  %v11417_v11 = vld [vmem:[#allocation5_spill] sm:$0xff]  ;;  %v9751_v28 = vand.u32 4294901760, %v1114_v61  ;;  %v9789_v62 = vand.u32 4294901760, %v9761_v49 }
  0xca   :  { %7995 = vmatpush3.msra.mxu0 %v9295_v7  ;;  %8048 = vmatprep.subr.mxu1 %v9321_v32  ;;  %v9742_v7 = vsub.f32 %v1116_v34, %v9713_v48  ;;  %v9886_v51 = vand.u32 4294901760, %v9841_v53  ;;  %v1106_v52 = vld [vmem:[%s11333_s3 + $0x8] sm:$0xff] }
  0xcb   :  { %7996 = vmatprep.subr.mxu0 %v11416_v2  ;;  %8049 = vmatpush3.msra.mxu1 %v9321_v32  ;;  %v1113_v32 = vld [vmem:[%s11333_s3 + $0x40] sm:$0xff]  ;;  %v9782_v6 = vsub.f32 %v1114_v61, %v9751_v28  ;;  %v1321_v21 = vsub.f32 %v9761_v49, %v9789_v62 }
  0xcc   :  { %7997 = vmatpush3.msra.mxu0 %v11416_v2  ;;  %8050 = vmatprep.subr.mxu1 %v9336_v40  ;;  %v9766_v57 = vand.u32 4294901760, %v9742_v7  ;;  %v9778_v4 = vand.u32 4294901760, %v1113_v32  ;;  %v9854_v2 = vand.u32 4294901760, %v9820_v22 }
  0xcd   :  { %7998 = vmatprep.subr.mxu0 %v11417_v11  ;;  %8051 = vmatpush3.msra.mxu1 %v9336_v40  ;;  %v1294_v40 = vand.u32 4294901760, %v1293_v3  ;;  %v9812_v13 = vand.u32 4294901760, %v9782_v6  ;;  %v1322_v61 = vand.u32 4294901760, %v1321_v21  ;;  %v9856_v3 = vand.u32 4294901760, %v1109_v10 }
  0xce   :  { %7999 = vmatpush3.msra.mxu0 %v11417_v11  ;;  %8052 = vmatprep.subr.mxu1 %v9347_v50  ;;  %v1314_v36 = vsub.f32 %v9742_v7, %v9766_v57  ;;  %v9801_v18 = vsub.f32 %v1113_v32, %v9778_v4  ;;  %v9863_v11 = vsub.f32 %v1110_v19, %v9828_v9 }
  0xcf   :  { %8000 = vmatprep.subr.mxu0 %v11418_v55  ;;  %8053 = vmatpush3.msra.mxu1 %v9347_v50  ;;  %v11420_v50 = vld [vmem:[#allocation7_spill] sm:$0xff]  ;;  %v1328_v34 = vsub.f32 %v9782_v6, %v9812_v13  ;;  %v9914_v19 = vsub.f32 %v1108_v56, %v9875_v39  ;;  %v1349_v21 = vsub.f32 %v9841_v53, %v9886_v51 }
  0xd0   :  { %8001 = vmatpush3.msra.mxu0 %v11418_v55  ;;  %8055 = vmatmul.mubr.msk.f32.vlgmr.msra.gmra.mxu1 %vm68_vm3, %v11407_v5  ;;  %v1315_v44 = vand.u32 4294901760, %v1314_v36  ;;  %v9835_v16 = vand.u32 4294901760, %v9801_v18  ;;  %v11427_v55 = vmov 0.0   ;;  %v9901_v12 = vand.u32 4294901760, %v9863_v11  ;;  %v1105_v36 = vld [vmem:[%s11333_s3] sm:$0xff] }
  0xd1   :  { %8110 = vmatprep.subr.mxu1 %v1287_v24  ;;  %8002 = vmatprep.subr.mxu0 %v11420_v50  ;;  %v1329_v0 = vand.u32 4294901760, %v1328_v34  ;;  %v9931_v34 = vand.u32 4294901760, %v1105_v36 }
  0xd2   :  { %8057 = vmatprep.mubr.msk.f32.mxu1 %vm69_vm0, %v11407_v5  ;;  %8111 = vmatpush3.msra.mxu1 %v1287_v24  ;;  %v1107_v24 = vld [vmem:[%s11333_s3 + $0x10] sm:$0xff]  ;;  %v1335_v32 = vsub.f32 %v9801_v18, %v9835_v16  ;;  %11428 = vst [vmem:[#allocation4_spill] sm:$0xff] %v9901_v12  ;;  %v1356_v38 = vsub.f32 %v9863_v11, %v9901_v12 }
  0xd3   :  { %8003 = vmatpush3.msra.mxu0 %v11420_v50  ;;  %8112 = vmatprep.subr.mxu1 %v1294_v40  ;;  %v1342_v50 = vsub.f32 %v9820_v22, %v9854_v2  ;;  %v9897_v63 = vand.u32 4294901760, %v1107_v24 }
  0xd4   :  { %8004 = vmatprep.subr.mxu0 %v11422_v17  ;;  %8113 = vmatpush3.msra.mxu1 %v1294_v40  ;;  %v7160_v40 = vsel %vm1081_vm8, 1.0, %v11427_v55 }
  0xd5   :  { %8005 = vmatpush3.msra.mxu0 %v11422_v17  ;;  %8058 = vmatmul.mubr.msk.f32.gmra.mxu1 %vm70_vm2, %v11407_v5  ;;  %v9906_v17 = vsub.f32 %v7160_v40, %v7160_v40 }
  0xd6   :  { %8114 = vmatprep.subr.mxu1 %v1301_v42  ;;  %8006 = vmatprep.subr.mxu0 %v11424_v33 }
  0xd7   :  { %8060 = vmatprep.mubr.msk.f32.mxu1 %vm71_vm5, %v11407_v5  ;;  %8115 = vmatpush3.msra.mxu1 %v1301_v42  ;;  %v9895_v42 = vsub.f32 %v1109_v10, %v9856_v3  ;;  %v11369_v56 = vand.u32 4294901760, %v9906_v17 }
  0xd8   :  { %8007 = vmatpush3.msra.mxu0 %v11424_v33  ;;  %8116 = vmatprep.subr.mxu1 %v1308_v37  ;;  %v9916_v33 = vand.u32 4294901760, %v1106_v52 }
  0xd9   :  { %8008 = vmatprep.subr.mxu0 %v11426_v26  ;;  %8117 = vmatpush3.msra.mxu1 %v1308_v37  ;;  %v1336_v37 = vand.u32 4294901760, %v1335_v32  ;;  %v9926_v10 = vand.u32 4294901760, %v9895_v42  ;;  %v1350_v32 = vand.u32 4294901760, %v1349_v21 }
  0xda   :  { %8009 = vmatpush3.msra.mxu0 %v11426_v26  ;;  %8061 = vmatmul.mubr.msk.f32.gmra.mxu1 %vm72_vm4, %v11407_v5  ;;  %v9929_v26 = vsub.f32 %v1107_v24, %v9897_v63  ;;  %v9949_v24 = vsub.f32 %v1106_v52, %v9916_v33  ;;  %v1357_v52 = vand.u32 4294901760, %v1356_v38 }
  0xdb   :  { %8118 = vmatprep.subr.mxu1 %v1315_v44  ;;  %8011 = vmatmul.mubr.msk.f32.vlgmr.msra.gmra.mxu0 %vm68_vm3, %v11407_v5  ;;  %11429 = vst [vmem:[#allocation5_spill] sm:$0xff] %v9926_v10  ;;  %v1363_v41 = vsub.f32 %v9895_v42, %v9926_v10 }
  0xdc   :  { %8063 = vmatprep.mubr.msk.f32.mxu1 %vm73_vm7, %v11407_v5  ;;  %8066 = vmatprep.subr.mxu0 %v9658_v14  ;;  %v9956_v40 = vand.u32 4294901760, %v9929_v26 }
  0xdd   :  { %8119 = vmatpush3.msra.mxu1 %v1315_v44  ;;  %8013 = vmatprep.mubr.msk.f32.mxu0 %vm69_vm0, %v11407_v5  ;;  %v1343_v44 = vand.u32 4294901760, %v1342_v50  ;;  %v1205_v50 = vsub.f32 %v9906_v17, %v11369_v56  ;;  %v1364_v58 = vand.u32 4294901760, %v1363_v41  ;;  %v9995_v56 = vpop.permute.xlu0 %1064  ;;  %vm9053_vm0 = vmmov 0  }
  0xde   :  { %8067 = vmatpush3.msra.mxu0 %v9658_v14  ;;  %8120 = vmatprep.subr.mxu1 %v1322_v61  ;;  %11431 = vst [vmem:[#allocation13_spill] sm:$0xff] %v9956_v40  ;;  %v1377_v23 = vsub.f32 %v9929_v26, %v9956_v40  ;;  %11435 = vst [vmem:[#allocation12_spill] sm:$0xff] %v9995_v56  ;;  %vm1083_vm10 = vcmp.eq.s32.totalorder %v9396_v45, %v9995_v56 }
  0xdf   :  { %8068 = vmatprep.subr.mxu0 %v9664_v15  ;;  %8121 = vmatpush3.msra.mxu1 %v1322_v61  ;;  %v9946_v61 = vand.u32 4294901760, %v9914_v19  ;;  %v1206_v38 = vand.u32 4294901760, %v1205_v50 }
  0xe0   :  { %8064 = vmatmul.mubr.msk.f32.gmra.mxu1 %vm74_vm6, %v11407_v5  ;;  %8069 = vmatpush3.msra.mxu0 %v9664_v15  ;;  %v1378_v40 = vand.u32 4294901760, %v1377_v23  ;;  %v7162_v23 = vsel %vm1083_vm10, 1.0, %v11427_v55 }
  0xe1   :  { %8122 = vmatprep.subr.mxu1 %v1329_v0  ;;  %8014 = vmatmul.mubr.msk.f32.gmra.mxu0 %vm70_vm2, %v11407_v5  ;;  %11430 = vst [vmem:[#allocation6_spill] sm:$0xff] %v9946_v61  ;;  %vm7115_vm2 = vcmask 7168  }
  0xe2   :  { %8070 = vmatprep.subr.mxu0 %v9681_v27  ;;  %8123 = vmatpush3.msra.mxu1 %v1329_v0  ;;  %v9959_v0 = vsub.f32 %v1105_v36, %v9931_v34  ;;  %v1370_v36 = vsub.f32 %v9914_v19, %v9946_v61 }
  0xe3   :  { %8142 = vmatprep.mubr.msk.f32.mxu1 %vm1081_vm8, %v11407_v5  ;;  %8016 = vmatprep.mubr.msk.f32.mxu0 %vm71_vm5, %v11407_v5 }
  0xe4   :  { %8071 = vmatpush3.msra.mxu0 %v9681_v27  ;;  %8124 = vmatprep.subr.mxu1 %v1336_v37  ;;  %v9983_v21 = vand.u32 4294901760, %v9959_v0 }
  0xe5   :  { %8072 = vmatprep.subr.mxu0 %v9690_v31  ;;  %8125 = vmatpush3.msra.mxu1 %v1336_v37  ;;  %v9976_v37 = vand.u32 4294901760, %v9949_v24 }
  0xe6   :  { %8073 = vmatpush3.msra.mxu0 %v9690_v31  ;;  %8126 = vmatprep.subr.mxu1 %v1343_v44  ;;  %11433 = vst [vmem:[#allocation11_spill] sm:$0xff] %v9983_v21  ;;  %v1391_v61 = vsub.f32 %v9959_v0, %v9983_v21 }
  0xe7   :  { %8017 = vmatmul.mubr.msk.f32.gmra.mxu0 %vm72_vm4, %v11407_v5  ;;  %8074 = vmatprep.subr.mxu0 %v9713_v48  ;;  %11432 = vst [vmem:[#allocation7_spill] sm:$0xff] %v9976_v37  ;;  %v1384_v41 = vsub.f32 %v9949_v24, %v9976_v37 }
  0xe8   :  { %8127 = vmatpush3.msra.mxu1 %v1343_v44  ;;  %8019 = vmatprep.mubr.msk.f32.mxu0 %vm73_vm7, %v11407_v5  ;;  %v9985_v44 = vpop.permute.xlu1 %1061 }
  0xe9   :  { %8075 = vmatpush3.msra.mxu0 %v9713_v48  ;;  %8128 = vmatprep.subr.mxu1 %v1350_v32  ;;  %11434 = vst [vmem:[#allocation8_spill] sm:$0xff] %v9985_v44  ;;  %vm1082_vm9 = vcmp.eq.s32.totalorder %v9396_v45, %v9985_v44  ;;  %v1385_v1 = vand.u32 4294901760, %v1384_v41 }
  0xea   :  { %8076 = vmatprep.subr.mxu0 %v9732_v60  ;;  %8129 = vmatpush3.msra.mxu1 %v1350_v32  ;;  %v1371_v32 = vand.u32 4294901760, %v1370_v36  ;;  %v1392_v36 = vand.u32 4294901760, %v1391_v61  ;;  %v10028_v61 = vsub.f32 %v7162_v23, %v7162_v23 }
  0xeb   :  { %8077 = vmatpush3.msra.mxu0 %v9732_v60  ;;  %8130 = vmatprep.subr.mxu1 %v1357_v52 }
  0xec   :  { %8020 = vmatmul.mubr.msk.f32.gmra.mxu0 %vm74_vm6, %v11407_v5  ;;  %8078 = vmatprep.subr.mxu0 %v9751_v28  ;;  %v10004_v50 = vpop.permute.xlu1 %1067 }
  0xed   :  { %8131 = vmatpush3.msra.mxu1 %v1357_v52  ;;  %8079 = vmatpush3.msra.mxu0 %v9751_v28  ;;  %11436 = vst [vmem:[#allocation9_spill] sm:$0xff] %v10004_v50  ;;  %v7161_v52 = vsel %vm1082_vm9, 1.0, %v11427_v55  ;;  %vm1084_vm11 = vcmp.eq.s32.totalorder %v9396_v45, %v10004_v50 }
  0xee   :  { %8098 = vmatprep.mubr.f32.mxu0 %v1206_v38  ;;  %8132 = vmatprep.subr.mxu1 %v1364_v58  ;;  %v10022_v38 = vsub.f32 %v7161_v52, %v7161_v52 }
  0xef   :  { %8080 = vmatprep.subr.mxu0 %v9778_v4  ;;  %8133 = vmatpush3.msra.mxu1 %v1364_v58  ;;  %v10014_v58 = vpop.permute.xlu0 %1070 }
  0xf0   :  { %8081 = vmatpush3.msra.mxu0 %v9778_v4  ;;  %8134 = vmatprep.subr.mxu1 %v1371_v32  ;;  %11437 = vst [vmem:[#allocation14_spill] sm:$0xff] %v10014_v58  ;;  %vm1085_vm12 = vcmp.eq.s32.totalorder %v9396_v45, %v10014_v58  ;;  %v11378_v41 = vand.u32 4294901760, %v10022_v38 }
  0xf1   :  { %8082 = vmatprep.subr.mxu0 %v9791_v46  ;;  %8135 = vmatpush3.msra.mxu1 %v1371_v32  ;;  %v7163_v32 = vsel %vm1084_vm11, 1.0, %v11427_v55  ;;  %v7164_v52 = vsel %vm1085_vm12, 1.0, %v11427_v55 }
  0xf2   :  { %8083 = vmatpush3.msra.mxu0 %v9791_v46  ;;  %8136 = vmatprep.subr.mxu1 %v1378_v40  ;;  %v10072_v21 = vsub.f32 %v7164_v52, %v7164_v52 }
  0xf3   :  { %8084 = vmatprep.subr.mxu0 %v9814_v20  ;;  %8137 = vmatpush3.msra.mxu1 %v1378_v40  ;;  %v10030_v40 = vpop.permute.xlu1 %1073 }
  0xf4   :  { %8085 = vmatpush3.msra.mxu0 %v9814_v20  ;;  %8138 = vmatprep.subr.mxu1 %v1385_v1  ;;  %vm1086_vm13 = vcmp.eq.s32.totalorder %v9396_v45, %v10030_v40  ;;  %v1244_v58 = vand.u32 4294901760, %v10072_v21 }
  0xf5   :  { %8086 = vmatprep.subr.mxu0 %v9828_v9  ;;  %8139 = vmatpush3.msra.mxu1 %v1385_v1  ;;  %v10045_v1 = vpop.permute.xlu0 %1076  ;;  %v7165_v23 = vsel %vm1086_vm13, 1.0, %v11427_v55 }
  0xf6   :  { %8087 = vmatpush3.msra.mxu0 %v9828_v9  ;;  %8140 = vmatprep.subr.mxu1 %v1392_v36  ;;  %11438 = vst [vmem:[#allocation10_spill] sm:$0xff] %v10045_v1  ;;  %vm1087_vm14 = vcmp.eq.s32.totalorder %v9396_v45, %v10045_v1  ;;  %v10104_v10 = vsub.f32 %v7165_v23, %v7165_v23 }
  0xf7   :  { %8088 = vmatprep.subr.mxu0 %v9856_v3  ;;  %8141 = vmatpush3.msra.mxu1 %v1392_v36  ;;  %v10058_v36 = vsub.f32 %v7163_v32, %v7163_v32  ;;  %v1215_v32 = vsub.f32 %v10022_v38, %v11378_v41  ;;  %v10074_v37 = vpop.permute.xlu1 %1079  ;;  %v7166_v52 = vsel %vm1087_vm14, 1.0, %v11427_v55  ;;  %v11439_v41 = vand.u32 4294901760, %v10028_v61 }
  0xf8   :  { %8089 = vmatpush3.msra.mxu0 %v9856_v3  ;;  %8143 = vmatmul.mubr.msk.f32.vlgmr.msra.gmra.mxu1 %vm1082_vm9, %v11407_v5  ;;  %vm1088_vm15 = vcmp.eq.s32.totalorder %v9396_v45, %v10074_v37  ;;  %v10109_v12 = vsub.f32 %v7166_v52, %v7166_v52  ;;  %v1245_v52 = vsub.f32 %v10072_v21, %v1244_v58 }
  0xf9   :  { %8198 = vmatprep.subr.mxu1 %v9658_v14  ;;  %8090 = vmatprep.subr.mxu0 %v9875_v39  ;;  %v1225_v50 = vsub.f32 %v10028_v61, %v11439_v41  ;;  %v11391_v56 = vand.u32 4294901760, %v10058_v36  ;;  %v1216_v44 = vand.u32 4294901760, %v1215_v32  ;;  %v7167_v41 = vsel %vm1088_vm15, 1.0, %v11427_v55 }
  0xfa   :  { %8145 = vmatprep.mubr.msk.f32.mxu1 %vm1083_vm10, %v11407_v5  ;;  %8199 = vmatpush3.msra.mxu1 %v9658_v14 }
  0xfb   :  { %8091 = vmatpush3.msra.mxu0 %v9875_v39  ;;  %8200 = vmatprep.subr.mxu1 %v9664_v15  ;;  %v1226_v23 = vand.u32 4294901760, %v1225_v50  ;;  %v1235_v32 = vsub.f32 %v10058_v36, %v11391_v56  ;;  %v10134_v50 = vsub.f32 %v7167_v41, %v7167_v41  ;;  %v11394_v56 = vand.u32 4294901760, %v10109_v12 }
  0xfc   :  { %8092 = vmatprep.subr.mxu0 %v9897_v63  ;;  %8201 = vmatpush3.msra.mxu1 %v9664_v15 }
  0xfd   :  { %8093 = vmatpush3.msra.mxu0 %v9897_v63  ;;  %8146 = vmatmul.mubr.msk.f32.gmra.mxu1 %vm1084_vm11, %v11407_v5  ;;  %v1236_v1 = vand.u32 4294901760, %v1235_v32  ;;  %v1274_v32 = vand.u32 4294901760, %v10134_v50 }
  0xfe   :  { %8202 = vmatprep.subr.mxu1 %v9681_v27  ;;  %8094 = vmatprep.subr.mxu0 %v9916_v33 }
  0xff   :  { %8148 = vmatprep.mubr.msk.f32.mxu1 %vm1085_vm12, %v11407_v5  ;;  %8203 = vmatpush3.msra.mxu1 %v9681_v27 }
 0x100   :  { %8095 = vmatpush3.msra.mxu0 %v9916_v33  ;;  %8204 = vmatprep.subr.mxu1 %v9690_v31 }
 0x101   :  { %8096 = vmatprep.subr.mxu0 %v9931_v34  ;;  %8205 = vmatpush3.msra.mxu1 %v9690_v31 }
 0x102   :  { %8097 = vmatpush3.msra.mxu0 %v9931_v34  ;;  %8149 = vmatmul.mubr.msk.f32.gmra.mxu1 %vm1086_vm13, %v11407_v5 }
 0x103   :  { %8206 = vmatprep.subr.mxu1 %v9713_v48  ;;  %8099 = vmatmul.mubr.f32.vlgmr.msra.gmra.mxu0 %v1216_v44  ;;  %v1254_v44 = vand.u32 4294901760, %v10104_v10 }
 0x104   :  { %8151 = vmatprep.mubr.msk.f32.mxu1 %vm1087_vm14, %v11407_v5  ;;  %8154 = vmatprep.subr.mxu0 %v9674_v25 }
 0x105   :  { %8207 = vmatpush3.msra.mxu1 %v9713_v48  ;;  %8101 = vmatprep.mubr.f32.mxu0 %v1226_v23  ;;  %v1255_v41 = vsub.f32 %v10104_v10, %v1254_v44  ;;  %v1265_v23 = vsub.f32 %v10109_v12, %v11394_v56  ;;  %v1275_v56 = vsub.f32 %v10134_v50, %v1274_v32 }
 0x106   :  { %8155 = vmatpush3.msra.mxu0 %v9674_v25  ;;  %8208 = vmatprep.subr.mxu1 %v9732_v60  ;;  %v1246_v25 = vand.u32 4294901760, %v1245_v52 }
 0x107   :  { %8156 = vmatprep.subr.mxu0 %v9686_v29  ;;  %8209 = vmatpush3.msra.mxu1 %v9732_v60  ;;  %v1266_v52 = vand.u32 4294901760, %v1265_v23 }
 0x108   :  { %8152 = vmatmul.mubr.msk.f32.gmra.mxu1 %vm1088_vm15, %v11407_v5  ;;  %8157 = vmatpush3.msra.mxu0 %v9686_v29  ;;  %v11440_v29 = vand.u32 4294901760, %v9906_v17 }
 0x109   :  { %8210 = vmatprep.subr.mxu1 %v9751_v28  ;;  %8102 = vmatmul.mubr.f32.gmra.mxu0 %v1236_v1  ;;  %v1256_v1 = vand.u32 4294901760, %v1255_v41 }
 0x10a   :  { %8158 = vmatprep.subr.mxu0 %v9706_v43  ;;  %8211 = vmatpush3.msra.mxu1 %v9751_v28 }
 0x10b   :  { %8230 = vmatprep.mubr.f32.mxu1 %v11440_v29  ;;  %8104 = vmatprep.mubr.f32.mxu0 %v1246_v25 }
 0x10c   :  { %8159 = vmatpush3.msra.mxu0 %v9706_v43  ;;  %8212 = vmatprep.subr.mxu1 %v9778_v4  ;;  %v1276_v43 = vand.u32 4294901760, %v1275_v56 }
 0x10d   :  { %8160 = vmatprep.subr.mxu0 %v9721_v54  ;;  %8213 = vmatpush3.msra.mxu1 %v9778_v4 }
 0x10e   :  { %8161 = vmatpush3.msra.mxu0 %v9721_v54  ;;  %8214 = vmatprep.subr.mxu1 %v9791_v46  ;;  %v11441_v54 = vand.u32 4294901760, %v10022_v38 }
 0x10f   :  { %8105 = vmatmul.mubr.f32.gmra.mxu0 %v1256_v1  ;;  %8162 = vmatprep.subr.mxu0 %v9742_v7 }
 0x110   :  { %8215 = vmatpush3.msra.mxu1 %v9791_v46  ;;  %8107 = vmatprep.mubr.f32.mxu0 %v1266_v52 }
 0x111   :  { %8163 = vmatpush3.msra.mxu0 %v9742_v7  ;;  %8216 = vmatprep.subr.mxu1 %v9814_v20  ;;  %v11442_v7 = vand.u32 4294901760, %v10028_v61 }
 0x112   :  { %8164 = vmatprep.subr.mxu0 %v9761_v49  ;;  %8217 = vmatpush3.msra.mxu1 %v9814_v20 }
 0x113   :  { %8165 = vmatpush3.msra.mxu0 %v9761_v49  ;;  %8218 = vmatprep.subr.mxu1 %v9828_v9  ;;  %v11443_v49 = vand.u32 4294901760, %v10058_v36 }
 0x114   :  { %8108 = vmatmul.mubr.f32.gmra.mxu0 %v1276_v43  ;;  %8166 = vmatprep.subr.mxu0 %v9782_v6 }
 0x115   :  { %8219 = vmatpush3.msra.mxu1 %v9828_v9  ;;  %8167 = vmatpush3.msra.mxu0 %v9782_v6 }
 0x116   :  { %8186 = vmatprep.mubr.f32.mxu0 %v9906_v17  ;;  %8220 = vmatprep.subr.mxu1 %v9856_v3 }
 0x117   :  { %8168 = vmatprep.subr.mxu0 %v9801_v18  ;;  %8221 = vmatpush3.msra.mxu1 %v9856_v3 }
 0x118   :  { %8169 = vmatpush3.msra.mxu0 %v9801_v18  ;;  %8222 = vmatprep.subr.mxu1 %v9875_v39  ;;  %v11446_v18 = vld [vmem:[#allocation5_spill] sm:$0xff] }
 0x119   :  { %8170 = vmatprep.subr.mxu0 %v9820_v22  ;;  %8223 = vmatpush3.msra.mxu1 %v9875_v39 }
 0x11a   :  { %8171 = vmatpush3.msra.mxu0 %v9820_v22  ;;  %8224 = vmatprep.subr.mxu1 %v9897_v63 }
 0x11b   :  { %8172 = vmatprep.subr.mxu0 %v9841_v53  ;;  %8225 = vmatpush3.msra.mxu1 %v9897_v63 }
 0x11c   :  { %8173 = vmatpush3.msra.mxu0 %v9841_v53  ;;  %8226 = vmatprep.subr.mxu1 %v9916_v33 }
 0x11d   :  { %8174 = vmatprep.subr.mxu0 %v9863_v11  ;;  %8227 = vmatpush3.msra.mxu1 %v9916_v33 }
 0x11e   :  { %8175 = vmatpush3.msra.mxu0 %v9863_v11  ;;  %8228 = vmatprep.subr.mxu1 %v9931_v34 }
 0x11f   :  { %8176 = vmatprep.subr.mxu0 %v9895_v42  ;;  %8229 = vmatpush3.msra.mxu1 %v9931_v34 }
 0x120   :  { %8177 = vmatpush3.msra.mxu0 %v9895_v42  ;;  %8231 = vmatmul.mubr.f32.vlgmr.msra.gmra.mxu1 %v11441_v54 }
 0x121   :  { %8286 = vmatprep.subr.mxu1 %v9658_v14  ;;  %8178 = vmatprep.subr.mxu0 %v9914_v19 }
 0x122   :  { %8233 = vmatprep.mubr.f32.mxu1 %v11442_v7  ;;  %8287 = vmatpush3.msra.mxu1 %v9658_v14  ;;  %v11444_v14 = vand.u32 4294901760, %v10109_v12 }
 0x123   :  { %8179 = vmatpush3.msra.mxu0 %v9914_v19  ;;  %8288 = vmatprep.subr.mxu1 %v9664_v15 }
 0x124   :  { %8180 = vmatprep.subr.mxu0 %v9929_v26  ;;  %8289 = vmatpush3.msra.mxu1 %v9664_v15  ;;  %v2066_v15 = vld [vmem:[%s11334_s4 + $0x18] sm:$0xff] }
 0x125   :  { %8181 = vmatpush3.msra.mxu0 %v9929_v26  ;;  %8234 = vmatmul.mubr.f32.gmra.mxu1 %v11443_v49 }
 0x126   :  { %8290 = vmatprep.subr.mxu1 %v9681_v27  ;;  %8182 = vmatprep.subr.mxu0 %v9949_v24 }
 0x127   :  { %8236 = vmatprep.mubr.f32.mxu1 %v1244_v58  ;;  %8291 = vmatpush3.msra.mxu1 %v9681_v27  ;;  %v10259_v27 = vand.u32 4294901760, %v2066_v15 }
 0x128   :  { %8183 = vmatpush3.msra.mxu0 %v9949_v24  ;;  %8292 = vmatprep.subr.mxu1 %v9690_v31 }
 0x129   :  { %8184 = vmatprep.subr.mxu0 %v9959_v0  ;;  %8293 = vmatpush3.msra.mxu1 %v9690_v31  ;;  %v2065_v31 = vld [vmem:[%s11334_s4 + $0x10] sm:$0xff] }
 0x12a   :  { %8185 = vmatpush3.msra.mxu0 %v9959_v0  ;;  %8237 = vmatmul.mubr.f32.gmra.mxu1 %v1254_v44 }
 0x12b   :  { %8294 = vmatprep.subr.mxu1 %v9713_v48  ;;  %8187 = vmatmul.mubr.f32.vlgmr.msra.gmra.mxu0 %v10022_v38 }
 0x12c   :  { %8239 = vmatprep.mubr.f32.mxu1 %v11444_v14  ;;  %8242 = vmatprep.subr.mxu0 %v9698_v35 }
 0x12d   :  { %8295 = vmatpush3.msra.mxu1 %v9713_v48  ;;  %8189 = vmatprep.mubr.f32.mxu0 %v10028_v61  ;;  %v2064_v48 = vld [vmem:[%s11334_s4 + $0x8] sm:$0xff] }
 0x12e   :  { %8243 = vmatpush3.msra.mxu0 %v9698_v35  ;;  %8296 = vmatprep.subr.mxu1 %v9732_v60  ;;  %v10273_v35 = vsub.f32 %v2066_v15, %v10259_v27 }
 0x12f   :  { %8244 = vmatprep.subr.mxu0 %v9711_v47  ;;  %8297 = vmatpush3.msra.mxu1 %v9732_v60 }
 0x130   :  { %8240 = vmatmul.mubr.f32.gmra.mxu1 %v1274_v32  ;;  %8245 = vmatpush3.msra.mxu0 %v9711_v47  ;;  %v10275_v47 = vand.u32 4294901760, %v2065_v31 }
 0x131   :  { %8298 = vmatprep.subr.mxu1 %v9751_v28  ;;  %8190 = vmatmul.mubr.f32.gmra.mxu0 %v10058_v36 }
 0x132   :  { %8246 = vmatprep.subr.mxu0 %v9730_v59  ;;  %8299 = vmatpush3.msra.mxu1 %v9751_v28  ;;  %v10295_v60 = vsub.f32 %v2065_v31, %v10275_v47  ;;  %v2063_v28 = vld [vmem:[%s11334_s4] sm:$0xff]  ;;  %s9054_s4 = smov 64  }
 0x133   :  { %8318 = vmatprep.mubr.msk.f32.mxu1 %vm1081_vm8, %v11407_v5  ;;  %8192 = vmatprep.mubr.f32.mxu0 %v10072_v21  ;;  %v10317_v6 = vand.u32 4294901760, %v2063_v28 }
 0x134   :  { %8247 = vmatpush3.msra.mxu0 %v9730_v59  ;;  %8300 = vmatprep.subr.mxu1 %v9778_v4  ;;  %v10292_v59 = vand.u32 4294901760, %v10273_v35 }
 0x135   :  { %8248 = vmatprep.subr.mxu0 %v9747_v8  ;;  %8301 = vmatpush3.msra.mxu1 %v9778_v4  ;;  %v10313_v4 = vand.u32 4294901760, %v10295_v60 }
 0x136   :  { %8249 = vmatpush3.msra.mxu0 %v9747_v8  ;;  %8302 = vmatprep.subr.mxu1 %v9791_v46  ;;  %v10301_v8 = vand.u32 4294901760, %v2064_v48 }
 0x137   :  { %8193 = vmatmul.mubr.f32.gmra.mxu0 %v10104_v10  ;;  %8250 = vmatprep.subr.mxu0 %v9766_v57 }
 0x138   :  { %8303 = vmatpush3.msra.mxu1 %v9791_v46  ;;  %8195 = vmatprep.mubr.f32.mxu0 %v10109_v12  ;;  %v10322_v46 = vsub.f32 %v2064_v48, %v10301_v8  ;;  %v11452_v12 = vld [vmem:[#allocation7_spill] sm:$0xff] }
 0x139   :  { %8251 = vmatpush3.msra.mxu0 %v9766_v57  ;;  %8304 = vmatprep.subr.mxu1 %v9814_v20  ;;  %v2178_v57 = vsub.f32 %v10273_v35, %v10292_v59 }
 0x13a   :  { %8252 = vmatprep.subr.mxu0 %v9789_v62  ;;  %8305 = vmatpush3.msra.mxu1 %v9814_v20  ;;  %v2185_v20 = vsub.f32 %v10295_v60, %v10313_v4 }
 0x13b   :  { %8253 = vmatpush3.msra.mxu0 %v9789_v62  ;;  %8306 = vmatprep.subr.mxu1 %v9828_v9  ;;  %v11445_v62 = vld [vmem:[#allocation4_spill] sm:$0xff] }
 0x13c   :  { %8196 = vmatmul.mubr.f32.gmra.mxu0 %v10134_v50  ;;  %8254 = vmatprep.subr.mxu0 %v9812_v13  ;;  %v10352_v11 = vand.u32 4294901760, %v2185_v20 }
 0x13d   :  { %8307 = vmatpush3.msra.mxu1 %v9828_v9  ;;  %8255 = vmatpush3.msra.mxu0 %v9812_v13  ;;  %v10328_v13 = vand.u32 4294901760, %v2178_v57  ;;  %v10338_v9 = vsub.f32 %v2063_v28, %v10317_v6 }
 0x13e   :  { %8274 = vmatprep.mubr.msk.f32.mxu0 %vm1081_vm8, %v11407_v5  ;;  %8308 = vmatprep.subr.mxu1 %v9856_v3 }
 0x13f   :  { %8256 = vmatprep.subr.mxu0 %v9835_v16  ;;  %8309 = vmatpush3.msra.mxu1 %v9856_v3  ;;  %v11450_v3 = vld [vmem:[#allocation13_spill] sm:$0xff]  ;;  %v10362_v42 = vand.u32 4294901760, %v10338_v9 }
 0x140   :  { %8257 = vmatpush3.msra.mxu0 %v9835_v16  ;;  %8310 = vmatprep.subr.mxu1 %v9875_v39  ;;  %v11448_v16 = vld [vmem:[#allocation6_spill] sm:$0xff] }
 0x141   :  { %8258 = vmatprep.subr.mxu0 %v9854_v2  ;;  %8311 = vmatpush3.msra.mxu1 %v9875_v39  ;;  %v2199_v56 = vsub.f32 %v10338_v9, %v10362_v42 }
 0x142   :  { %8259 = vmatpush3.msra.mxu0 %v9854_v2  ;;  %8312 = vmatprep.subr.mxu1 %v9897_v63  ;;  %v10346_v2 = vand.u32 4294901760, %v10322_v46 }
 0x143   :  { %8260 = vmatprep.subr.mxu0 %v9886_v51  ;;  %8313 = vmatpush3.msra.mxu1 %v9897_v63  ;;  %v7880_v22 = vpop.f32.mrf.mxu1  ;;  %v10412_v61 = vand.u32 4294901760, %v2199_v56 }
 0x144   :  { %8261 = vmatpush3.msra.mxu0 %v9886_v51  ;;  %8314 = vmatprep.subr.mxu1 %v9916_v33  ;;  %v2192_v19 = vsub.f32 %v10322_v46, %v10346_v2 }
 0x145   :  { %8262 = vmatprep.subr.mxu0 %v11445_v62  ;;  %8315 = vmatpush3.msra.mxu1 %v9916_v33  ;;  %v10354_v39 = vpop.f32.mrf.mxu1 }
 0x146   :  { %8263 = vmatpush3.msra.mxu0 %v11445_v62  ;;  %8316 = vmatprep.subr.mxu1 %v9931_v34  ;;  %v10394_v0 = vand.u32 4294901760, %v2192_v19 }
 0x147   :  { %8264 = vmatprep.subr.mxu0 %v11446_v18  ;;  %8317 = vmatpush3.msra.mxu1 %v9931_v34  ;;  %v7883_v33 = vpop.f32.mrf.mxu1  ;;  %v11454_v34 = vld [vmem:[#allocation11_spill] sm:$0xff] }
 0x148   :  { %8265 = vmatpush3.msra.mxu0 %v11446_v18  ;;  %8319 = vmatmul.mubr.msk.f32.vlgmr.msra.gmra.mxu1 %vm1082_vm9, %v11407_v5 }
 0x149   :  { %8266 = vmatprep.subr.mxu0 %v11448_v16  ;;  %8321 = vmatprep.mubr.msk.f32.mxu1 %vm1083_vm10, %v11407_v5  ;;  %v10396_v21 = vpop.f32.mrf.mxu1 }
 0x14a   :  { %8267 = vmatpush3.msra.mxu0 %v11448_v16  ;;  %8341 = vmatprep.subr.mxu1 %v11427_v55 }
 0x14b   :  { %8268 = vmatprep.subr.mxu0 %v11450_v3  ;;  %8342 = vmatpush3.msra.mxu1 %v10328_v13  ;;  %v7886_v44 = vpop.f32.mrf.mxu1 }
 0x14c   :  { %8269 = vmatpush3.msra.mxu0 %v11450_v3  ;;  %8322 = vmatmul.mubr.msk.f32.gmra.mxu1 %vm1084_vm11, %v11407_v5 }
 0x14d   :  { %v7836_v63 = vpop.f32.mrf.mxu0  ;;  %8270 = vmatprep.subr.mxu0 %v11452_v12  ;;  %8324 = vmatprep.mubr.msk.f32.mxu1 %vm1085_vm12, %v11407_v5  ;;  %v10435_v25 = vpop.f32.mrf.mxu1 }
 0x14e   :  { %v10371_v10 = vadd.f32 %v7880_v22, %v7836_v63  ;;  %8271 = vmatpush3.msra.mxu0 %v11452_v12  ;;  %8343 = vmatprep.subr.mxu1 %v11427_v55 }
 0x14f   :  { %v10375_v26 = vpop.f32.mrf.mxu0  ;;  %8272 = vmatprep.subr.mxu0 %v11454_v34  ;;  %8344 = vmatpush3.msra.mxu1 %v10352_v11 }
 0x150   :  { %8273 = vmatpush3.msra.mxu0 %v11454_v34  ;;  %8325 = vmatmul.mubr.msk.f32.gmra.mxu1 %vm1086_vm13, %v11407_v5  ;;  %v416_v43 = vadd.f32 %v10354_v39, %v10375_v26 }
 0x151   :  { %8275 = vmatmul.mubr.msk.f32.vlgmr.msra.gmra.mxu0 %vm1082_vm9, %v11407_v5  ;;  %8327 = vmatprep.mubr.msk.f32.mxu1 %vm1087_vm14, %v11407_v5  ;;  %v7889_v40 = vpop.f32.mrf.mxu1 }
 0x152   :  { %8330 = vmatprep.subr.mxu0 %v11427_v55  ;;  %8277 = vmatprep.mubr.msk.f32.mxu0 %vm1083_vm10, %v11407_v5  ;;  %v7839_v58 = vpop.f32.mrf.mxu0 }
 0x153   :  { %8331 = vmatpush3.msra.mxu0 %v10259_v27  ;;  %8345 = vmatprep.subr.mxu1 %v11427_v55  ;;  %v10405_v38 = vadd.f32 %v7883_v33, %v7839_v58 }
 0x154   :  { %8328 = vmatmul.mubr.msk.f32.gmra.mxu1 %vm1088_vm15, %v11407_v5  ;;  %8332 = vmatprep.subr.mxu0 %v11427_v55  ;;  %v10414_v36 = vpop.f32.mrf.mxu0 }
 0x155   :  { %8278 = vmatmul.mubr.msk.f32.gmra.mxu0 %vm1084_vm11, %v11407_v5  ;;  %8346 = vmatpush3.msra.mxu1 %v10394_v0  ;;  %v428_v57 = vadd.f32 %v10396_v21, %v10414_v36 }
 0x156   :  { %8280 = vmatprep.mubr.msk.f32.mxu0 %vm1085_vm12, %v11407_v5  ;;  %8333 = vmatpush3.msra.mxu0 %v10275_v47 }
 0x157   :  { %8334 = vmatprep.subr.mxu0 %v11427_v55  ;;  %8347 = vmatprep.subr.mxu1 %v11427_v55 }
 0x158   :  { %8335 = vmatpush3.msra.mxu0 %v10301_v8  ;;  %8348 = vmatpush3.msra.mxu1 %v10412_v61  ;;  %v7842_v50 = vpop.f32.mrf.mxu0 }
 0x159   :  { %8281 = vmatmul.mubr.msk.f32.gmra.mxu0 %vm1086_vm13, %v11407_v5  ;;  %8336 = vmatprep.subr.mxu0 %v11427_v55  ;;  %v10437_v41 = vadd.f32 %v7886_v44, %v7842_v50 }
 0x15a   :  { %8283 = vmatprep.mubr.msk.f32.mxu0 %vm1087_vm14, %v11407_v5  ;;  %8337 = vmatpush3.msra.mxu0 %v10317_v6  ;;  %v10444_v23 = vpop.f32.mrf.mxu0 }
 0x15b   :  { %8352 = vmatprep.subr.mxu0 %v11427_v55  ;;  %8349 = vmatprep.mubr.msk.f32.mxu1 %vm9053_vm0, %v11427_v55  ;;  %v440_v3 = vadd.f32 %v10435_v25, %v10444_v23 }
 0x15c   :  { %8363 = vmatprep.subr.mxu1 %v11427_v55  ;;  %8350 = vmatmul.mubr.f32.vlgmr.msra.gmra.mxu1 %v11427_v55 }
 0x15d   :  { %8284 = vmatmul.mubr.msk.f32.gmra.mxu0 %vm1088_vm15, %v11407_v5  ;;  %8364 = vmatpush3.msra.mxu1 %v10259_v27  ;;  %v7845_v32 = vpop.f32.mrf.mxu0  ;;  %v10486_v5 = vpop.f32.mrf.mxu1 }
 0x15e   :  { %8338 = vmatprep.mubr.msk.f32.mxu0 %vm9053_vm0, %v11427_v55  ;;  %8365 = vmatprep.subr.mxu1 %v11427_v55  ;;  %v10459_v29 = vadd.f32 %v7889_v40, %v7845_v32 }
 0x15f   :  { %8366 = vmatpush3.msra.mxu1 %v10275_v47  ;;  %8371 = vmatprep.mubr.msk.f32.mxu1 %vm9053_vm0, %v11427_v55  ;;  %v254_v1 = vpop.f32.mrf.mxu0 }
 0x160   :  { %8367 = vmatprep.subr.mxu1 %v11427_v55  ;;  %v452_v26 = vadd.f32 %v10486_v5, %v254_v1 }
 0x161   :  { %8339 = vmatmul.mubr.f32.vlgmr.msra.gmra.mxu0 %v11427_v55  ;;  %8368 = vmatpush3.msra.mxu1 %v10301_v8 }
 0x162   :  { %8353 = vmatpush3.msra.mxu0 %v10273_v35  ;;  %8360 = vmatprep.mubr.msk.f32.mxu0 %vm9053_vm0, %v11427_v55 }
 0x163   :  { %8354 = vmatprep.subr.mxu0 %v11427_v55  ;;  %8369 = vmatprep.subr.mxu1 %v11427_v55 }
 0x164   :  { %8355 = vmatpush3.msra.mxu0 %v10295_v60  ;;  %8370 = vmatpush3.msra.mxu1 %v10317_v6 }
 0x165   :  { %8356 = vmatprep.subr.mxu0 %v11427_v55  ;;  %8385 = vmatprep.subr.mxu1 %v11427_v55 }
 0x166   :  { %8357 = vmatpush3.msra.mxu0 %v10322_v46  ;;  %8372 = vmatmul.mubr.f32.vlgmr.msra.gmra.mxu1 %v11427_v55 }
 0x167   :  { %8358 = vmatprep.subr.mxu0 %v11427_v55  ;;  %8386 = vmatpush3.msra.mxu1 %v10259_v27 }
 0x168   :  { %8359 = vmatpush3.msra.mxu0 %v10338_v9  ;;  %8387 = vmatprep.subr.mxu1 %v11427_v55  ;;  %v7968_v45 = vpop.f32.mrf.mxu1 }
 0x169   :  { %8361 = vmatmul.mubr.f32.vlgmr.msra.gmra.mxu0 %v11427_v55  ;;  %8374 = vmatprep.subr.mxu0 %v11427_v55 }
 0x16a   :  { %8375 = vmatpush3.msra.mxu0 %v10292_v59  ;;  %8388 = vmatpush3.msra.mxu1 %v10275_v47  ;;  %v699_v37 = vpop.f32.mrf.mxu1 }
 0x16b   :  { %8376 = vmatprep.subr.mxu0 %v11427_v55  ;;  %8389 = vmatprep.subr.mxu1 %v11427_v55 }
 0x16c   :  { %8377 = vmatpush3.msra.mxu0 %v10313_v4  ;;  %8390 = vmatpush3.msra.mxu1 %v10301_v8 }
 0x16d   :  { %8378 = vmatprep.subr.mxu0 %v11427_v55  ;;  %8382 = vmatprep.mubr.msk.f32.mxu0 %vm9053_vm0, %v11427_v55  ;;  %v7971_v54 = vpop.f32.mrf.mxu1 }
 0x16e   :  { %8379 = vmatpush3.msra.mxu0 %v10346_v2  ;;  %8391 = vmatprep.subr.mxu1 %v11427_v55 }
 0x16f   :  { %8380 = vmatprep.subr.mxu0 %v11427_v55  ;;  %8392 = vmatpush3.msra.mxu1 %v10317_v6  ;;  %v715_v31 = vpop.f32.mrf.mxu1 }
 0x170   :  { %8381 = vmatpush3.msra.mxu0 %v10362_v42  ;;  %8393 = vmatprep.mubr.msk.f32.mxu1 %vm9053_vm0, %v11427_v55 }
 0x171   :  { %8383 = vmatmul.mubr.f32.vlgmr.msra.gmra.mxu0 %v11427_v55  ;;  %8394 = vmatmul.mubr.f32.vlgmr.msra.gmra.mxu1 %v11427_v55 }
 0x172   :  { %8407 = vmatprep.subr.mxu1 %v11427_v55  ;;  %8396 = vmatprep.subr.mxu0 %v11427_v55  ;;  %v7974_v20 = vpop.f32.mrf.mxu1 }
 0x173   :  { %v7924_v52 = vpop.f32.mrf.mxu0  ;;  %8408 = vmatpush3.msra.mxu1 %v10328_v13  ;;  %8415 = vmatprep.mubr.msk.f32.mxu1 %vm9053_vm0, %v11427_v55 }
 0x174   :  { %v569_v7 = vadd.f32 %v7924_v52, %v10371_v10  ;;  %8409 = vmatprep.subr.mxu1 %v11427_v55  ;;  %8397 = vmatpush3.msra.mxu0 %v10259_v27  ;;  %v731_v39 = vpop.f32.mrf.mxu1 }
 0x175   :  { %v561_v49 = vpop.f32.mrf.mxu0  ;;  %8410 = vmatpush3.msra.mxu1 %v10352_v11  ;;  %8398 = vmatprep.subr.mxu0 %v11427_v55 }
 0x176   :  { %v562_v14 = vadd.f32 %v561_v49, %v416_v43  ;;  %v708_v15 = vadd.f32 %v7968_v45, %v569_v7  ;;  %8411 = vmatprep.subr.mxu1 %v11427_v55  ;;  %8399 = vmatpush3.msra.mxu0 %v10275_v47 }
 0x177   :  { %8412 = vmatpush3.msra.mxu1 %v10394_v0  ;;  %8400 = vmatprep.subr.mxu0 %v11427_v55 }
 0x178   :  { %v700_v48 = vadd.f32 %v699_v37, %v562_v14  ;;  %8413 = vmatprep.subr.mxu1 %v11427_v55  ;;  %8401 = vmatpush3.msra.mxu0 %v10301_v8  ;;  %v7977_v19 = vpop.f32.mrf.mxu1 }
 0x179   :  { %v7927_v28 = vpop.f32.mrf.mxu0  ;;  %8414 = vmatpush3.msra.mxu1 %v10412_v61  ;;  %8402 = vmatprep.subr.mxu0 %v11427_v55 }
 0x17a   :  { %v583_v62 = vadd.f32 %v7927_v28, %v10405_v38  ;;  %8429 = vmatprep.subr.mxu1 %v11427_v55  ;;  %8403 = vmatpush3.msra.mxu0 %v10317_v6  ;;  %v747_v58 = vpop.f32.mrf.mxu1 }
 0x17b   :  { %v575_v18 = vpop.f32.mrf.mxu0  ;;  %8404 = vmatprep.mubr.msk.f32.mxu0 %vm9053_vm0, %v11427_v55  ;;  %8418 = vmatprep.subr.mxu0 %v11427_v55 }
 0x17c   :  { %v576_v22 = vadd.f32 %v575_v18, %v428_v57  ;;  %v724_v30 = vadd.f32 %v7971_v54, %v583_v62 }
 0x17e   :  { %v716_v16 = vadd.f32 %v715_v31, %v576_v22 }
 0x17f   :  { %v7930_v53 = vpop.f32.mrf.mxu0 }
 0x180   :  { %v597_v51 = vadd.f32 %v7930_v53, %v10437_v41 }
 0x181   :  { %v589_v63 = vpop.f32.mrf.mxu0 }
 0x182   :  { %v590_v12 = vadd.f32 %v589_v63, %v440_v3  ;;  %v740_v17 = vadd.f32 %v7974_v20, %v597_v51 }
 0x184   :  { %v7933_v33 = vpop.f32.mrf.mxu0  ;;  %v732_v10 = vadd.f32 %v731_v39, %v590_v12 }
 0x185   :  { %v611_v34 = vadd.f32 %v7933_v33, %v10459_v29 }
 0x186   :  { %v603_v56 = vpop.f32.mrf.mxu0 }
 0x187   :  { %v604_v24 = vadd.f32 %v603_v56, %v452_v26  ;;  %v756_v21 = vadd.f32 %v7977_v19, %v611_v34 }
 0x189   :  { %v748_v38 = vadd.f32 %v747_v58, %v604_v24 }
 0x190   :  { %v8056_v36 = vpop.f32.mrf.mxu1 }
 0x192   :  { %v1003_v44 = vpop.f32.mrf.mxu1 }
 0x195   :  { %v8059_v25 = vpop.f32.mrf.mxu1 }
 0x197   :  { %v1015_v45 = vpop.f32.mrf.mxu1 }
 0x19a   :  { %v8062_v52 = vpop.f32.mrf.mxu1 }
 0x19b   :  { %v8012_v50 = vpop.f32.mrf.mxu0 }
 0x19c   :  { %v881_v41 = vadd.f32 %v8012_v50, %v708_v15  ;;  %v1027_v14 = vpop.f32.mrf.mxu1 }
 0x19d   :  { %v874_v23 = vpop.f32.mrf.mxu0 }
 0x19e   :  { %v10537_v40 = vadd.f32 %v8056_v36, %v881_v41  ;;  %v875_v32 = vadd.f32 %v874_v23, %v700_v48 }
 0x1a0   :  { %v10539_v37 = vadd.f32 %v1003_v44, %v875_v32  ;;  %v8065_v48 = vpop.f32.mrf.mxu1 }
 0x1a1   :  { %v8015_v5 = vpop.f32.mrf.mxu0 }
 0x1a2   :  { %v893_v1 = vadd.f32 %v8015_v5, %v724_v30  ;;  %v1039_v3 = vpop.f32.mrf.mxu1 }
 0x1a3   :  { %v886_v29 = vpop.f32.mrf.mxu0 }
 0x1a4   :  { %v10541_v43 = vadd.f32 %v8059_v25, %v893_v1  ;;  %v887_v54 = vadd.f32 %v886_v29, %v716_v16 }
 0x1a6   :  { %v10543_v7 = vadd.f32 %v1015_v45, %v887_v54 }
 0x1a7   :  { %v8018_v49 = vpop.f32.mrf.mxu0 }
 0x1a8   :  { %v905_v31 = vadd.f32 %v8018_v49, %v740_v17 }
 0x1a9   :  { %v898_v15 = vpop.f32.mrf.mxu0 }
 0x1aa   :  { %v10545_v28 = vadd.f32 %v8062_v52, %v905_v31  ;;  %v899_v57 = vadd.f32 %v898_v15, %v732_v10 }
 0x1ac   :  { %v10547_v62 = vadd.f32 %v1027_v14, %v899_v57  ;;  %v8021_v18 = vpop.f32.mrf.mxu0 }
 0x1ad   :  { %v917_v20 = vadd.f32 %v8021_v18, %v756_v21 }
 0x1ae   :  { %v910_v22 = vpop.f32.mrf.mxu0 }
 0x1af   :  { %v10549_v30 = vadd.f32 %v8065_v48, %v917_v20  ;;  %v911_v53 = vadd.f32 %v910_v22, %v748_v38 }
 0x1b1   :  { %v10551_v16 = vadd.f32 %v1039_v3, %v911_v53 }
 0x1b8   :  { %v8144_v39 = vpop.f32.mrf.mxu1 }
 0x1ba   :  { %v1429_v51 = vpop.f32.mrf.mxu1 }
 0x1bd   :  { %v8147_v63 = vpop.f32.mrf.mxu1 }
 0x1bf   :  { %v1441_v33 = vpop.f32.mrf.mxu1 }
 0x1c2   :  { %v8150_v34 = vpop.f32.mrf.mxu1 }
 0x1c3   :  { %v8100_v12 = vpop.f32.mrf.mxu0 }
 0x1c4   :  { %v1436_v17 = vadd.f32 %v8144_v39, %v8100_v12  ;;  %v1453_v58 = vpop.f32.mrf.mxu1 }
 0x1c5   :  { %v1208_v19 = vpop.f32.mrf.mxu0 }
 0x1c6   :  { %v1430_v10 = vadd.f32 %v1429_v51, %v1208_v19 }
 0x1c8   :  { %v8153_v50 = vpop.f32.mrf.mxu1 }
 0x1c9   :  { %v8103_v26 = vpop.f32.mrf.mxu0 }
 0x1ca   :  { %v1448_v56 = vadd.f32 %v8147_v63, %v8103_v26  ;;  %v1465_v32 = vpop.f32.mrf.mxu1 }
 0x1cb   :  { %v1228_v24 = vpop.f32.mrf.mxu0 }
 0x1cc   :  { %v1442_v21 = vadd.f32 %v1441_v33, %v1228_v24 }
 0x1cf   :  { %v8106_v36 = vpop.f32.mrf.mxu0 }
 0x1d0   :  { %v1460_v44 = vadd.f32 %v8150_v34, %v8106_v36 }
 0x1d1   :  { %v1248_v38 = vpop.f32.mrf.mxu0 }
 0x1d2   :  { %v1454_v25 = vadd.f32 %v1453_v58, %v1248_v38 }
 0x1d4   :  { %v8109_v41 = vpop.f32.mrf.mxu0 }
 0x1d5   :  { %v1472_v23 = vadd.f32 %v8153_v50, %v8109_v41 }
 0x1d6   :  { %v1268_v45 = vpop.f32.mrf.mxu0 }
 0x1d7   :  { %v1466_v5 = vadd.f32 %v1465_v32, %v1268_v45 }
 0x1e0   :  { %v8232_v1 = vpop.f32.mrf.mxu1 }
 0x1e2   :  { %v1713_v29 = vpop.f32.mrf.mxu1 }
 0x1e5   :  { %v8235_v54 = vpop.f32.mrf.mxu1 }
 0x1e7   :  { %v1729_v57 = vpop.f32.mrf.mxu1 }
 0x1ea   :  { %v8238_v53 = vpop.f32.mrf.mxu1 }
 0x1eb   :  { %v8188_v52 = vpop.f32.mrf.mxu0 }
 0x1ec   :  { %v1583_v49 = vadd.f32 %v8188_v52, %v1436_v17  ;;  %v1745_v12 = vpop.f32.mrf.mxu1 }
 0x1ed   :  { %v1575_v14 = vpop.f32.mrf.mxu0 }
 0x1ee   :  { %v1576_v31 = vadd.f32 %v1575_v14, %v1430_v10  ;;  %v1722_v15 = vadd.f32 %v8232_v1, %v1583_v49 }
 0x1f0   :  { %v1714_v48 = vadd.f32 %v1713_v29, %v1576_v31  ;;  %v8241_v24 = vpop.f32.mrf.mxu1 }
 0x1f1   :  { %v8191_v18 = vpop.f32.mrf.mxu0 }
 0x1f2   :  { %v1597_v20 = vadd.f32 %v8191_v18, %v1448_v56  ;;  %v1761_v41 = vpop.f32.mrf.mxu1 }
 0x1f3   :  { %v1589_v22 = vpop.f32.mrf.mxu0 }
 0x1f4   :  { %v1590_v3 = vadd.f32 %v1589_v22, %v1442_v21  ;;  %v1738_v39 = vadd.f32 %v8235_v54, %v1597_v20 }
 0x1f6   :  { %v1730_v51 = vadd.f32 %v1729_v57, %v1590_v3 }
 0x1f7   :  { %v8194_v63 = vpop.f32.mrf.mxu0 }
 0x1f8   :  { %v1611_v19 = vadd.f32 %v8194_v63, %v1460_v44 }
 0x1f9   :  { %v1603_v33 = vpop.f32.mrf.mxu0 }
 0x1fa   :  { %v1604_v26 = vadd.f32 %v1603_v33, %v1454_v25  ;;  %v1754_v34 = vadd.f32 %v8238_v53, %v1611_v19 }
 0x1fc   :  { %v8197_v17 = vpop.f32.mrf.mxu0  ;;  %v1746_v58 = vadd.f32 %v1745_v12, %v1604_v26 }
 0x1fd   :  { %v1625_v10 = vadd.f32 %v8197_v17, %v1472_v23 }
 0x1fe   :  { %v1617_v36 = vpop.f32.mrf.mxu0 }
 0x1ff   :  { %v1618_v38 = vadd.f32 %v1617_v36, %v1466_v5  ;;  %v1770_v50 = vadd.f32 %v8241_v24, %v1625_v10 }
 0x201   :  { %v1762_v56 = vadd.f32 %v1761_v41, %v1618_v38 }
 0x208   :  { %v8320_v32 = vpop.f32.mrf.mxu1 }
 0x20a   :  { %v2017_v45 = vpop.f32.mrf.mxu1 }
 0x20c   :  { %v8323_v21 = vpop.f32.mrf.mxu1 }
 0x20e   :  { %v2029_v1 = vpop.f32.mrf.mxu1 }
 0x210   :  { %v8326_v29 = vpop.f32.mrf.mxu1 }
 0x211   :  { %v8276_v52 = vpop.f32.mrf.mxu0 }
 0x212   :  { %v1895_v54 = vadd.f32 %v8276_v52, %v1722_v15  ;;  %v2041_v44 = vpop.f32.mrf.mxu1 }
 0x213   :  { %v1888_v49 = vpop.f32.mrf.mxu0 }
 0x214   :  { %v1889_v25 = vadd.f32 %v1888_v49, %v1714_v48  ;;  %v10553_v14 = vadd.f32 %v8320_v32, %v1895_v54  ;;  %v8329_v57 = vpop.f32.mrf.mxu1 }
 0x215   :  { %v8279_v31 = vpop.f32.mrf.mxu0 }
 0x216   :  { %v1907_v23 = vadd.f32 %v8279_v31, %v1738_v39  ;;  %v10555_v18 = vadd.f32 %v2017_v45, %v1889_v25  ;;  %v2053_v3 = vpop.f32.mrf.mxu1 }
 0x217   :  { %v1900_v5 = vpop.f32.mrf.mxu0 }
 0x218   :  { %v1901_v20 = vadd.f32 %v1900_v5, %v1730_v51  ;;  %v10557_v22 = vadd.f32 %v8323_v21, %v1907_v23 }
 0x219   :  { %v8282_v53 = vpop.f32.mrf.mxu0 }
 0x21a   :  { %v1919_v63 = vadd.f32 %v8282_v53, %v1754_v34  ;;  %v10559_v12 = vadd.f32 %v2029_v1, %v1901_v20 }
 0x21b   :  { %v1912_v15 = vpop.f32.mrf.mxu0 }
 0x21c   :  { %v1913_v19 = vadd.f32 %v1912_v15, %v1746_v58  ;;  %v2237_v33 = vpop.f32.mrf.mxu1  ;;  %v10561_v48 = vadd.f32 %v8326_v29, %v1919_v63 }
 0x21d   :  { %v8285_v26 = vpop.f32.mrf.mxu0 }
 0x21e   :  { %v1931_v24 = vadd.f32 %v8285_v26, %v1770_v50  ;;  %v8351_v17 = vpop.f32.mrf.mxu1  ;;  %v10563_v39 = vadd.f32 %v2041_v44, %v1913_v19 }
 0x21f   :  { %v1924_v10 = vpop.f32.mrf.mxu0 }
 0x220   :  { %v1925_v36 = vadd.f32 %v1924_v10, %v1762_v56  ;;  %v10565_v51 = vadd.f32 %v8329_v57, %v1931_v24 }
 0x221   :  { %v2146_v38 = vpop.f32.mrf.mxu0 }
 0x222   :  { %v10567_v41 = vadd.f32 %v2053_v3, %v1925_v36  ;;  %v2238_v58 = vadd.f32 %v2237_v33, %v2146_v38 }
 0x223   :  { %v8340_v34 = vpop.f32.mrf.mxu0 }
 0x226   :  { %v2394_v32 = vpop.f32.mrf.mxu1 }
 0x228   :  { %v8373_v45 = vpop.f32.mrf.mxu1 }
 0x229   :  { %v2317_v21 = vpop.f32.mrf.mxu0 }
 0x22a   :  { %v2318_v29 = vadd.f32 %v2317_v21, %v2238_v58 }
 0x22b   :  { %v8362_v1 = vpop.f32.mrf.mxu0 }
 0x22c   :  { %v2395_v52 = vadd.f32 %v2394_v32, %v2318_v29 }
 0x231   :  { %v2477_v54 = vpop.f32.mrf.mxu0  ;;  %v2552_v50 = vpop.f32.mrf.mxu1 }
 0x232   :  { %v2478_v49 = vadd.f32 %v2477_v54, %v2395_v52 }
 0x233   :  { %v8384_v44 = vpop.f32.mrf.mxu0  ;;  %v8395_v25 = vpop.f32.mrf.mxu1 }
 0x234   :  { %v2553_v31 = vadd.f32 %v2552_v50, %v2478_v49 }
 0x236   :  { %v2556_v56 = vadd.f32 %v2553_v31, %v10539_v37 }
 0x238   :  { %8986 = vtanh.f32 %v2556_v56 }
 0x245   :  { %v8987_v57 = vpop.eup %8986 }
 0x246   :  { %2562 = vrot.lane.b32.xlu0 %v8987_v57, %s9054_s4  ;;  %v2558_v23 = vmul.f32 0.5, %v8987_v57 }
 0x248   :  { %v2559_v5 = vadd.f32 0.5, %v2558_v23 }
 0x24a   :  { %v2560_v3 = vmul.f32 0.0, %v2559_v5 }
 0x2b8   :  { %v2563_v20 = vpop.permute.xlu0 %2562 }
 0x2b9   :  { %v2565_v53 = vmul.f32 %v2563_v20, %v2559_v5 }
 0x2bb   :  { %2567 = vrot.lane.b32.xlu1 %v2565_v53, %s9055_s20 }
 0x32d   :  { %v2568_v63 = vpop.permute.xlu1 %2567 }
 0x32e   :  { %v10572_v15 = vadd.f32 %v2568_v63, %v2560_v3 }
 0x330   :  { %8988 = vtanh.f32 %v10572_v15 }
 0x33d   :  { %v8989_v19 = vpop.eup %8988 }
 0x33e   :  { %2573 = vrot.lane.b32.xlu0 %v8989_v19, %s9054_s4 }
 0x3b0   :  { %v2574_v37 = vpop.permute.xlu0 %2573 }
 0x3b1   :  { %v2576_v33 = vmul.f32 %v2574_v37, %v2559_v5 }
 0x3b3   :  { %2578 = vrot.lane.b32.xlu1 %v2576_v33, %s9055_s20 }
 0x425   :  { %v2579_v26 = vpop.permute.xlu1 %2578 }
 0x426   :  { %2581 = vst.msk [vmem:[#allocation2] sm:$0xff] %vm2067_vm1, %v2579_v26  ;;  %v2582_v24 = vsel %vm2067_vm1, %v2579_v26, 0 }
 0x427   :  { %v2653_v17 = vand.u32 4294901760, %v2582_v24 }
 0x429   :  { %v2654_v10 = vsub.f32 %v2582_v24, %v2653_v17  ;;  %8416 = vmatmul.mubr.f32.vlgmr.msra.gmra.mxu1 %v2653_v17 }
 0x42a   :  { %8430 = vmatpush3.msra.mxu1 %v10259_v27  ;;  %8437 = vmatprep.mubr.msk.f32.mxu1 %vm9053_vm0, %v11427_v55 }
 0x42b   :  { %v2655_v36 = vand.u32 4294901760, %v2654_v10  ;;  %8431 = vmatprep.subr.mxu1 %v11427_v55 }
 0x42c   :  { %8432 = vmatpush3.msra.mxu1 %v10275_v47 }
 0x42d   :  { %v2656_v38 = vsub.f32 %v2654_v10, %v2655_v36  ;;  %8433 = vmatprep.subr.mxu1 %v11427_v55 }
 0x42e   :  { %8434 = vmatpush3.msra.mxu1 %v10301_v8 }
 0x42f   :  { %8435 = vmatprep.subr.mxu1 %v11427_v55  ;;  %v2657_v34 = vand.u32 4294901760, %v2656_v38 }
 0x430   :  { %8436 = vmatpush3.msra.mxu1 %v10317_v6 }
 0x431   :  { %8438 = vmatmul.mubr.f32.vlgmr.msra.gmra.mxu1 %v2655_v36  ;;  %8451 = vmatprep.subr.mxu1 %v11427_v55 }
 0x432   :  { %8405 = vmatmul.mubr.f32.vlgmr.msra.gmra.mxu0 %v2657_v34  ;;  %8452 = vmatpush3.msra.mxu1 %v10259_v27 }
 0x433   :  { %8419 = vmatpush3.msra.mxu0 %v10273_v35  ;;  %8453 = vmatprep.subr.mxu1 %v11427_v55 }
 0x434   :  { %8420 = vmatprep.subr.mxu0 %v11427_v55  ;;  %8454 = vmatpush3.msra.mxu1 %v10275_v47 }
 0x435   :  { %8421 = vmatpush3.msra.mxu0 %v10295_v60  ;;  %8455 = vmatprep.subr.mxu1 %v11427_v55 }
 0x436   :  { %8422 = vmatprep.subr.mxu0 %v11427_v55  ;;  %8456 = vmatpush3.msra.mxu1 %v10301_v8 }
 0x437   :  { %8423 = vmatpush3.msra.mxu0 %v10322_v46  ;;  %8457 = vmatprep.subr.mxu1 %v11427_v55 }
 0x438   :  { %8424 = vmatprep.subr.mxu0 %v11427_v55  ;;  %8426 = vmatprep.mubr.msk.f32.mxu0 %vm9053_vm0, %v11427_v55 }
 0x439   :  { %8425 = vmatpush3.msra.mxu0 %v10338_v9  ;;  %8458 = vmatpush3.msra.mxu1 %v10317_v6 }
 0x43a   :  { %8459 = vmatprep.mubr.msk.f32.mxu1 %vm9053_vm0, %v11427_v55  ;;  %8427 = vmatmul.mubr.f32.vlgmr.msra.gmra.mxu0 %v2654_v10 }
 0x43b   :  { %8440 = vmatprep.subr.mxu0 %v11427_v55  ;;  %8460 = vmatmul.mubr.f32.vlgmr.msra.gmra.mxu1 %v2653_v17 }
 0x43c   :  { %8441 = vmatpush3.msra.mxu0 %v10292_v59  ;;  %8448 = vmatprep.mubr.msk.f32.mxu0 %vm9053_vm0, %v11427_v55 }
 0x43d   :  { %8442 = vmatprep.subr.mxu0 %v11427_v55  ;;  %8473 = vmatprep.subr.mxu1 %v11427_v55 }
 0x43e   :  { %8443 = vmatpush3.msra.mxu0 %v10313_v4  ;;  %8474 = vmatpush3.msra.mxu1 %v10328_v13 }
 0x43f   :  { %8444 = vmatprep.subr.mxu0 %v11427_v55  ;;  %8475 = vmatprep.subr.mxu1 %v11427_v55 }
 0x440   :  { %8445 = vmatpush3.msra.mxu0 %v10346_v2  ;;  %8476 = vmatpush3.msra.mxu1 %v10352_v11 }
 0x441   :  { %8446 = vmatprep.subr.mxu0 %v11427_v55  ;;  %8477 = vmatprep.subr.mxu1 %v11427_v55 }
 0x442   :  { %8447 = vmatpush3.msra.mxu0 %v10362_v42  ;;  %8478 = vmatpush3.msra.mxu1 %v10394_v0 }
 0x443   :  { %8449 = vmatmul.mubr.f32.vlgmr.msra.gmra.mxu0 %v2653_v17  ;;  %8479 = vmatprep.subr.mxu1 %v11427_v55 }
 0x444   :  { %8480 = vmatpush3.msra.mxu1 %v10412_v61  ;;  %8462 = vmatprep.subr.mxu0 %v11427_v55 }
 0x445   :  { %8481 = vmatprep.mubr.msk.f32.mxu1 %vm9053_vm0, %v11427_v55  ;;  %8495 = vmatprep.subr.mxu1 %v11427_v55 }
 0x446   :  { %8463 = vmatpush3.msra.mxu0 %v10259_v27  ;;  %8470 = vmatprep.mubr.msk.f32.mxu0 %vm9053_vm0, %v11427_v55 }
 0x447   :  { %8464 = vmatprep.subr.mxu0 %v11427_v55 }
 0x448   :  { %8465 = vmatpush3.msra.mxu0 %v10275_v47 }
 0x449   :  { %8466 = vmatprep.subr.mxu0 %v11427_v55 }
 0x44a   :  { %8467 = vmatpush3.msra.mxu0 %v10301_v8 }
 0x44b   :  { %8468 = vmatprep.subr.mxu0 %v11427_v55 }
 0x44c   :  { %8469 = vmatpush3.msra.mxu0 %v10317_v6 }
 0x44d   :  { %8484 = vmatprep.subr.mxu0 %v11427_v55 }
 0x4e9   :  { %v2750_v32 = vpop.f32.mrf.mxu1 }
 0x4eb   :  { %v8417_v45 = vpop.f32.mrf.mxu1 }
 0x4f1   :  { %v2907_v21 = vpop.f32.mrf.mxu1 }
 0x4f2   :  { %v2659_v58 = vpop.f32.mrf.mxu0 }
 0x4f3   :  { %v8439_v1 = vpop.f32.mrf.mxu1  ;;  %v2751_v50 = vadd.f32 %v2750_v32, %v2659_v58 }
 0x4f4   :  { %v8406_v29 = vpop.f32.mrf.mxu0 }
 0x4fa   :  { %v2830_v52 = vpop.f32.mrf.mxu0 }
 0x4fb   :  { %v3065_v54 = vpop.f32.mrf.mxu1  ;;  %v2831_v25 = vadd.f32 %v2830_v52, %v2751_v50 }
 0x4fc   :  { %v8428_v49 = vpop.f32.mrf.mxu0 }
 0x4fd   :  { %v8461_v44 = vpop.f32.mrf.mxu1  ;;  %v2908_v31 = vadd.f32 %v2907_v21, %v2831_v25 }
 0x503   :  { %v2990_v56 = vpop.f32.mrf.mxu0 }
 0x504   :  { %v2991_v57 = vadd.f32 %v2990_v56, %v2908_v31 }
 0x505   :  { %v8450_v23 = vpop.f32.mrf.mxu0 }
 0x506   :  { %v3066_v5 = vadd.f32 %v3065_v54, %v2991_v57 }
 0x508   :  { %v3069_v20 = vadd.f32 %v3066_v5, %v10537_v40 }
 0x50a   :  { %8990 = vtanh.f32 %v3069_v20 }
 0x517   :  { %v8991_v53 = vpop.eup %8990 }
 0x518   :  { %3075 = vrot.lane.b32.xlu0 %v8991_v53, %s9054_s4  ;;  %v3071_v3 = vmul.f32 0.5, %v8991_v53 }
 0x51a   :  { %v3072_v63 = vadd.f32 0.5, %v3071_v3 }
 0x51c   :  { %v3073_v33 = vmul.f32 %v3072_v63, %v10572_v15 }
 0x58a   :  { %v3076_v19 = vpop.permute.xlu0 %3075 }
 0x58b   :  { %v3078_v37 = vmul.f32 %v3076_v19, %v3072_v63 }
 0x58d   :  { %3080 = vrot.lane.b32.xlu1 %v3078_v37, %s9055_s20 }
 0x5ff   :  { %v3081_v26 = vpop.permute.xlu1 %3080 }
 0x600   :  { %v10643_v24 = vadd.f32 %v3081_v26, %v3073_v33 }
 0x602   :  { %8992 = vtanh.f32 %v10643_v24 }
 0x60f   :  { %v8993_v17 = vpop.eup %8992 }
 0x610   :  { %3086 = vrot.lane.b32.xlu0 %v8993_v17, %s9054_s4 }
 0x682   :  { %v3087_v40 = vpop.permute.xlu0 %3086 }
 0x683   :  { %v3089_v10 = vmul.f32 %v3087_v40, %v3072_v63 }
 0x685   :  { %3091 = vrot.lane.b32.xlu1 %v3089_v10, %s9055_s20 }
 0x6f7   :  { %v3092_v36 = vpop.permute.xlu1 %3091 }
 0x6f8   :  { %3094 = vst.msk [vmem:[#allocation2 + $0x8] sm:$0xff] %vm2067_vm1, %v3092_v36  ;;  %v3095_v38 = vsel %vm2067_vm1, %v3092_v36, 0 }
 0x6f9   :  { %v3166_v34 = vand.u32 4294901760, %v3095_v38 }
 0x6fb   :  { %v3167_v32 = vsub.f32 %v3095_v38, %v3166_v34  ;;  %8482 = vmatmul.mubr.f32.vlgmr.msra.gmra.mxu1 %v3166_v34 }
 0x6fc   :  { %8496 = vmatpush3.msra.mxu1 %v10259_v27  ;;  %8503 = vmatprep.mubr.msk.f32.mxu1 %vm9053_vm0, %v11427_v55 }
 0x6fd   :  { %v3168_v15 = vand.u32 4294901760, %v3167_v32  ;;  %8497 = vmatprep.subr.mxu1 %v11427_v55 }
 0x6fe   :  { %8498 = vmatpush3.msra.mxu1 %v10275_v47 }
 0x6ff   :  { %v3169_v45 = vsub.f32 %v3167_v32, %v3168_v15  ;;  %8499 = vmatprep.subr.mxu1 %v11427_v55 }
 0x700   :  { %8500 = vmatpush3.msra.mxu1 %v10301_v8 }
 0x701   :  { %8501 = vmatprep.subr.mxu1 %v11427_v55  ;;  %v3170_v21 = vand.u32 4294901760, %v3169_v45 }
 0x702   :  { %8502 = vmatpush3.msra.mxu1 %v10317_v6 }
 0x703   :  { %8504 = vmatmul.mubr.f32.vlgmr.msra.gmra.mxu1 %v3168_v15  ;;  %8517 = vmatprep.subr.mxu1 %v11427_v55 }
 0x704   :  { %8471 = vmatmul.mubr.f32.vlgmr.msra.gmra.mxu0 %v3170_v21  ;;  %8518 = vmatpush3.msra.mxu1 %v10259_v27 }
 0x705   :  { %8485 = vmatpush3.msra.mxu0 %v10273_v35  ;;  %8519 = vmatprep.subr.mxu1 %v11427_v55 }
 0x706   :  { %8486 = vmatprep.subr.mxu0 %v11427_v55  ;;  %8520 = vmatpush3.msra.mxu1 %v10275_v47 }
 0x707   :  { %8487 = vmatpush3.msra.mxu0 %v10295_v60  ;;  %8521 = vmatprep.subr.mxu1 %v11427_v55 }
 0x708   :  { %8488 = vmatprep.subr.mxu0 %v11427_v55  ;;  %8522 = vmatpush3.msra.mxu1 %v10301_v8 }
 0x709   :  { %8489 = vmatpush3.msra.mxu0 %v10322_v46  ;;  %8523 = vmatprep.subr.mxu1 %v11427_v55 }
 0x70a   :  { %8490 = vmatprep.subr.mxu0 %v11427_v55  ;;  %8492 = vmatprep.mubr.msk.f32.mxu0 %vm9053_vm0, %v11427_v55 }
 0x70b   :  { %8491 = vmatpush3.msra.mxu0 %v10338_v9  ;;  %8524 = vmatpush3.msra.mxu1 %v10317_v6 }
 0x70c   :  { %8525 = vmatprep.mubr.msk.f32.mxu1 %vm9053_vm0, %v11427_v55  ;;  %8493 = vmatmul.mubr.f32.vlgmr.msra.gmra.mxu0 %v3167_v32 }
 0x70d   :  { %8506 = vmatprep.subr.mxu0 %v11427_v55  ;;  %8526 = vmatmul.mubr.f32.vlgmr.msra.gmra.mxu1 %v3166_v34 }
 0x70e   :  { %8507 = vmatpush3.msra.mxu0 %v10292_v59  ;;  %8514 = vmatprep.mubr.msk.f32.mxu0 %vm9053_vm0, %v11427_v55 }
 0x70f   :  { %8508 = vmatprep.subr.mxu0 %v11427_v55  ;;  %8539 = vmatprep.subr.mxu1 %v11427_v55 }
 0x710   :  { %8509 = vmatpush3.msra.mxu0 %v10313_v4  ;;  %8540 = vmatpush3.msra.mxu1 %v10328_v13 }
 0x711   :  { %8510 = vmatprep.subr.mxu0 %v11427_v55  ;;  %8541 = vmatprep.subr.mxu1 %v11427_v55 }
 0x712   :  { %8511 = vmatpush3.msra.mxu0 %v10346_v2  ;;  %8542 = vmatpush3.msra.mxu1 %v10352_v11 }
 0x713   :  { %8512 = vmatprep.subr.mxu0 %v11427_v55  ;;  %8543 = vmatprep.subr.mxu1 %v11427_v55 }
 0x714   :  { %8513 = vmatpush3.msra.mxu0 %v10362_v42  ;;  %8544 = vmatpush3.msra.mxu1 %v10394_v0 }
 0x715   :  { %8515 = vmatmul.mubr.f32.vlgmr.msra.gmra.mxu0 %v3166_v34  ;;  %8545 = vmatprep.subr.mxu1 %v11427_v55 }
 0x716   :  { %8546 = vmatpush3.msra.mxu1 %v10412_v61  ;;  %8528 = vmatprep.subr.mxu0 %v11427_v55 }
 0x717   :  { %8547 = vmatprep.mubr.msk.f32.mxu1 %vm9053_vm0, %v11427_v55  ;;  %8561 = vmatprep.subr.mxu1 %v11427_v55 }
 0x718   :  { %8529 = vmatpush3.msra.mxu0 %v10259_v27  ;;  %8536 = vmatprep.mubr.msk.f32.mxu0 %vm9053_vm0, %v11427_v55 }
 0x719   :  { %8530 = vmatprep.subr.mxu0 %v11427_v55 }
 0x71a   :  { %8531 = vmatpush3.msra.mxu0 %v10275_v47 }
 0x71b   :  { %8532 = vmatprep.subr.mxu0 %v11427_v55 }
 0x71c   :  { %8533 = vmatpush3.msra.mxu0 %v10301_v8 }
 0x71d   :  { %8534 = vmatprep.subr.mxu0 %v11427_v55 }
 0x71e   :  { %8535 = vmatpush3.msra.mxu0 %v10317_v6 }
 0x71f   :  { %8550 = vmatprep.subr.mxu0 %v11427_v55 }
 0x7bb   :  { %v3263_v58 = vpop.f32.mrf.mxu1 }
 0x7bd   :  { %v8483_v1 = vpop.f32.mrf.mxu1 }
 0x7c3   :  { %v3420_v29 = vpop.f32.mrf.mxu1 }
 0x7c4   :  { %v3172_v52 = vpop.f32.mrf.mxu0 }
 0x7c5   :  { %v8505_v54 = vpop.f32.mrf.mxu1  ;;  %v3264_v25 = vadd.f32 %v3263_v58, %v3172_v52 }
 0x7c6   :  { %v8472_v50 = vpop.f32.mrf.mxu0 }
 0x7cc   :  { %v3343_v49 = vpop.f32.mrf.mxu0 }
 0x7cd   :  { %v3578_v44 = vpop.f32.mrf.mxu1  ;;  %v3344_v57 = vadd.f32 %v3343_v49, %v3264_v25 }
 0x7ce   :  { %v8494_v31 = vpop.f32.mrf.mxu0 }
 0x7cf   :  { %v8527_v56 = vpop.f32.mrf.mxu1  ;;  %v3421_v23 = vadd.f32 %v3420_v29, %v3344_v57 }
 0x7d5   :  { %v3503_v5 = vpop.f32.mrf.mxu0 }
 0x7d6   :  { %v3504_v20 = vadd.f32 %v3503_v5, %v3421_v23 }
 0x7d7   :  { %v8516_v53 = vpop.f32.mrf.mxu0 }
 0x7d8   :  { %v3579_v3 = vadd.f32 %v3578_v44, %v3504_v20 }
 0x7da   :  { %v3582_v63 = vadd.f32 %v3579_v3, %v10543_v7 }
 0x7dc   :  { %8994 = vtanh.f32 %v3582_v63 }
 0x7e9   :  { %v8995_v19 = vpop.eup %8994 }
 0x7ea   :  { %3588 = vrot.lane.b32.xlu0 %v8995_v19, %s9054_s4  ;;  %v3584_v37 = vmul.f32 0.5, %v8995_v19 }
 0x7ec   :  { %v3585_v33 = vadd.f32 0.5, %v3584_v37 }
 0x7ee   :  { %v3586_v40 = vmul.f32 %v3585_v33, %v10643_v24 }
 0x85c   :  { %v3589_v26 = vpop.permute.xlu0 %3588 }
 0x85d   :  { %v3591_v17 = vmul.f32 %v3589_v26, %v3585_v33 }
 0x85f   :  { %3593 = vrot.lane.b32.xlu1 %v3591_v17, %s9055_s20 }
 0x8d1   :  { %v3594_v10 = vpop.permute.xlu1 %3593 }
 0x8d2   :  { %v10714_v36 = vadd.f32 %v3594_v10, %v3586_v40 }
 0x8d4   :  { %8996 = vtanh.f32 %v10714_v36 }
 0x8e1   :  { %v8997_v38 = vpop.eup %8996 }
 0x8e2   :  { %3599 = vrot.lane.b32.xlu0 %v8997_v38, %s9054_s4 }
 0x954   :  { %v3600_v7 = vpop.permute.xlu0 %3599 }
 0x955   :  { %v3602_v34 = vmul.f32 %v3600_v7, %v3585_v33 }
 0x957   :  { %3604 = vrot.lane.b32.xlu1 %v3602_v34, %s9055_s20 }
 0x9c9   :  { %v3605_v32 = vpop.permute.xlu1 %3604 }
 0x9ca   :  { %3607 = vst.msk [vmem:[#allocation2 + $0x10] sm:$0xff] %vm2067_vm1, %v3605_v32  ;;  %v3608_v15 = vsel %vm2067_vm1, %v3605_v32, 0 }
 0x9cb   :  { %v3679_v45 = vand.u32 4294901760, %v3608_v15 }
 0x9cd   :  { %v3680_v21 = vsub.f32 %v3608_v15, %v3679_v45  ;;  %8548 = vmatmul.mubr.f32.vlgmr.msra.gmra.mxu1 %v3679_v45 }
 0x9ce   :  { %8562 = vmatpush3.msra.mxu1 %v10259_v27  ;;  %8569 = vmatprep.mubr.msk.f32.mxu1 %vm9053_vm0, %v11427_v55 }
 0x9cf   :  { %v3681_v24 = vand.u32 4294901760, %v3680_v21  ;;  %8563 = vmatprep.subr.mxu1 %v11427_v55 }
 0x9d0   :  { %8564 = vmatpush3.msra.mxu1 %v10275_v47 }
 0x9d1   :  { %v3682_v58 = vsub.f32 %v3680_v21, %v3681_v24  ;;  %8565 = vmatprep.subr.mxu1 %v11427_v55 }
 0x9d2   :  { %8566 = vmatpush3.msra.mxu1 %v10301_v8 }
 0x9d3   :  { %8567 = vmatprep.subr.mxu1 %v11427_v55  ;;  %v3683_v1 = vand.u32 4294901760, %v3682_v58 }
 0x9d4   :  { %8568 = vmatpush3.msra.mxu1 %v10317_v6 }
 0x9d5   :  { %8570 = vmatmul.mubr.f32.vlgmr.msra.gmra.mxu1 %v3681_v24  ;;  %8583 = vmatprep.subr.mxu1 %v11427_v55 }
 0x9d6   :  { %8537 = vmatmul.mubr.f32.vlgmr.msra.gmra.mxu0 %v3683_v1  ;;  %8584 = vmatpush3.msra.mxu1 %v10259_v27 }
 0x9d7   :  { %8551 = vmatpush3.msra.mxu0 %v10273_v35  ;;  %8585 = vmatprep.subr.mxu1 %v11427_v55 }
 0x9d8   :  { %8552 = vmatprep.subr.mxu0 %v11427_v55  ;;  %8586 = vmatpush3.msra.mxu1 %v10275_v47 }
 0x9d9   :  { %8553 = vmatpush3.msra.mxu0 %v10295_v60  ;;  %8587 = vmatprep.subr.mxu1 %v11427_v55 }
 0x9da   :  { %8554 = vmatprep.subr.mxu0 %v11427_v55  ;;  %8588 = vmatpush3.msra.mxu1 %v10301_v8 }
 0x9db   :  { %8555 = vmatpush3.msra.mxu0 %v10322_v46  ;;  %8589 = vmatprep.subr.mxu1 %v11427_v55 }
 0x9dc   :  { %8556 = vmatprep.subr.mxu0 %v11427_v55  ;;  %8558 = vmatprep.mubr.msk.f32.mxu0 %vm9053_vm0, %v11427_v55 }
 0x9dd   :  { %8557 = vmatpush3.msra.mxu0 %v10338_v9  ;;  %8590 = vmatpush3.msra.mxu1 %v10317_v6 }
 0x9de   :  { %8591 = vmatprep.mubr.msk.f32.mxu1 %vm9053_vm0, %v11427_v55  ;;  %8559 = vmatmul.mubr.f32.vlgmr.msra.gmra.mxu0 %v3680_v21 }
 0x9df   :  { %8572 = vmatprep.subr.mxu0 %v11427_v55  ;;  %8592 = vmatmul.mubr.f32.vlgmr.msra.gmra.mxu1 %v3679_v45 }
 0x9e0   :  { %8573 = vmatpush3.msra.mxu0 %v10292_v59  ;;  %8580 = vmatprep.mubr.msk.f32.mxu0 %vm9053_vm0, %v11427_v55 }
 0x9e1   :  { %8574 = vmatprep.subr.mxu0 %v11427_v55  ;;  %8605 = vmatprep.subr.mxu1 %v11427_v55 }
 0x9e2   :  { %8575 = vmatpush3.msra.mxu0 %v10313_v4  ;;  %8606 = vmatpush3.msra.mxu1 %v10328_v13 }
 0x9e3   :  { %8576 = vmatprep.subr.mxu0 %v11427_v55  ;;  %8607 = vmatprep.subr.mxu1 %v11427_v55 }
 0x9e4   :  { %8577 = vmatpush3.msra.mxu0 %v10346_v2  ;;  %8608 = vmatpush3.msra.mxu1 %v10352_v11 }
 0x9e5   :  { %8578 = vmatprep.subr.mxu0 %v11427_v55  ;;  %8609 = vmatprep.subr.mxu1 %v11427_v55 }
 0x9e6   :  { %8579 = vmatpush3.msra.mxu0 %v10362_v42  ;;  %8610 = vmatpush3.msra.mxu1 %v10394_v0 }
 0x9e7   :  { %8581 = vmatmul.mubr.f32.vlgmr.msra.gmra.mxu0 %v3679_v45  ;;  %8611 = vmatprep.subr.mxu1 %v11427_v55 }
 0x9e8   :  { %8612 = vmatpush3.msra.mxu1 %v10412_v61  ;;  %8594 = vmatprep.subr.mxu0 %v11427_v55 }
 0x9e9   :  { %8613 = vmatprep.mubr.msk.f32.mxu1 %vm9053_vm0, %v11427_v55  ;;  %8627 = vmatprep.subr.mxu1 %v11427_v55 }
 0x9ea   :  { %8595 = vmatpush3.msra.mxu0 %v10259_v27  ;;  %8602 = vmatprep.mubr.msk.f32.mxu0 %vm9053_vm0, %v11427_v55 }
 0x9eb   :  { %8596 = vmatprep.subr.mxu0 %v11427_v55 }
 0x9ec   :  { %8597 = vmatpush3.msra.mxu0 %v10275_v47 }
 0x9ed   :  { %8598 = vmatprep.subr.mxu0 %v11427_v55 }
 0x9ee   :  { %8599 = vmatpush3.msra.mxu0 %v10301_v8 }
 0x9ef   :  { %8600 = vmatprep.subr.mxu0 %v11427_v55 }
 0x9f0   :  { %8601 = vmatpush3.msra.mxu0 %v10317_v6 }
 0x9f1   :  { %8616 = vmatprep.subr.mxu0 %v11427_v55 }
 0xa8d   :  { %v3776_v29 = vpop.f32.mrf.mxu1 }
 0xa8f   :  { %v8549_v52 = vpop.f32.mrf.mxu1 }
 0xa95   :  { %v3933_v54 = vpop.f32.mrf.mxu1 }
 0xa96   :  { %v3685_v50 = vpop.f32.mrf.mxu0 }
 0xa97   :  { %v8571_v49 = vpop.f32.mrf.mxu1  ;;  %v3777_v56 = vadd.f32 %v3776_v29, %v3685_v50 }
 0xa98   :  { %v8538_v44 = vpop.f32.mrf.mxu0 }
 0xa9e   :  { %v3856_v25 = vpop.f32.mrf.mxu0 }
 0xa9f   :  { %v4091_v31 = vpop.f32.mrf.mxu1  ;;  %v3857_v5 = vadd.f32 %v3856_v25, %v3777_v56 }
 0xaa0   :  { %v8560_v57 = vpop.f32.mrf.mxu0 }
 0xaa1   :  { %v8593_v23 = vpop.f32.mrf.mxu1  ;;  %v3934_v20 = vadd.f32 %v3933_v54, %v3857_v5 }
 0xaa7   :  { %v4016_v53 = vpop.f32.mrf.mxu0 }
 0xaa8   :  { %v4017_v3 = vadd.f32 %v4016_v53, %v3934_v20 }
 0xaa9   :  { %v8582_v63 = vpop.f32.mrf.mxu0 }
 0xaaa   :  { %v4092_v19 = vadd.f32 %v4091_v31, %v4017_v3 }
 0xaac   :  { %v4095_v37 = vadd.f32 %v4092_v19, %v10541_v43 }
 0xaae   :  { %8998 = vtanh.f32 %v4095_v37 }
 0xabb   :  { %v8999_v33 = vpop.eup %8998 }
 0xabc   :  { %4101 = vrot.lane.b32.xlu0 %v8999_v33, %s9054_s4  ;;  %v4097_v26 = vmul.f32 0.5, %v8999_v33 }
 0xabe   :  { %v4098_v17 = vadd.f32 0.5, %v4097_v26 }
 0xac0   :  { %v4099_v38 = vmul.f32 %v4098_v17, %v10714_v36 }
 0xb2e   :  { %v4102_v40 = vpop.permute.xlu0 %4101 }
 0xb2f   :  { %v4104_v10 = vmul.f32 %v4102_v40, %v4098_v17 }
 0xb31   :  { %4106 = vrot.lane.b32.xlu1 %v4104_v10, %s9055_s20 }
 0xba3   :  { %v4107_v7 = vpop.permute.xlu1 %4106 }
 0xba4   :  { %v10785_v34 = vadd.f32 %v4107_v7, %v4099_v38 }
 0xba6   :  { %9000 = vtanh.f32 %v10785_v34 }
 0xbb3   :  { %v9001_v32 = vpop.eup %9000 }
 0xbb4   :  { %4112 = vrot.lane.b32.xlu0 %v9001_v32, %s9054_s4 }
 0xc26   :  { %v4113_v43 = vpop.permute.xlu0 %4112 }
 0xc27   :  { %v4115_v15 = vmul.f32 %v4113_v43, %v4098_v17 }
 0xc29   :  { %4117 = vrot.lane.b32.xlu1 %v4115_v15, %s9055_s20 }
 0xc9b   :  { %v4118_v45 = vpop.permute.xlu1 %4117 }
 0xc9c   :  { %4120 = vst.msk [vmem:[#allocation2 + $0x18] sm:$0xff] %vm2067_vm1, %v4118_v45  ;;  %v4121_v21 = vsel %vm2067_vm1, %v4118_v45, 0 }
 0xc9d   :  { %v4192_v24 = vand.u32 4294901760, %v4121_v21 }
 0xc9f   :  { %v4193_v58 = vsub.f32 %v4121_v21, %v4192_v24  ;;  %8614 = vmatmul.mubr.f32.vlgmr.msra.gmra.mxu1 %v4192_v24 }
 0xca0   :  { %8628 = vmatpush3.msra.mxu1 %v10259_v27  ;;  %8635 = vmatprep.mubr.msk.f32.mxu1 %vm9053_vm0, %v11427_v55 }
 0xca1   :  { %v4194_v36 = vand.u32 4294901760, %v4193_v58  ;;  %8629 = vmatprep.subr.mxu1 %v11427_v55 }
 0xca2   :  { %8630 = vmatpush3.msra.mxu1 %v10275_v47 }
 0xca3   :  { %v4195_v1 = vsub.f32 %v4193_v58, %v4194_v36  ;;  %8631 = vmatprep.subr.mxu1 %v11427_v55 }
 0xca4   :  { %8632 = vmatpush3.msra.mxu1 %v10301_v8 }
 0xca5   :  { %8633 = vmatprep.subr.mxu1 %v11427_v55  ;;  %v4196_v29 = vand.u32 4294901760, %v4195_v1 }
 0xca6   :  { %8634 = vmatpush3.msra.mxu1 %v10317_v6 }
 0xca7   :  { %8636 = vmatmul.mubr.f32.vlgmr.msra.gmra.mxu1 %v4194_v36  ;;  %8649 = vmatprep.subr.mxu1 %v11427_v55 }
 0xca8   :  { %8603 = vmatmul.mubr.f32.vlgmr.msra.gmra.mxu0 %v4196_v29  ;;  %8650 = vmatpush3.msra.mxu1 %v10259_v27 }
 0xca9   :  { %8617 = vmatpush3.msra.mxu0 %v10273_v35  ;;  %8651 = vmatprep.subr.mxu1 %v11427_v55 }
 0xcaa   :  { %8618 = vmatprep.subr.mxu0 %v11427_v55  ;;  %8652 = vmatpush3.msra.mxu1 %v10275_v47 }
 0xcab   :  { %8619 = vmatpush3.msra.mxu0 %v10295_v60  ;;  %8653 = vmatprep.subr.mxu1 %v11427_v55 }
 0xcac   :  { %8620 = vmatprep.subr.mxu0 %v11427_v55  ;;  %8654 = vmatpush3.msra.mxu1 %v10301_v8 }
 0xcad   :  { %8621 = vmatpush3.msra.mxu0 %v10322_v46  ;;  %8655 = vmatprep.subr.mxu1 %v11427_v55 }
 0xcae   :  { %8622 = vmatprep.subr.mxu0 %v11427_v55  ;;  %8624 = vmatprep.mubr.msk.f32.mxu0 %vm9053_vm0, %v11427_v55 }
 0xcaf   :  { %8623 = vmatpush3.msra.mxu0 %v10338_v9  ;;  %8656 = vmatpush3.msra.mxu1 %v10317_v6 }
 0xcb0   :  { %8657 = vmatprep.mubr.msk.f32.mxu1 %vm9053_vm0, %v11427_v55  ;;  %8625 = vmatmul.mubr.f32.vlgmr.msra.gmra.mxu0 %v4193_v58 }
 0xcb1   :  { %8638 = vmatprep.subr.mxu0 %v11427_v55  ;;  %8658 = vmatmul.mubr.f32.vlgmr.msra.gmra.mxu1 %v4192_v24 }
 0xcb2   :  { %8639 = vmatpush3.msra.mxu0 %v10292_v59  ;;  %8646 = vmatprep.mubr.msk.f32.mxu0 %vm9053_vm0, %v11427_v55 }
 0xcb3   :  { %8640 = vmatprep.subr.mxu0 %v11427_v55  ;;  %8671 = vmatprep.subr.mxu1 %v11427_v55 }
 0xcb4   :  { %8641 = vmatpush3.msra.mxu0 %v10313_v4  ;;  %8672 = vmatpush3.msra.mxu1 %v10328_v13 }
 0xcb5   :  { %8642 = vmatprep.subr.mxu0 %v11427_v55  ;;  %8673 = vmatprep.subr.mxu1 %v11427_v55 }
 0xcb6   :  { %8643 = vmatpush3.msra.mxu0 %v10346_v2  ;;  %8674 = vmatpush3.msra.mxu1 %v10352_v11 }
 0xcb7   :  { %8644 = vmatprep.subr.mxu0 %v11427_v55  ;;  %8675 = vmatprep.subr.mxu1 %v11427_v55 }
 0xcb8   :  { %8645 = vmatpush3.msra.mxu0 %v10362_v42  ;;  %8676 = vmatpush3.msra.mxu1 %v10394_v0 }
 0xcb9   :  { %8647 = vmatmul.mubr.f32.vlgmr.msra.gmra.mxu0 %v4192_v24  ;;  %8677 = vmatprep.subr.mxu1 %v11427_v55 }
 0xcba   :  { %8678 = vmatpush3.msra.mxu1 %v10412_v61  ;;  %8660 = vmatprep.subr.mxu0 %v11427_v55 }
 0xcbb   :  { %8679 = vmatprep.mubr.msk.f32.mxu1 %vm9053_vm0, %v11427_v55  ;;  %8693 = vmatprep.subr.mxu1 %v11427_v55 }
 0xcbc   :  { %8661 = vmatpush3.msra.mxu0 %v10259_v27  ;;  %8668 = vmatprep.mubr.msk.f32.mxu0 %vm9053_vm0, %v11427_v55 }
 0xcbd   :  { %8662 = vmatprep.subr.mxu0 %v11427_v55 }
 0xcbe   :  { %8663 = vmatpush3.msra.mxu0 %v10275_v47 }
 0xcbf   :  { %8664 = vmatprep.subr.mxu0 %v11427_v55 }
 0xcc0   :  { %8665 = vmatpush3.msra.mxu0 %v10301_v8 }
 0xcc1   :  { %8666 = vmatprep.subr.mxu0 %v11427_v55 }
 0xcc2   :  { %8667 = vmatpush3.msra.mxu0 %v10317_v6 }
 0xcc3   :  { %8682 = vmatprep.subr.mxu0 %v11427_v55 }
 0xd5f   :  { %v4289_v52 = vpop.f32.mrf.mxu1 }
 0xd61   :  { %v8615_v54 = vpop.f32.mrf.mxu1 }
 0xd67   :  { %v4446_v50 = vpop.f32.mrf.mxu1 }
 0xd68   :  { %v4198_v49 = vpop.f32.mrf.mxu0 }
 0xd69   :  { %v8637_v44 = vpop.f32.mrf.mxu1  ;;  %v4290_v57 = vadd.f32 %v4289_v52, %v4198_v49 }
 0xd6a   :  { %v8604_v25 = vpop.f32.mrf.mxu0 }
 0xd70   :  { %v4369_v31 = vpop.f32.mrf.mxu0 }
 0xd71   :  { %v4604_v56 = vpop.f32.mrf.mxu1  ;;  %v4370_v20 = vadd.f32 %v4369_v31, %v4290_v57 }
 0xd72   :  { %v8626_v23 = vpop.f32.mrf.mxu0 }
 0xd73   :  { %v8659_v5 = vpop.f32.mrf.mxu1  ;;  %v4447_v53 = vadd.f32 %v4446_v50, %v4370_v20 }
 0xd79   :  { %v4529_v3 = vpop.f32.mrf.mxu0 }
 0xd7a   :  { %v4530_v63 = vadd.f32 %v4529_v3, %v4447_v53 }
 0xd7b   :  { %v8648_v19 = vpop.f32.mrf.mxu0 }
 0xd7c   :  { %v4605_v37 = vadd.f32 %v4604_v56, %v4530_v63 }
 0xd7e   :  { %v4608_v33 = vadd.f32 %v4605_v37, %v10547_v62 }
 0xd80   :  { %9002 = vtanh.f32 %v4608_v33 }
 0xd8d   :  { %v9003_v26 = vpop.eup %9002 }
 0xd8e   :  { %4614 = vrot.lane.b32.xlu0 %v9003_v26, %s9054_s4  ;;  %v4610_v17 = vmul.f32 0.5, %v9003_v26 }
 0xd90   :  { %v4611_v40 = vadd.f32 0.5, %v4610_v17 }
 0xd92   :  { %v4612_v7 = vmul.f32 %v4611_v40, %v10785_v34 }
 0xe00   :  { %v4615_v10 = vpop.permute.xlu0 %4614 }
 0xe01   :  { %v4617_v38 = vmul.f32 %v4615_v10, %v4611_v40 }
 0xe03   :  { %4619 = vrot.lane.b32.xlu1 %v4617_v38, %s9055_s20 }
 0xe75   :  { %v4620_v32 = vpop.permute.xlu1 %4619 }
 0xe76   :  { %v10856_v43 = vadd.f32 %v4620_v32, %v4612_v7 }
 0xe78   :  { %9004 = vtanh.f32 %v10856_v43 }
 0xe85   :  { %v9005_v15 = vpop.eup %9004 }
 0xe86   :  { %4625 = vrot.lane.b32.xlu0 %v9005_v15, %s9054_s4 }
 0xef8   :  { %v4626_v62 = vpop.permute.xlu0 %4625 }
 0xef9   :  { %v4628_v45 = vmul.f32 %v4626_v62, %v4611_v40 }
 0xefb   :  { %4630 = vrot.lane.b32.xlu1 %v4628_v45, %s9055_s20 }
 0xf6d   :  { %v4631_v21 = vpop.permute.xlu1 %4630 }
 0xf6e   :  { %4633 = vst.msk [vmem:[#allocation2 + $0x20] sm:$0xff] %vm2067_vm1, %v4631_v21  ;;  %v4634_v24 = vsel %vm2067_vm1, %v4631_v21, 0 }
 0xf6f   :  { %v4705_v58 = vand.u32 4294901760, %v4634_v24 }
 0xf71   :  { %v4706_v36 = vsub.f32 %v4634_v24, %v4705_v58  ;;  %8680 = vmatmul.mubr.f32.vlgmr.msra.gmra.mxu1 %v4705_v58 }
 0xf72   :  { %8694 = vmatpush3.msra.mxu1 %v10259_v27  ;;  %8701 = vmatprep.mubr.msk.f32.mxu1 %vm9053_vm0, %v11427_v55 }
 0xf73   :  { %v4707_v34 = vand.u32 4294901760, %v4706_v36  ;;  %8695 = vmatprep.subr.mxu1 %v11427_v55 }
 0xf74   :  { %8696 = vmatpush3.msra.mxu1 %v10275_v47 }
 0xf75   :  { %v4708_v1 = vsub.f32 %v4706_v36, %v4707_v34  ;;  %8697 = vmatprep.subr.mxu1 %v11427_v55 }
 0xf76   :  { %8698 = vmatpush3.msra.mxu1 %v10301_v8 }
 0xf77   :  { %8699 = vmatprep.subr.mxu1 %v11427_v55  ;;  %v4709_v29 = vand.u32 4294901760, %v4708_v1 }
 0xf78   :  { %8700 = vmatpush3.msra.mxu1 %v10317_v6 }
 0xf79   :  { %8702 = vmatmul.mubr.f32.vlgmr.msra.gmra.mxu1 %v4707_v34  ;;  %8715 = vmatprep.subr.mxu1 %v11427_v55 }
 0xf7a   :  { %8669 = vmatmul.mubr.f32.vlgmr.msra.gmra.mxu0 %v4709_v29  ;;  %8716 = vmatpush3.msra.mxu1 %v10259_v27 }
 0xf7b   :  { %8683 = vmatpush3.msra.mxu0 %v10273_v35  ;;  %8717 = vmatprep.subr.mxu1 %v11427_v55 }
 0xf7c   :  { %8684 = vmatprep.subr.mxu0 %v11427_v55  ;;  %8718 = vmatpush3.msra.mxu1 %v10275_v47 }
 0xf7d   :  { %8685 = vmatpush3.msra.mxu0 %v10295_v60  ;;  %8719 = vmatprep.subr.mxu1 %v11427_v55 }
 0xf7e   :  { %8686 = vmatprep.subr.mxu0 %v11427_v55  ;;  %8720 = vmatpush3.msra.mxu1 %v10301_v8 }
 0xf7f   :  { %8687 = vmatpush3.msra.mxu0 %v10322_v46  ;;  %8721 = vmatprep.subr.mxu1 %v11427_v55 }
 0xf80   :  { %8688 = vmatprep.subr.mxu0 %v11427_v55  ;;  %8690 = vmatprep.mubr.msk.f32.mxu0 %vm9053_vm0, %v11427_v55 }
 0xf81   :  { %8689 = vmatpush3.msra.mxu0 %v10338_v9  ;;  %8722 = vmatpush3.msra.mxu1 %v10317_v6 }
 0xf82   :  { %8723 = vmatprep.mubr.msk.f32.mxu1 %vm9053_vm0, %v11427_v55  ;;  %8691 = vmatmul.mubr.f32.vlgmr.msra.gmra.mxu0 %v4706_v36 }
 0xf83   :  { %8704 = vmatprep.subr.mxu0 %v11427_v55  ;;  %8724 = vmatmul.mubr.f32.vlgmr.msra.gmra.mxu1 %v4705_v58 }
 0xf84   :  { %8705 = vmatpush3.msra.mxu0 %v10292_v59  ;;  %8712 = vmatprep.mubr.msk.f32.mxu0 %vm9053_vm0, %v11427_v55 }
 0xf85   :  { %8706 = vmatprep.subr.mxu0 %v11427_v55  ;;  %8737 = vmatprep.subr.mxu1 %v11427_v55 }
 0xf86   :  { %8707 = vmatpush3.msra.mxu0 %v10313_v4  ;;  %8738 = vmatpush3.msra.mxu1 %v10328_v13 }
 0xf87   :  { %8708 = vmatprep.subr.mxu0 %v11427_v55  ;;  %8739 = vmatprep.subr.mxu1 %v11427_v55 }
 0xf88   :  { %8709 = vmatpush3.msra.mxu0 %v10346_v2  ;;  %8740 = vmatpush3.msra.mxu1 %v10352_v11 }
 0xf89   :  { %8710 = vmatprep.subr.mxu0 %v11427_v55  ;;  %8741 = vmatprep.subr.mxu1 %v11427_v55 }
 0xf8a   :  { %8711 = vmatpush3.msra.mxu0 %v10362_v42  ;;  %8742 = vmatpush3.msra.mxu1 %v10394_v0 }
 0xf8b   :  { %8713 = vmatmul.mubr.f32.vlgmr.msra.gmra.mxu0 %v4705_v58  ;;  %8743 = vmatprep.subr.mxu1 %v11427_v55 }
 0xf8c   :  { %8744 = vmatpush3.msra.mxu1 %v10412_v61  ;;  %8726 = vmatprep.subr.mxu0 %v11427_v55 }
 0xf8d   :  { %8745 = vmatprep.mubr.msk.f32.mxu1 %vm9053_vm0, %v11427_v55  ;;  %8759 = vmatprep.subr.mxu1 %v11427_v55 }
 0xf8e   :  { %8727 = vmatpush3.msra.mxu0 %v10259_v27  ;;  %8734 = vmatprep.mubr.msk.f32.mxu0 %vm9053_vm0, %v11427_v55 }
 0xf8f   :  { %8728 = vmatprep.subr.mxu0 %v11427_v55 }
 0xf90   :  { %8729 = vmatpush3.msra.mxu0 %v10275_v47 }
 0xf91   :  { %8730 = vmatprep.subr.mxu0 %v11427_v55 }
 0xf92   :  { %8731 = vmatpush3.msra.mxu0 %v10301_v8 }
 0xf93   :  { %8732 = vmatprep.subr.mxu0 %v11427_v55 }
 0xf94   :  { %8733 = vmatpush3.msra.mxu0 %v10317_v6 }
 0xf95   :  { %8748 = vmatprep.subr.mxu0 %v11427_v55 }
0x1031   :  { %v4802_v52 = vpop.f32.mrf.mxu1 }
0x1033   :  { %v8681_v54 = vpop.f32.mrf.mxu1 }
0x1039   :  { %v4959_v50 = vpop.f32.mrf.mxu1 }
0x103a   :  { %v4711_v49 = vpop.f32.mrf.mxu0 }
0x103b   :  { %v8703_v44 = vpop.f32.mrf.mxu1  ;;  %v4803_v57 = vadd.f32 %v4802_v52, %v4711_v49 }
0x103c   :  { %v8670_v25 = vpop.f32.mrf.mxu0 }
0x1042   :  { %v4882_v31 = vpop.f32.mrf.mxu0 }
0x1043   :  { %v5117_v56 = vpop.f32.mrf.mxu1  ;;  %v4883_v20 = vadd.f32 %v4882_v31, %v4803_v57 }
0x1044   :  { %v8692_v23 = vpop.f32.mrf.mxu0 }
0x1045   :  { %v8725_v5 = vpop.f32.mrf.mxu1  ;;  %v4960_v53 = vadd.f32 %v4959_v50, %v4883_v20 }
0x104b   :  { %v5042_v3 = vpop.f32.mrf.mxu0 }
0x104c   :  { %v5043_v63 = vadd.f32 %v5042_v3, %v4960_v53 }
0x104d   :  { %v8714_v19 = vpop.f32.mrf.mxu0 }
0x104e   :  { %v5118_v37 = vadd.f32 %v5117_v56, %v5043_v63 }
0x1050   :  { %v5121_v33 = vadd.f32 %v5118_v37, %v10545_v28 }
0x1052   :  { %9006 = vtanh.f32 %v5121_v33 }
0x105f   :  { %v9007_v26 = vpop.eup %9006 }
0x1060   :  { %5127 = vrot.lane.b32.xlu0 %v9007_v26, %s9054_s4  ;;  %v5123_v17 = vmul.f32 0.5, %v9007_v26 }
0x1062   :  { %v5124_v40 = vadd.f32 0.5, %v5123_v17 }
0x1064   :  { %v5125_v7 = vmul.f32 %v5124_v40, %v10856_v43 }
0x10d2   :  { %v5128_v10 = vpop.permute.xlu0 %5127 }
0x10d3   :  { %v5130_v38 = vmul.f32 %v5128_v10, %v5124_v40 }
0x10d5   :  { %5132 = vrot.lane.b32.xlu1 %v5130_v38, %s9055_s20 }
0x1147   :  { %v5133_v32 = vpop.permute.xlu1 %5132 }
0x1148   :  { %v10927_v15 = vadd.f32 %v5133_v32, %v5125_v7  ;;  %v6184_v32 = vld [vmem:[%s11335_s5 + $0x18] sm:$0xff] }
0x114a   :  { %9008 = vtanh.f32 %v10927_v15 }
0x1157   :  { %v9009_v62 = vpop.eup %9008 }
0x1158   :  { %5138 = vrot.lane.b32.xlu0 %v9009_v62, %s9054_s4 }
0x11ca   :  { %v5139_v28 = vpop.permute.xlu0 %5138 }
0x11cb   :  { %v5141_v45 = vmul.f32 %v5139_v28, %v5124_v40  ;;  %v6183_v28 = vld [vmem:[%s11335_s5 + $0x10] sm:$0xff] }
0x11cd   :  { %5143 = vrot.lane.b32.xlu1 %v5141_v45, %s9055_s20  ;;  %v11013_v45 = vand.u32 4294901760, %v6184_v32 }
0x123f   :  { %v5144_v21 = vpop.permute.xlu1 %5143 }
0x1240   :  { %5146 = vst.msk [vmem:[#allocation2 + $0x28] sm:$0xff] %vm2067_vm1, %v5144_v21  ;;  %v5147_v24 = vsel %vm2067_vm1, %v5144_v21, 0 }
0x1241   :  { %v5218_v58 = vand.u32 4294901760, %v5147_v24 }
0x1243   :  { %v5219_v36 = vsub.f32 %v5147_v24, %v5218_v58  ;;  %8746 = vmatmul.mubr.f32.vlgmr.msra.gmra.mxu1 %v5218_v58  ;;  %v6182_v24 = vld [vmem:[%s11335_s5 + $0x8] sm:$0xff] }
0x1244   :  { %8760 = vmatpush3.msra.mxu1 %v10259_v27  ;;  %8767 = vmatprep.mubr.msk.f32.mxu1 %vm9053_vm0, %v11427_v55 }
0x1245   :  { %v5220_v43 = vand.u32 4294901760, %v5219_v36  ;;  %8761 = vmatprep.subr.mxu1 %v11427_v55 }
0x1246   :  { %8762 = vmatpush3.msra.mxu1 %v10275_v47 }
0x1247   :  { %v5221_v34 = vsub.f32 %v5219_v36, %v5220_v43  ;;  %8763 = vmatprep.subr.mxu1 %v11427_v55 }
0x1248   :  { %8764 = vmatpush3.msra.mxu1 %v10301_v8 }
0x1249   :  { %8765 = vmatprep.subr.mxu1 %v11427_v55  ;;  %v5222_v1 = vand.u32 4294901760, %v5221_v34  ;;  %v11031_v34 = vsub.f32 %v6184_v32, %v11013_v45 }
0x124a   :  { %8766 = vmatpush3.msra.mxu1 %v10317_v6 }
0x124b   :  { %8768 = vmatmul.mubr.f32.vlgmr.msra.gmra.mxu1 %v5220_v43  ;;  %8781 = vmatprep.subr.mxu1 %v11427_v55  ;;  %v6181_v43 = vld [vmem:[%s11335_s5] sm:$0xff] }
0x124c   :  { %8735 = vmatmul.mubr.f32.vlgmr.msra.gmra.mxu0 %v5222_v1  ;;  %8782 = vmatpush3.msra.mxu1 %v10259_v27  ;;  %v11033_v1 = vand.u32 4294901760, %v6182_v24 }
0x124d   :  { %8749 = vmatpush3.msra.mxu0 %v10273_v35  ;;  %8783 = vmatprep.subr.mxu1 %v11427_v55 }
0x124e   :  { %8750 = vmatprep.subr.mxu0 %v11427_v55  ;;  %8784 = vmatpush3.msra.mxu1 %v10275_v47 }
0x124f   :  { %8751 = vmatpush3.msra.mxu0 %v10295_v60  ;;  %8785 = vmatprep.subr.mxu1 %v11427_v55 }
0x1250   :  { %8752 = vmatprep.subr.mxu0 %v11427_v55  ;;  %8786 = vmatpush3.msra.mxu1 %v10301_v8 }
0x1251   :  { %8753 = vmatpush3.msra.mxu0 %v10322_v46  ;;  %8787 = vmatprep.subr.mxu1 %v11427_v55 }
0x1252   :  { %8754 = vmatprep.subr.mxu0 %v11427_v55  ;;  %8756 = vmatprep.mubr.msk.f32.mxu0 %vm9053_vm0, %v11427_v55 }
0x1253   :  { %8755 = vmatpush3.msra.mxu0 %v10338_v9  ;;  %8788 = vmatpush3.msra.mxu1 %v10317_v6 }
0x1254   :  { %8789 = vmatprep.mubr.msk.f32.mxu1 %vm9053_vm0, %v11427_v55  ;;  %8757 = vmatmul.mubr.f32.vlgmr.msra.gmra.mxu0 %v5219_v36 }
0x1255   :  { %8770 = vmatprep.subr.mxu0 %v11427_v55  ;;  %8790 = vmatmul.mubr.f32.vlgmr.msra.gmra.mxu1 %v5218_v58 }
0x1256   :  { %8771 = vmatpush3.msra.mxu0 %v10292_v59  ;;  %8778 = vmatprep.mubr.msk.f32.mxu0 %vm9053_vm0, %v11427_v55 }
0x1257   :  { %8772 = vmatprep.subr.mxu0 %v11427_v55  ;;  %8803 = vmatprep.subr.mxu1 %v11427_v55 }
0x1258   :  { %8773 = vmatpush3.msra.mxu0 %v10313_v4  ;;  %8804 = vmatpush3.msra.mxu1 %v10328_v13 }
0x1259   :  { %8774 = vmatprep.subr.mxu0 %v11427_v55  ;;  %8805 = vmatprep.subr.mxu1 %v11427_v55 }
0x125a   :  { %8775 = vmatpush3.msra.mxu0 %v10346_v2  ;;  %8806 = vmatpush3.msra.mxu1 %v10352_v11 }
0x125b   :  { %8776 = vmatprep.subr.mxu0 %v11427_v55  ;;  %8807 = vmatprep.subr.mxu1 %v11427_v55 }
0x125c   :  { %8777 = vmatpush3.msra.mxu0 %v10362_v42  ;;  %8808 = vmatpush3.msra.mxu1 %v10394_v0 }
0x125d   :  { %8779 = vmatmul.mubr.f32.vlgmr.msra.gmra.mxu0 %v5218_v58  ;;  %8809 = vmatprep.subr.mxu1 %v11427_v55  ;;  %v11023_v58 = vand.u32 4294901760, %v6183_v28 }
0x125e   :  { %8810 = vmatpush3.msra.mxu1 %v10412_v61  ;;  %8792 = vmatprep.subr.mxu0 %v11427_v55 }
0x125f   :  { %8811 = vmatprep.mubr.msk.f32.mxu1 %vm9053_vm0, %v11427_v55  ;;  %8825 = vmatprep.subr.mxu1 %v11427_v55 }
0x1260   :  { %8793 = vmatpush3.msra.mxu0 %v10259_v27  ;;  %8800 = vmatprep.mubr.msk.f32.mxu0 %vm9053_vm0, %v11427_v55 }
0x1261   :  { %8794 = vmatprep.subr.mxu0 %v11427_v55 }
0x1262   :  { %8795 = vmatpush3.msra.mxu0 %v10275_v47 }
0x1263   :  { %8796 = vmatprep.subr.mxu0 %v11427_v55 }
0x1264   :  { %8797 = vmatpush3.msra.mxu0 %v10301_v8 }
0x1265   :  { %8798 = vmatprep.subr.mxu0 %v11427_v55 }
0x1266   :  { %8799 = vmatpush3.msra.mxu0 %v10317_v6 }
0x1267   :  { %8814 = vmatprep.subr.mxu0 %v11427_v55 }
0x1303   :  { %v5315_v13 = vpop.f32.mrf.mxu1 }
0x1305   :  { %v8747_v11 = vpop.f32.mrf.mxu1 }
0x1306   :  { %v6173_v11 = vld [vmem:[#allocation2] sm:$0xff] }
0x130b   :  { %v5472_v0 = vpop.f32.mrf.mxu1 }
0x130c   :  { %v5224_v61 = vpop.f32.mrf.mxu0 }
0x130d   :  { %v8769_v29 = vpop.f32.mrf.mxu1  ;;  %v5316_v49 = vadd.f32 %v5315_v13, %v5224_v61  ;;  %v11040_v61 = vand.u32 4294901760, %v6181_v43 }
0x130e   :  { %v8736_v52 = vpop.f32.mrf.mxu0 }
0x130f   :  { %v11045_v52 = vand.u32 4294901760, %v11031_v34 }
0x1314   :  { %v5395_v54 = vpop.f32.mrf.mxu0 }
0x1315   :  { %v5630_v50 = vpop.f32.mrf.mxu1  ;;  %v5396_v31 = vadd.f32 %v5395_v54, %v5316_v49  ;;  %v11048_v54 = vsub.f32 %v6182_v24, %v11033_v1 }
0x1316   :  { %v8758_v44 = vpop.f32.mrf.mxu0 }
0x1317   :  { %v8791_v25 = vpop.f32.mrf.mxu1  ;;  %v5473_v56 = vadd.f32 %v5472_v0, %v5396_v31  ;;  %v11038_v0 = vsub.f32 %v6183_v28, %v11023_v58  ;;  %v11057_v44 = vsub.f32 %v6181_v43, %v11040_v61 }
0x1318   :  { %v6386_v25 = vsub.f32 %v11031_v34, %v11045_v52 }
0x1319   :  { %v11054_v49 = vand.u32 4294901760, %v11038_v0 }
0x131d   :  { %v5555_v57 = vpop.f32.mrf.mxu0 }
0x131e   :  { %v5556_v23 = vadd.f32 %v5555_v57, %v5473_v56  ;;  %v6174_v56 = vld [vmem:[#allocation2 + $0x8] sm:$0xff]  ;;  %v6175_v57 = vld [vmem:[#allocation2 + $0x10] sm:$0xff] }
0x131f   :  { %v8780_v5 = vpop.f32.mrf.mxu0 }
0x1320   :  { %v5631_v20 = vadd.f32 %v5630_v50, %v5556_v23  ;;  %v6186_v50 = vsel %vm2067_vm1, %v6173_v11, 0  ;;  %v6189_v23 = vsel %vm2067_vm1, %v6174_v56, 0 }
0x1321   :  { %v11065_v31 = vand.u32 4294901760, %v6186_v50 }
0x1322   :  { %v5634_v53 = vadd.f32 %v5631_v20, %v10551_v16  ;;  %v6176_v20 = vld [vmem:[#allocation2 + $0x18] sm:$0xff] }
0x1323   :  { %v11088_v5 = vsub.f32 %v6186_v50, %v11065_v31 }
0x1324   :  { %9010 = vtanh.f32 %v5634_v53 }
0x1331   :  { %v9011_v3 = vpop.eup %9010 }
0x1332   :  { %5640 = vrot.lane.b32.xlu0 %v9011_v3, %s9054_s4  ;;  %v5636_v63 = vmul.f32 0.5, %v9011_v3 }
0x1334   :  { %v5637_v19 = vadd.f32 0.5, %v5636_v63  ;;  %v6177_v63 = vld [vmem:[#allocation2 + $0x20] sm:$0xff] }
0x1336   :  { %v5638_v26 = vmul.f32 %v5637_v19, %v10927_v15 }
0x13a4   :  { %v5641_v37 = vpop.permute.xlu0 %5640 }
0x13a5   :  { %v5643_v33 = vmul.f32 %v5641_v37, %v5637_v19 }
0x13a7   :  { %5645 = vrot.lane.b32.xlu1 %v5643_v33, %s9055_s20  ;;  %v6195_v33 = vsel %vm2067_vm1, %v6176_v20, 0 }
0x1419   :  { %v5646_v17 = vpop.permute.xlu1 %5645 }
0x141a   :  { %v10998_v40 = vadd.f32 %v5646_v17, %v5638_v26  ;;  %v6198_v26 = vsel %vm2067_vm1, %v6177_v63, 0  ;;  %v6178_v17 = vld [vmem:[#allocation2 + $0x28] sm:$0xff] }
0x141b   :  { %v11119_v32 = vand.u32 4294901760, %v6198_v26 }
0x141c   :  { %9012 = vtanh.f32 %v10998_v40 }
0x1429   :  { %v9013_v10 = vpop.eup %9012 }
0x142a   :  { %5651 = vrot.lane.b32.xlu0 %v9013_v10, %s9054_s4 }
0x149c   :  { %v5652_v16 = vpop.permute.xlu0 %5651 }
0x149d   :  { %v5654_v38 = vmul.f32 %v5652_v16, %v5637_v19  ;;  %v11099_v19 = vand.u32 4294901760, %v6189_v23 }
0x149f   :  { %5656 = vrot.lane.b32.xlu1 %v5654_v38, %s9055_s20  ;;  %v11113_v38 = vand.u32 4294901760, %v6195_v33 }
0x1511   :  { %v5657_v7 = vpop.permute.xlu1 %5656 }
0x1512   :  { %5659 = vst.msk [vmem:[#allocation2 + $0x30] sm:$0xff] %vm2067_vm1, %v5657_v7  ;;  %v5660_v15 = vsel %vm2067_vm1, %v5657_v7, 0 }
0x1513   :  { %v11008_v62 = vand.u32 4294901760, %v5660_v15 }
0x1515   :  { %v5732_v21 = vsub.f32 %v5660_v15, %v11008_v62  ;;  %8812 = vmatmul.mubr.f32.vlgmr.msra.gmra.mxu1 %v11008_v62  ;;  %v6201_v15 = vsel %vm2067_vm1, %v6178_v17, 0 }
0x1516   :  { %8826 = vmatpush3.msra.mxu1 %v10259_v27  ;;  %8833 = vmatprep.mubr.msk.f32.mxu1 %vm9053_vm0, %v11427_v55  ;;  %v11132_v24 = vand.u32 4294901760, %v6201_v15 }
0x1517   :  { %v5733_v36 = vand.u32 4294901760, %v5732_v21  ;;  %8827 = vmatprep.subr.mxu1 %v11427_v55 }
0x1518   :  { %8828 = vmatpush3.msra.mxu1 %v10275_v47  ;;  %v11154_v11 = vsub.f32 %v6201_v15, %v11132_v24 }
0x1519   :  { %v5734_v13 = vsub.f32 %v5732_v21, %v5733_v36  ;;  %8829 = vmatprep.subr.mxu1 %v11427_v55  ;;  %v6179_v16 = vld [vmem:[#allocation2 + $0x30] sm:$0xff] }
0x151a   :  { %8830 = vmatpush3.msra.mxu1 %v10301_v8 }
0x151b   :  { %8831 = vmatprep.subr.mxu1 %v11427_v55  ;;  %v5735_v29 = vand.u32 4294901760, %v5734_v13 }
0x151c   :  { %8832 = vmatpush3.msra.mxu1 %v10317_v6 }
0x151d   :  { %8834 = vmatmul.mubr.f32.vlgmr.msra.gmra.mxu1 %v5733_v36  ;;  %8847 = vmatprep.subr.mxu1 %v11427_v55  ;;  %v11135_v36 = vsub.f32 %v6195_v33, %v11113_v38 }
0x151e   :  { %8801 = vmatmul.mubr.f32.vlgmr.msra.gmra.mxu0 %v5735_v29  ;;  %8848 = vmatpush3.msra.mxu1 %v10259_v27  ;;  %v11068_v27 = vand.u32 4294901760, %v11048_v54 }
0x151f   :  { %8815 = vmatpush3.msra.mxu0 %v10273_v35  ;;  %8849 = vmatprep.subr.mxu1 %v11427_v55  ;;  %v6393_v35 = vsub.f32 %v11038_v0, %v11054_v49 }
0x1520   :  { %8816 = vmatprep.subr.mxu0 %v11427_v55  ;;  %8850 = vmatpush3.msra.mxu1 %v10275_v47  ;;  %v11077_v47 = vand.u32 4294901760, %v11057_v44 }
0x1521   :  { %8817 = vmatpush3.msra.mxu0 %v10295_v60  ;;  %8851 = vmatprep.subr.mxu1 %v11427_v55  ;;  %v6387_v60 = vand.u32 4294901760, %v6386_v25  ;;  %v6394_v53 = vand.u32 4294901760, %v6393_v35 }
0x1522   :  { %8818 = vmatprep.subr.mxu0 %v11427_v55  ;;  %8852 = vmatpush3.msra.mxu1 %v10301_v8  ;;  %v6400_v8 = vsub.f32 %v11048_v54, %v11068_v27  ;;  %v6407_v3 = vsub.f32 %v11057_v44, %v11077_v47 }
0x1523   :  { %8819 = vmatpush3.msra.mxu0 %v10322_v46  ;;  %8853 = vmatprep.subr.mxu1 %v11427_v55  ;;  %v6192_v46 = vsel %vm2067_vm1, %v6175_v57, 0  ;;  %v6330_v57 = vand.u32 4294901760, %v11154_v11 }
0x1524   :  { %8820 = vmatprep.subr.mxu0 %v11427_v55  ;;  %8822 = vmatprep.mubr.msk.f32.mxu0 %vm9053_vm0, %v11427_v55  ;;  %v11103_v37 = vand.u32 4294901760, %v6192_v46  ;;  %v6408_v10 = vand.u32 4294901760, %v6407_v3 }
0x1525   :  { %8821 = vmatpush3.msra.mxu0 %v10338_v9  ;;  %8854 = vmatpush3.msra.mxu1 %v10317_v6  ;;  %v6401_v6 = vand.u32 4294901760, %v6400_v8  ;;  %v6280_v9 = vand.u32 4294901760, %v11088_v5  ;;  %v6331_v20 = vsub.f32 %v11154_v11, %v6330_v57 }
0x1526   :  { %8855 = vmatprep.mubr.msk.f32.mxu1 %vm9053_vm0, %v11427_v55  ;;  %8823 = vmatmul.mubr.f32.vlgmr.msra.gmra.mxu0 %v5732_v21  ;;  %v11123_v28 = vsub.f32 %v6192_v46, %v11103_v37 }
0x1527   :  { %8836 = vmatprep.subr.mxu0 %v11427_v55  ;;  %8856 = vmatmul.mubr.f32.vlgmr.msra.gmra.mxu1 %v11008_v62  ;;  %v6281_v7 = vsub.f32 %v11088_v5, %v6280_v9  ;;  %v6332_v63 = vand.u32 4294901760, %v6331_v20 }
0x1528   :  { %8878 = vmatprep.subr.mxu1 %v6387_v60  ;;  %8837 = vmatpush3.msra.mxu0 %v10292_v59  ;;  %v11111_v59 = vsub.f32 %v6189_v23, %v11099_v19  ;;  %v6300_v43 = vand.u32 4294901760, %v11123_v28 }
0x1529   :  { %8879 = vmatpush3.msra.mxu1 %v6387_v60  ;;  %8886 = vmatprep.mubr.f32.mxu1 %v11065_v31 }
0x152a   :  { %8838 = vmatprep.subr.mxu0 %v11427_v55  ;;  %8880 = vmatprep.subr.mxu1 %v6394_v53  ;;  %v6290_v21 = vand.u32 4294901760, %v11111_v59  ;;  %v6301_v29 = vsub.f32 %v11123_v28, %v6300_v43 }
0x152b   :  { %8839 = vmatpush3.msra.mxu0 %v10313_v4  ;;  %8881 = vmatpush3.msra.mxu1 %v6394_v53  ;;  %v6204_v4 = vsel %vm2067_vm1, %v6179_v16, 0 }
0x152c   :  { %8840 = vmatprep.subr.mxu0 %v11427_v55  ;;  %8882 = vmatprep.subr.mxu1 %v6401_v6  ;;  %v11139_v13 = vand.u32 4294901760, %v6204_v4  ;;  %v6302_v60 = vand.u32 4294901760, %v6301_v29 }
0x152d   :  { %8841 = vmatpush3.msra.mxu0 %v10346_v2  ;;  %8883 = vmatpush3.msra.mxu1 %v6401_v6  ;;  %v6282_v2 = vand.u32 4294901760, %v6281_v7 }
0x152e   :  { %8842 = vmatprep.subr.mxu0 %v11427_v55  ;;  %8884 = vmatprep.subr.mxu1 %v6408_v10  ;;  %v11162_v25 = vsub.f32 %v6204_v4, %v11139_v13 }
0x152f   :  { %8843 = vmatpush3.msra.mxu0 %v10362_v42  ;;  %8844 = vmatprep.mubr.msk.f32.mxu0 %vm9053_vm0, %v11427_v55  ;;  %v11142_v42 = vsub.f32 %v6198_v26, %v11119_v32  ;;  %v6291_v55 = vsub.f32 %v11111_v59, %v6290_v21 }
0x1530   :  { %8885 = vmatpush3.msra.mxu1 %v6408_v10  ;;  %8845 = vmatmul.mubr.f32.vlgmr.msra.gmra.mxu0 %v11008_v62  ;;  %v6310_v62 = vand.u32 4294901760, %v11135_v36  ;;  %v6340_v23 = vand.u32 4294901760, %v11162_v25 }
0x1531   :  { %8858 = vmatprep.subr.mxu0 %v11013_v45  ;;  %8887 = vmatmul.mubr.f32.vlgmr.msra.gmra.mxu1 %v11099_v19  ;;  %v6320_v50 = vand.u32 4294901760, %v11142_v42  ;;  %v6292_v56 = vand.u32 4294901760, %v6291_v55 }
0x1532   :  { %8859 = vmatpush3.msra.mxu0 %v11013_v45  ;;  %8866 = vmatprep.mubr.f32.mxu0 %v6282_v2  ;;  %v6311_v35 = vsub.f32 %v11135_v36, %v6310_v62  ;;  %v6341_v3 = vsub.f32 %v11162_v25, %v6340_v23 }
0x1533   :  { %8889 = vmatprep.mubr.f32.mxu1 %v11103_v37  ;;  %8860 = vmatprep.subr.mxu0 %v11023_v58  ;;  %v6321_v8 = vsub.f32 %v11142_v42, %v6320_v50 }
0x1534   :  { %8861 = vmatpush3.msra.mxu0 %v11023_v58  ;;  %8918 = vmatprep.subr.mxu1 %v11013_v45  ;;  %v6312_v46 = vand.u32 4294901760, %v6311_v35  ;;  %v6342_v6 = vand.u32 4294901760, %v6341_v3 }
0x1535   :  { %8862 = vmatprep.subr.mxu0 %v11033_v1  ;;  %8890 = vmatmul.mubr.f32.gmra.mxu1 %v11113_v38  ;;  %v6322_v53 = vand.u32 4294901760, %v6321_v8 }
0x1536   :  { %8863 = vmatpush3.msra.mxu0 %v11033_v1  ;;  %8892 = vmatprep.mubr.f32.mxu1 %v11119_v32 }
0x1537   :  { %8864 = vmatprep.subr.mxu0 %v11040_v61  ;;  %8919 = vmatpush3.msra.mxu1 %v11013_v45 }
0x1538   :  { %8865 = vmatpush3.msra.mxu0 %v11040_v61  ;;  %8920 = vmatprep.subr.mxu1 %v11023_v58 }
0x1539   :  { %8867 = vmatmul.mubr.f32.vlgmr.msra.gmra.mxu0 %v6292_v56  ;;  %8893 = vmatmul.mubr.f32.gmra.mxu1 %v11132_v24 }
0x153a   :  { %8869 = vmatprep.mubr.f32.mxu0 %v6302_v60  ;;  %8895 = vmatprep.mubr.f32.mxu1 %v11139_v13 }
0x153b   :  { %8898 = vmatprep.subr.mxu0 %v11031_v34  ;;  %8921 = vmatpush3.msra.mxu1 %v11023_v58 }
0x153c   :  { %8899 = vmatpush3.msra.mxu0 %v11031_v34  ;;  %8922 = vmatprep.subr.mxu1 %v11033_v1 }
0x153d   :  { %8870 = vmatmul.mubr.f32.gmra.mxu0 %v6312_v46  ;;  %8900 = vmatprep.subr.mxu0 %v11038_v0 }
0x153e   :  { %8872 = vmatprep.mubr.f32.mxu0 %v6322_v53  ;;  %8901 = vmatpush3.msra.mxu0 %v11038_v0 }
0x153f   :  { %8923 = vmatpush3.msra.mxu1 %v11033_v1  ;;  %8902 = vmatprep.subr.mxu0 %v11048_v54 }
0x1540   :  { %8924 = vmatprep.subr.mxu1 %v11040_v61  ;;  %8903 = vmatpush3.msra.mxu0 %v11048_v54 }
0x1541   :  { %8873 = vmatmul.mubr.f32.gmra.mxu0 %v6332_v63  ;;  %8925 = vmatpush3.msra.mxu1 %v11040_v61 }
0x1542   :  { %8875 = vmatprep.mubr.f32.mxu0 %v6342_v6  ;;  %8904 = vmatprep.subr.mxu0 %v11057_v44 }
0x1543   :  { %8905 = vmatpush3.msra.mxu0 %v11057_v44  ;;  %8958 = vmatprep.subr.mxu1 %v11013_v45 }
0x1544   :  { %8938 = vmatprep.subr.mxu0 %v11045_v52 }
0x15d5   :  { %v5828_v34 = vpop.f32.mrf.mxu1 }
0x15d7   :  { %v8813_v0 = vpop.f32.mrf.mxu1 }
0x15dd   :  { %v5985_v33 = vpop.f32.mrf.mxu1 }
0x15de   :  { %v5737_v26 = vpop.f32.mrf.mxu0 }
0x15df   :  { %v8835_v17 = vpop.f32.mrf.mxu1  ;;  %v5829_v15 = vadd.f32 %v5828_v34, %v5737_v26 }
0x15e0   :  { %v8802_v10 = vpop.f32.mrf.mxu0 }
0x15e6   :  { %v5908_v16 = vpop.f32.mrf.mxu0 }
0x15e7   :  { %v6143_v54 = vpop.f32.mrf.mxu1  ;;  %v5909_v2 = vadd.f32 %v5908_v16, %v5829_v15 }
0x15e8   :  { %v8824_v7 = vpop.f32.mrf.mxu0 }
0x15e9   :  { %v8857_v4 = vpop.f32.mrf.mxu1  ;;  %v5986_v55 = vadd.f32 %v5985_v33, %v5909_v2 }
0x15f0   :  { %v6068_v29 = vpop.f32.mrf.mxu0 }
0x15f1   :  { %v6069_v56 = vadd.f32 %v6068_v29, %v5986_v55 }
0x15f2   :  { %v8846_v44 = vpop.f32.mrf.mxu0 }
0x15f3   :  { %v6144_v35 = vadd.f32 %v6143_v54, %v6069_v56 }
0x15f5   :  { %v6147_v60 = vadd.f32 %v6144_v35, %v10549_v30 }
0x15f7   :  { %9014 = vtanh.f32 %v6147_v60 }
0x1604   :  { %v9015_v8 = vpop.eup %9014 }
0x1605   :  { %6153 = vrot.lane.b32.xlu0 %v9015_v8, %s9054_s4  ;;  %v6149_v46 = vmul.f32 0.5, %v9015_v8 }
0x1607   :  { %v6150_v20 = vadd.f32 0.5, %v6149_v46 }
0x1609   :  { %v6151_v63 = vmul.f32 %v6150_v20, %v10998_v40 }
0x1677   :  { %v6154_v53 = vpop.permute.xlu0 %6153 }
0x1678   :  { %v6156_v3 = vmul.f32 %v6154_v53, %v6150_v20 }
0x167a   :  { %6158 = vrot.lane.b32.xlu1 %v6156_v3, %s9055_s20 }
0x16ec   :  { %v6159_v6 = vpop.permute.xlu1 %6158 }
0x16ed   :  { %v6161_v34 = vadd.f32 %v6159_v6, %v6151_v63 }
0x16ef   :  { %9016 = vtanh.f32 %v6161_v34 }
0x16fc   :  { %v9017_v0 = vpop.eup %9016 }
0x16fd   :  { %6164 = vrot.lane.b32.xlu0 %v9017_v0, %s9054_s4 }
0x176f   :  { %v6165_v33 = vpop.permute.xlu0 %6164 }
0x1770   :  { %v6167_v30 = vmul.f32 %v6165_v33, %v6150_v20 }
0x1772   :  { %6169 = vrot.lane.b32.xlu1 %v6167_v30, %s9055_s20 }
0x17e4   :  { %v6170_v26 = vpop.permute.xlu1 %6169 }
0x17e5   :  { %6172 = vst.msk [vmem:[#allocation2 + $0x38] sm:$0xff] %vm2067_vm1, %v6170_v26 }
0x17ec   :  { %v6180_v17 = vld [vmem:[#allocation2 + $0x38] sm:$0xff] }
0x17ed   :  { %v6207_v10 = vsel %vm2067_vm1, %v6180_v17, 0 }
0x17ee   :  { %v6348_v16 = vand.u32 4294901760, %v6207_v10 }
0x17f0   :  { %8896 = vmatmul.mubr.f32.gmra.mxu1 %v6348_v16  ;;  %v6349_v54 = vsub.f32 %v6207_v10, %v6348_v16 }
0x17f1   :  { %8926 = vmatprep.mubr.f32.mxu1 %v6280_v9 }
0x17f2   :  { %v6350_v40 = vand.u32 4294901760, %v6349_v54 }
0x17f4   :  { %8927 = vmatmul.mubr.f32.vlgmr.msra.gmra.mxu1 %v6290_v21  ;;  %v6351_v7 = vsub.f32 %v6349_v54, %v6350_v40 }
0x17f5   :  { %8929 = vmatprep.mubr.f32.mxu1 %v6300_v43  ;;  %8959 = vmatpush3.msra.mxu1 %v11013_v45  ;;  %v8888_v45 = vpop.f32.mrf.mxu1 }
0x17f6   :  { %v6352_v15 = vand.u32 4294901760, %v6351_v7  ;;  %8960 = vmatprep.subr.mxu1 %v11023_v58 }
0x17f7   :  { %8961 = vmatpush3.msra.mxu1 %v11023_v58  ;;  %v6445_v58 = vpop.f32.mrf.mxu1 }
0x17f8   :  { %8876 = vmatmul.mubr.f32.gmra.mxu0 %v6352_v15  ;;  %8930 = vmatmul.mubr.f32.gmra.mxu1 %v6310_v62 }
0x17f9   :  { %8906 = vmatprep.mubr.f32.mxu0 %v11088_v5  ;;  %8932 = vmatprep.mubr.f32.mxu1 %v6320_v50 }
0x17fa   :  { %8962 = vmatprep.subr.mxu1 %v11033_v1 }
0x17fb   :  { %8963 = vmatpush3.msra.mxu1 %v11033_v1  ;;  %v8891_v1 = vpop.f32.mrf.mxu1 }
0x17fc   :  { %8907 = vmatmul.mubr.f32.vlgmr.msra.gmra.mxu0 %v11111_v59  ;;  %8933 = vmatmul.mubr.f32.gmra.mxu1 %v6330_v57 }
0x17fd   :  { %8909 = vmatprep.mubr.f32.mxu0 %v11123_v28  ;;  %8935 = vmatprep.mubr.f32.mxu1 %v6340_v23 }
0x17fe   :  { %8939 = vmatpush3.msra.mxu0 %v11045_v52  ;;  %8964 = vmatprep.subr.mxu1 %v11040_v61  ;;  %v6457_v52 = vpop.f32.mrf.mxu1 }
0x17ff   :  { %8940 = vmatprep.subr.mxu0 %v11054_v49  ;;  %8965 = vmatpush3.msra.mxu1 %v11040_v61  ;;  %v8868_v61 = vpop.f32.mrf.mxu0 }
0x1800   :  { %8910 = vmatmul.mubr.f32.gmra.mxu0 %v11135_v36  ;;  %8936 = vmatmul.mubr.f32.gmra.mxu1 %v6350_v40 }
0x1801   :  { %8912 = vmatprep.mubr.f32.mxu0 %v11142_v42  ;;  %8941 = vmatpush3.msra.mxu0 %v11054_v49  ;;  %v6284_v49 = vpop.f32.mrf.mxu0 }
0x1802   :  { %8966 = vmatprep.mubr.f32.mxu1 %v11065_v31  ;;  %8942 = vmatprep.subr.mxu0 %v11068_v27  ;;  %v6285_v4 = vadd.f32 %v6284_v49, %v10555_v18 }
0x1803   :  { %8943 = vmatpush3.msra.mxu0 %v11068_v27  ;;  %v8871_v27 = vpop.f32.mrf.mxu0 }
0x1804   :  { %8913 = vmatmul.mubr.f32.gmra.mxu0 %v11154_v11  ;;  %8967 = vmatmul.mubr.f32.vlgmr.msra.gmra.mxu1 %v11099_v19  ;;  %v6315_v29 = vadd.f32 %v8871_v27, %v10557_v22  ;;  %v6446_v46 = vadd.f32 %v6445_v58, %v6285_v4 }
0x1805   :  { %8915 = vmatprep.mubr.f32.mxu0 %v11162_v25  ;;  %8969 = vmatprep.mubr.f32.mxu1 %v11103_v37  ;;  %v6304_v5 = vpop.f32.mrf.mxu0  ;;  %v6295_v25 = vadd.f32 %v8868_v61, %v10553_v14 }
0x1806   :  { %8944 = vmatprep.subr.mxu0 %v11077_v47  ;;  %v6305_v60 = vadd.f32 %v6304_v5, %v10559_v12  ;;  %v6464_v63 = vadd.f32 %v8891_v1, %v6315_v29 }
0x1807   :  { %8945 = vmatpush3.msra.mxu0 %v11077_v47  ;;  %v8874_v9 = vpop.f32.mrf.mxu0  ;;  %v6452_v56 = vadd.f32 %v8888_v45, %v6295_v25 }
0x1808   :  { %8916 = vmatmul.mubr.f32.gmra.mxu0 %v6349_v54  ;;  %8970 = vmatmul.mubr.f32.gmra.mxu1 %v11113_v38  ;;  %v6335_v20 = vadd.f32 %v8874_v9, %v10561_v48  ;;  %v6458_v0 = vadd.f32 %v6457_v52, %v6305_v60 }
0x1809   :  { %8946 = vmatprep.mubr.f32.mxu0 %v11065_v31  ;;  %8972 = vmatprep.mubr.f32.mxu1 %v11119_v32  ;;  %v8894_v31 = vpop.f32.mrf.mxu1 }
0x180a   :  { %v6476_v30 = vadd.f32 %v8894_v31, %v6335_v20 }
0x180b   :  { %v6469_v47 = vpop.f32.mrf.mxu1 }
0x180c   :  { %8947 = vmatmul.mubr.f32.vlgmr.msra.gmra.mxu0 %v11099_v19  ;;  %8973 = vmatmul.mubr.f32.gmra.mxu1 %v11132_v24 }
0x180d   :  { %8949 = vmatprep.mubr.f32.mxu0 %v11103_v37  ;;  %8975 = vmatprep.mubr.f32.mxu1 %v11139_v13 }
0x1810   :  { %8950 = vmatmul.mubr.f32.gmra.mxu0 %v11113_v38  ;;  %8976 = vmatmul.mubr.f32.gmra.mxu1 %v6348_v16  ;;  %v6324_v38 = vpop.f32.mrf.mxu0 }
0x1811   :  { %8952 = vmatprep.mubr.f32.mxu0 %v11119_v32  ;;  %v6325_v6 = vadd.f32 %v6324_v38, %v10563_v39  ;;  %v7192_v39 = vld [vmem:[%s11336_s6] ss:$0 sm:$0xff] }
0x1812   :  { %v7193_v38 = vld [vmem:[%s11337_s7] ss:$0 sm:$0xff] }
0x1813   :  { %v6470_v40 = vadd.f32 %v6469_v47, %v6325_v6 }
0x1814   :  { %8953 = vmatmul.mubr.f32.gmra.mxu0 %v11132_v24 }
0x1815   :  { %8955 = vmatprep.mubr.f32.mxu0 %v11139_v13 }
0x1818   :  { %8956 = vmatmul.mubr.f32.gmra.mxu0 %v6348_v16 }
0x18b0   :  { %v8897_v19 = vpop.f32.mrf.mxu1 }
0x18b2   :  { %v11261_v37 = vpop.f32.mrf.mxu1 }
0x18b4   :  { %v8928_v59 = vpop.f32.mrf.mxu1 }
0x18b6   :  { %v6693_v32 = vpop.f32.mrf.mxu1 }
0x18b8   :  { %v8877_v28 = vpop.f32.mrf.mxu0  ;;  %v8931_v21 = vpop.f32.mrf.mxu1 }
0x18b9   :  { %v6355_v22 = vadd.f32 %v8877_v28, %v10565_v51 }
0x18ba   :  { %v6344_v24 = vpop.f32.mrf.mxu0  ;;  %v6709_v36 = vpop.f32.mrf.mxu1 }
0x18bb   :  { %v6345_v48 = vadd.f32 %v6344_v24, %v10567_v41  ;;  %v6488_v51 = vadd.f32 %v8897_v19, %v6355_v22 }
0x18bc   :  { %v8908_v43 = vpop.f32.mrf.mxu0  ;;  %v8934_v13 = vpop.f32.mrf.mxu1 }
0x18bd   :  { %v6575_v8 = vadd.f32 %v8908_v43, %v6452_v56  ;;  %v6482_v41 = vadd.f32 %v11261_v37, %v6345_v48 }
0x18be   :  { %v6567_v42 = vpop.f32.mrf.mxu0  ;;  %v11263_v62 = vpop.f32.mrf.mxu1 }
0x18bf   :  { %v6568_v3 = vadd.f32 %v6567_v42, %v6446_v46  ;;  %v6702_v33 = vadd.f32 %v8928_v59, %v6575_v8 }
0x18c0   :  { %v8911_v11 = vpop.f32.mrf.mxu0  ;;  %v11265_v50 = vpop.f32.mrf.mxu1 }
0x18c1   :  { %v6589_v34 = vadd.f32 %v8911_v11, %v6464_v63  ;;  %v6694_v16 = vadd.f32 %v6693_v32, %v6568_v3 }
0x18c2   :  { %v6581_v57 = vpop.f32.mrf.mxu0  ;;  %v11268_v23 = vpop.f32.mrf.mxu1 }
0x18c3   :  { %v6582_v12 = vadd.f32 %v6581_v57, %v6458_v0  ;;  %v6718_v58 = vadd.f32 %v8931_v21, %v6589_v34 }
0x18c4   :  { %v8914_v2 = vpop.f32.mrf.mxu0  ;;  %v8968_v55 = vpop.f32.mrf.mxu1 }
0x18c5   :  { %v6603_v54 = vadd.f32 %v8914_v2, %v6476_v30  ;;  %v6710_v5 = vadd.f32 %v6709_v36, %v6582_v12 }
0x18c6   :  { %v6595_v44 = vpop.f32.mrf.mxu0  ;;  %v6949_v35 = vpop.f32.mrf.mxu1 }
0x18c7   :  { %v6596_v1 = vadd.f32 %v6595_v44, %v6470_v40  ;;  %v6734_v59 = vadd.f32 %v8934_v13, %v6603_v54 }
0x18c8   :  { %v8917_v53 = vpop.f32.mrf.mxu0  ;;  %v8971_v14 = vpop.f32.mrf.mxu1 }
0x18c9   :  { %v6617_v9 = vadd.f32 %v8917_v53, %v6488_v51  ;;  %v6726_v11 = vadd.f32 %v11263_v62, %v6596_v1 }
0x18ca   :  { %v6609_v18 = vpop.f32.mrf.mxu0  ;;  %v6961_v26 = vpop.f32.mrf.mxu1 }
0x18cb   :  { %v6610_v19 = vadd.f32 %v6609_v18, %v6482_v41  ;;  %v6750_v13 = vadd.f32 %v11265_v50, %v6617_v9 }
0x18cc   :  { %v8948_v17 = vpop.f32.mrf.mxu0  ;;  %v8974_v61 = vpop.f32.mrf.mxu1 }
0x18cd   :  { %v6839_v10 = vadd.f32 %v8948_v17, %v6702_v33  ;;  %v6742_v53 = vadd.f32 %v11268_v23, %v6610_v19 }
0x18ce   :  { %v6832_v7 = vpop.f32.mrf.mxu0  ;;  %v6973_v43 = vpop.f32.mrf.mxu1 }
0x18cf   :  { %v6956_v15 = vadd.f32 %v8968_v55, %v6839_v10  ;;  %v6833_v45 = vadd.f32 %v6832_v7, %v6694_v16 }
0x18d0   :  { %v8951_v52 = vpop.f32.mrf.mxu0 }
0x18d1   :  { %v7003_v49 = vadd.f32 %v7192_v39, %v6956_v15  ;;  %v6950_v31 = vadd.f32 %v6949_v35, %v6833_v45  ;;  %v6851_v27 = vadd.f32 %v8951_v52, %v6718_v58  ;;  %v8977_v35 = vpop.f32.mrf.mxu1 }
0x18d2   :  { %v6844_v47 = vpop.f32.mrf.mxu0 }
0x18d3   :  { %v7002_v32 = vadd.f32 %v7192_v39, %v6950_v31  ;;  %v6968_v28 = vadd.f32 %v8971_v14, %v6851_v27  ;;  %v6845_v21 = vadd.f32 %v6844_v47, %v6710_v5  ;;  %v7011_v24 = vmax.f32 %v7003_v49, 0.0  ;;  %v6985_v33 = vpop.f32.mrf.mxu1 }
0x18d4   :  { %v8954_v42 = vpop.f32.mrf.mxu0 }
0x18d5   :  { %v7005_v25 = vadd.f32 %v7192_v39, %v6968_v28  ;;  %v6962_v36 = vadd.f32 %v6961_v26, %v6845_v21  ;;  %v6863_v57 = vadd.f32 %v8954_v42, %v6734_v59  ;;  %v7026_v4 = vmul.f32 %v7193_v38, %v7011_v24 }
0x18d6   :  { %v6856_v37 = vpop.f32.mrf.mxu0  ;;  %v7010_v2 = vmax.f32 %v7002_v32, 0.0 }
0x18d7   :  { %v7004_v55 = vadd.f32 %v7192_v39, %v6962_v36  ;;  %v6980_v29 = vadd.f32 %v8974_v61, %v6863_v57  ;;  %v6857_v56 = vadd.f32 %v6856_v37, %v6726_v11  ;;  %v7036_v44 = vsel %vm2067_vm1, %v7026_v4, 0.0 }
0x18d8   :  { %7037 = vadd.xlane.f32.xlu1 %v7036_v44  ;;  %v8957_v60 = vpop.f32.mrf.mxu0  ;;  %v7025_v8 = vmul.f32 %v7193_v38, %v7010_v2  ;;  %v7013_v46 = vmax.f32 %v7005_v25, 0.0  ;;  %v7058_v61 = vstv %s11338_s8 }
0x18d9   :  { %v6974_v20 = vadd.f32 %v6973_v43, %v6857_v56  ;;  %v6875_v62 = vadd.f32 %v8957_v60, %v6750_v13  ;;  %v7007_v14 = vadd.f32 %v7192_v39, %v6980_v29  ;;  %v7012_v6 = vmax.f32 %v7004_v55, 0.0 }
0x18da   :  { %v6868_v3 = vpop.f32.mrf.mxu0  ;;  %v7033_v63 = vsel %vm2067_vm1, %v7025_v8, 0.0  ;;  %v7028_v50 = vmul.f32 %v7193_v38, %v7013_v46 }
0x18db   :  { %v7006_v18 = vadd.f32 %v7192_v39, %v6974_v20  ;;  %v6992_v34 = vadd.f32 %v8977_v35, %v6875_v62  ;;  %v6869_v0 = vadd.f32 %v6868_v3, %v6742_v53  ;;  %7034 = vadd.xlane.f32.xlu0 %v7033_v63  ;;  %v7027_v12 = vmul.f32 %v7193_v38, %v7012_v6 }
0x18dc   :  { %v7042_v17 = vsel %vm2067_vm1, %v7028_v50, 0.0  ;;  %v7015_v10 = vmax.f32 %v7007_v14, 0.0 }
0x18dd   :  { %v6986_v22 = vadd.f32 %v6985_v33, %v6869_v0  ;;  %v7014_v30 = vmax.f32 %v7006_v18, 0.0  ;;  %v7009_v26 = vadd.f32 %v7192_v39, %v6992_v34  ;;  %v7039_v40 = vsel %vm2067_vm1, %v7027_v12, 0.0 }
0x18de   :  { %v7030_v7 = vmul.f32 %v7193_v38, %v7015_v10 }
0x18df   :  { %v7008_v16 = vadd.f32 %v7192_v39, %v6986_v22  ;;  %7043 = vadd.xlane.f32.xlu0 %v7042_v17  ;;  %v7029_v23 = vmul.f32 %v7193_v38, %v7014_v30  ;;  %v7017_v15 = vmax.f32 %v7009_v26, 0.0 }
0x18e0   :  { %v7048_v1 = vsel %vm2067_vm1, %v7030_v7, 0.0 }
0x18e1   :  { %v7045_v48 = vsel %vm2067_vm1, %v7029_v23, 0.0  ;;  %v7016_v54 = vmax.f32 %v7008_v16, 0.0  ;;  %v7032_v51 = vmul.f32 %v7193_v38, %v7017_v15 }
0x18e2   :  { %7046 = vadd.xlane.f32.xlu1 %v7045_v48 }
0x18e3   :  { %7040 = vadd.xlane.f32.xlu0 %v7039_v40  ;;  %v7031_v45 = vmul.f32 %v7193_v38, %v7016_v54  ;;  %v7054_v39 = vsel %vm2067_vm1, %v7032_v51, 0.0 }
0x18e5   :  { %v7051_v58 = vsel %vm2067_vm1, %v7031_v45, 0.0 }
0x18e6   :  { %7052 = vadd.xlane.f32.xlu1 %v7051_v58 }
0x18e7   :  { %7049 = vadd.xlane.f32.xlu0 %v7048_v1 }
0x18eb   :  { %7055 = vadd.xlane.f32.xlu0 %v7054_v39 }
0x1961   :  { %v7038_v52 = vpop.xlane.xlu1 %7037 }
0x1962   :  { %v7060_v49 = vadd.f32 %v7058_v61, %v7038_v52 }
0x1964   :  { %v7195_v31 = vmul.f32 -1.442695, %v7060_v49  ;;  %v7035_v27 = vpop.xlane.xlu0 %7034 }
0x1965   :  { %v7059_v5 = vadd.f32 %v7058_v61, %v7035_v27 }
0x1966   :  { %9018 = vpow2.f32 %v7195_v31 }
0x1967   :  { %v7194_v9 = vmul.f32 -1.442695, %v7059_v5 }
0x1968   :  { %v7044_v41 = vpop.xlane.xlu0 %7043 }
0x1969   :  { %9020 = vpow2.f32 %v7194_v9  ;;  %v7062_v47 = vadd.f32 %v7058_v61, %v7044_v41 }
0x196b   :  { %v7197_v59 = vmul.f32 -1.442695, %v7062_v47  ;;  %v7047_v38 = vpop.xlane.xlu1 %7046 }
0x196c   :  { %v7063_v32 = vadd.f32 %v7058_v61, %v7047_v38  ;;  %v7041_v28 = vpop.xlane.xlu0 %7040 }
0x196d   :  { %9022 = vpow2.f32 %v7197_v59  ;;  %v7061_v21 = vadd.f32 %v7058_v61, %v7041_v28 }
0x196e   :  { %v7198_v24 = vmul.f32 -1.442695, %v7063_v32 }
0x196f   :  { %v7196_v19 = vmul.f32 -1.442695, %v7061_v21  ;;  %v7053_v43 = vpop.xlane.xlu1 %7052 }
0x1970   :  { %9024 = vpow2.f32 %v7198_v24  ;;  %v7050_v42 = vpop.xlane.xlu0 %7049  ;;  %v7065_v11 = vadd.f32 %v7058_v61, %v7053_v43 }
0x1971   :  { %9026 = vpow2.f32 %v7196_v19  ;;  %v7064_v25 = vadd.f32 %v7058_v61, %v7050_v42 }
0x1972   :  { %v7200_v36 = vmul.f32 -1.442695, %v7065_v11 }
0x1973   :  { %v9019_v57 = vpop.eup %9018  ;;  %v7199_v4 = vmul.f32 -1.442695, %v7064_v25 }
0x1974   :  { %v7092_v37 = vadd.f32 1.0, %v9019_v57  ;;  %9028 = vpow2.f32 %v7200_v36  ;;  %v7056_v13 = vpop.xlane.xlu0 %7055 }
0x1975   :  { %9030 = vpow2.f32 %v7199_v4  ;;  %v7066_v2 = vadd.f32 %v7058_v61, %v7056_v13 }
0x1976   :  { %v9021_v55 = vpop.eup %9020  ;;  %9032 = vrcp.f32 %v7092_v37 }
0x1977   :  { %v7091_v29 = vadd.f32 1.0, %v9021_v55  ;;  %v7201_v56 = vmul.f32 -1.442695, %v7066_v2 }
0x1979   :  { %9034 = vrcp.f32 %v7091_v29 }
0x197a   :  { %v9023_v44 = vpop.eup %9022  ;;  %9036 = vpow2.f32 %v7201_v56 }
0x197b   :  { %v7094_v35 = vadd.f32 1.0, %v9023_v44 }
0x197d   :  { %v9025_v60 = vpop.eup %9024  ;;  %9038 = vrcp.f32 %v7094_v35 }
0x197e   :  { %v9027_v8 = vpop.eup %9026  ;;  %v7095_v46 = vadd.f32 1.0, %v9025_v60 }
0x197f   :  { %v7093_v20 = vadd.f32 1.0, %v9027_v8 }
0x1980   :  { %9040 = vrcp.f32 %v7095_v46 }
0x1981   :  { %v9029_v62 = vpop.eup %9028  ;;  %9042 = vrcp.f32 %v7093_v20 }
0x1982   :  { %v9031_v53 = vpop.eup %9030  ;;  %v7097_v14 = vadd.f32 1.0, %v9029_v62 }
0x1983   :  { %v9033_v3 = vpop.eup %9032  ;;  %v7096_v63 = vadd.f32 1.0, %v9031_v53 }
0x1984   :  { %7117 = vst.msk [vmem:[%s11339_s9 + $0x8] sm:$0xff] %vm7115_vm2, %v9033_v3  ;;  %9044 = vrcp.f32 %v7097_v14 }
0x1985   :  { %9046 = vrcp.f32 %v7096_v63 }
0x1986   :  { %v9035_v50 = vpop.eup %9034 }
0x1987   :  { %v9037_v6 = vpop.eup %9036  ;;  %7116 = vst.msk [vmem:[%s11339_s9] sm:$0xff] %vm7115_vm2, %v9035_v50 }
0x1988   :  { %v7098_v18 = vadd.f32 1.0, %v9037_v6 }
0x198a   :  { %v9039_v34 = vpop.eup %9038  ;;  %9048 = vrcp.f32 %v7098_v18 }
0x198b   :  { %7119 = vst.msk [vmem:[%s11339_s9 + $0x18] sm:$0xff] %vm7115_vm2, %v9039_v34 }
0x198d   :  { %v9041_v0 = vpop.eup %9040 }
0x198e   :  { %v9043_v33 = vpop.eup %9042  ;;  %7120 = vst.msk [vmem:[%s11339_s9 + $0x20] sm:$0xff] %vm7115_vm2, %v9041_v0 }
0x198f   :  { %7118 = vst.msk [vmem:[%s11339_s9 + $0x10] sm:$0xff] %vm7115_vm2, %v9043_v33 }
0x1991   :  { %v9045_v22 = vpop.eup %9044 }
0x1992   :  { %v9047_v30 = vpop.eup %9046  ;;  %7122 = vst.msk [vmem:[%s11339_s9 + $0x30] sm:$0xff] %vm7115_vm2, %v9045_v22 }
0x1993   :  { %7121 = vst.msk [vmem:[%s11339_s9 + $0x28] sm:$0xff] %vm7115_vm2, %v9047_v30 }
0x1997   :  { %v9049_v26 = vpop.eup %9048 }
0x1998   :  { %7123 = vst.msk [vmem:[%s11339_s9 + $0x38] sm:$0xff] %vm7115_vm2, %v9049_v26 }

</bundles_post_ra>
